<compile_context>
chip_gen: v7x
topology: tpu7x:2x2x1
jax: 0.10.0
libtpu: 0.0.40
codegen_flags: <defaults>
</compile_context>

<pallas_src>
import functools

import numpy as np
import jax
import jax.numpy as jnp
from jax.experimental import pallas as pl
from jax.experimental.pallas import tpu as pltpu


# ----------------------------------------------------------------------------- kernel
def _pan_dune_kernel(tab_ref, pts_ref, w1_ref, b1_ref, w2_ref, b2_ref,
                     w3_ref, b3_ref, g_ref, h_ref, out_ref, *, spt, npad):
    """One lane tile = `spt` receding steps x `npad` (128-aligned) obstacle points."""
    pts = pts_ref[...]                       # (4, Npad)  [obs_x, obs_y, vel_x, vel_y]
    tab = tab_ref[...]                       # (spt, 8)   [i*dt, x, y, cos, sin, 0, 0, 0]

    # ---- point flow for all steps of this tile; step axis on sublanes (dense) ----
    tdt = tab[:, 0:1]                        # (spt, 1)
    tx = tab[:, 1:2]
    ty = tab[:, 2:3]
    cs = tab[:, 3:4]
    sn = tab[:, 4:5]
    dx = pts[0:1, :] + tdt * pts[2:3, :] - tx        # (spt, Npad)
    dy = pts[1:2, :] + tdt * pts[3:4, :] - ty
    p0x_s = cs * dx + sn * dy                        # p0 = R^T (p - trans)
    p0y_s = cs * dy - sn * dx

    w1 = w1_ref[...]                         # (H, 2): K=2 first layer stays on the VPU
    b1 = b1_ref[...]
    w2 = w2_ref[...]                         # (H, H) bf16
    b2 = b2_ref[...]
    w3 = w3_ref[...]                         # (E, H) bf16
    b3 = b3_ref[...]
    g = g_ref[...]                           # (E, 2)
    hb = h_ref[...]                          # (E, 1)
    e_rows = g.shape[0]

    # ---- per-step DUNE MLP + lam + dist (static unroll; lanes stay 128-aligned) ----
    for j in range(spt):
        sl = slice(j * npad, (j + 1) * npad)
        p0x = p0x_s[j:j + 1, :]              # (1, Npad)
        p0y = p0y_s[j:j + 1, :]
        csj = cs[j:j + 1, :]                 # (1, 1)
        snj = sn[j:j + 1, :]

        # ObsPointNet surrogate MLP: 2 -> H -> H -> E, ReLU
        h1 = jnp.maximum(w1[:, 0:1] * p0x + w1[:, 1:2] * p0y + b1, 0.0)       # (H, Npad)
        h2 = jnp.maximum(
            jnp.dot(w2, h1.astype(jnp.bfloat16),
                    preferred_element_type=jnp.float32) + b2, 0.0)            # (H, Npad)
        mu = jnp.maximum(
            jnp.dot(w3, h2.astype(jnp.bfloat16),
                    preferred_element_type=jnp.float32) + b3, 0.0)            # (E, Npad)

        # lam = -R @ G^T @ mu  (E-sized contraction stays on VPU/XLU)
        gtx = jnp.sum(g[:, 0:1] * mu, axis=0, keepdims=True)                  # (1, Npad)
        gty = jnp.sum(g[:, 1:2] * mu, axis=0, keepdims=True)
        lam_x = -(csj * gtx - snj * gty)
        lam_y = -(snj * gtx + csj * gty)

        # signed distance per point: mu^T (G p0 - h)
        gp = g[:, 0:1] * p0x + g[:, 1:2] * p0y                                # (E, Npad)
        dist = jnp.sum(mu * (gp - hb), axis=0, keepdims=True)                 # (1, Npad)

        out_ref[0:1, sl] = p0x
        out_ref[1:2, sl] = p0y
        out_ref[2:2 + e_rows, sl] = mu
        out_ref[2 + e_rows:3 + e_rows, sl] = lam_x
        out_ref[3 + e_rows:4 + e_rows, sl] = lam_y
        out_ref[4 + e_rows:5 + e_rows, sl] = dist


# ----------------------------------------------------------------------------- pallas wrapper
def _dune_point_flow(nom_s, obs, vel, params, *, dt):
    """Fused generate_point_flow + DUNE surrogate over all T+1 receding steps."""
    T1 = nom_s.shape[1]
    N = obs.shape[1]
    H = params["w1"].shape[0]
    E = params["G"].shape[0]
    rows = 5 + E

    npad = max(128, ((N + 127) // 128) * 128)          # lane-align the point count

    # --- step tiling for the lane-parallel grid ---------------------------------
    max_tile_lanes = 4096                              # amortize ~0.35us/grid-step overhead
    if T1 * npad <= max_tile_lanes:
        spt, num_tiles = T1, 1                         # one tile: block == full array
    else:
        spt = max(1, max_tile_lanes // npad)
        spt = max(8, (spt // 8) * 8)                   # sublane-aligned block (8,128 rule)
        num_tiles = -(-T1 // spt)
    t1p = num_tiles * spt

    # --- tiny inputs: point cloud once + per-step table --------------------------
    pts = jnp.pad(jnp.concatenate([obs, vel], axis=0), ((0, 0), (0, npad - N)))   # (4, Npad)
    steps = jnp.arange(T1, dtype=jnp.float32) * jnp.float32(dt)
    tab = jnp.stack([steps, nom_s[0], nom_s[1],
                     jnp.cos(nom_s[2]), jnp.sin(nom_s[2])], axis=1)               # (T1, 5)
    tab = jnp.pad(tab, ((0, t1p - T1), (0, 3)))                                   # (T1p, 8)

    # --- explicit VMEM budget (double-buffered in/out blocks + per-step work) -----
    tile_lanes = spt * npad
    work_bytes = (3 * H + 4 * rows) * npad * 4
    io_bytes = 2 * (rows * tile_lanes + 4 * npad + spt * 8) * 4
    wt_bytes = (H * 2 + 3 * H + 3 * E + 2 * E) * 4 + (H * H + E * H) * 2
    vmem_limit = int(min(64 * 2 ** 20,
                         max(8 * 2 ** 20, 4 * (work_bytes + io_bytes + wt_bytes))))

    def const_spec(shape):
        zeros = (0,) * len(shape)
        return pl.BlockSpec(shape, lambda i: zeros)

    out = pl.pallas_call(
        functools.partial(_pan_dune_kernel, spt=spt, npad=npad),
        grid=(num_tiles,),
        in_specs=[
            pl.BlockSpec((spt, 8), lambda i: (i, 0)),   # per-step table (this tile's steps)
            const_spec((4, npad)),                      # point cloud + velocities (once)
            const_spec((H, 2)), const_spec((H, 1)),     # w1, b1
            const_spec((H, H)), const_spec((H, 1)),     # w2 (bf16), b2
            const_spec((E, H)), const_spec((E, 1)),     # w3 (bf16), b3
            const_spec((E, 2)), const_spec((E, 1)),     # G, h
        ],
        out_specs=pl.BlockSpec((rows, spt * npad), lambda i: (0, i)),
        out_shape=jax.ShapeDtypeStruct((rows, t1p * npad), jnp.float32),
        compiler_params=pltpu.CompilerParams(
            dimension_semantics=("parallel",),
            vmem_limit_bytes=vmem_limit),
    )(tab, pts,
      params["w1"], params["b1"], params["w2_bf16"], params["b2"],
      params["w3_bf16"], params["b3"], params["G"], params["h"])

    out3 = out.reshape(rows, t1p, npad)                                    # (rows, step, point)
    p0_all = jnp.transpose(out3[0:2], (1, 0, 2))[:T1, :, :N]               # (T+1, 2, N)
    mu_all = jnp.transpose(out3[2:2 + E], (1, 0, 2))[:T1, :, :N]           # (T+1, E, N)
    lam_all = jnp.transpose(out3[2 + E:4 + E], (1, 0, 2))[:T1, :, :N]      # (T+1, 2, N)
    dist_all = jnp.transpose(out3[4 + E:5 + E], (1, 0, 2))[:T1, :, :N]     # (T+1, 1, N)
    min_dist = jnp.min(dist_all)
    return p0_all, mu_all, lam_all, dist_all, min_dist


# ----------------------------------------------------------------------------- full forward (one device program)
@functools.partial(jax.jit, static_argnames=("dt", "iter_num", "nrmp_max_num"))
def _pan_forward_jit(nom_s, nom_u, obs, vel, params,
                     prev_s, prev_u, prev_mu, prev_lam, has_prev, iter_threshold,
                     *, dt, iter_num, nrmp_max_num):
    """Whole PAN iteration loop in one jitted program: no per-iteration host sync."""
    s, u = nom_s, nom_u
    p_s, p_u, p_mu, p_lam, hp = prev_s, prev_u, prev_mu, prev_lam, has_prev
    mu_all, lam_all = prev_mu, prev_lam
    min_dist = jnp.array(jnp.inf, jnp.float32)
    converged = jnp.array(False)
    diff = jnp.array(jnp.inf, jnp.float32)
    eff = max(1, min(prev_mu.shape[-1], nrmp_max_num))

    for _ in range(max(1, iter_num)):
        # DUNE + point flow (fused Pallas kernel)
        _p0_all, mu_all, lam_all, _dist_all, min_dist = _dune_point_flow(
            s, obs, vel, params, dt=dt)

        # TODO(synk): NRMP layer (cvxpy/ECOS convex MPC over nom_s/nom_u/ref_s/ref_us)
        # has no Pallas equivalent; nominal state and control pass through unchanged.
        s_new, u_new = s, u

        # stop criteria, evaluated fully on device (mirrors PAN.stop_criteria)
        mu_d = jnp.linalg.norm(mu_all.reshape(-1, mu_all.shape[-1])[:, :eff]
                               - p_mu.reshape(-1, p_mu.shape[-1])[:, :eff]) / eff
        lam_d = jnp.linalg.norm(lam_all.reshape(-1, lam_all.shape[-1])[:, :eff]
                                - p_lam.reshape(-1, p_lam.shape[-1])[:, :eff]) / eff
        diff = mu_d ** 2 + lam_d ** 2
        converged = converged | (hp & (diff < iter_threshold))
        # NOTE: with the passthrough NRMP every iteration is output-equivalent, so the
        # reference's early `break` (a device->host sync per iteration) is not needed;
        # XLA CSEs the repeated pure iterations.
        p_s, p_u, p_mu, p_lam, hp = s_new, u_new, mu_all, lam_all, jnp.array(True)
        s, u = s_new, u_new

    return s, u, min_dist, mu_all, lam_all, converged, diff


# ----------------------------------------------------------------------------- module
class PANPallas:
    """JAX/Pallas port of neupan.blocks.pan.PAN (DUNE + point-flow hot path on TPU)."""

    def __init__(self, receding=10, step_time=0.1, iter_num=2, dune_max_num=100,
                 nrmp_max_num=10, iter_threshold=0.1, hidden_dim=32, seed=0):
        self.T = receding
        self.dt = float(step_time)
        self.iter_num = int(iter_num)
        self.iter_threshold = float(iter_threshold)
        self.nrmp_max_num = int(nrmp_max_num)
        self.dune_max_num = int(dune_max_num)
        self.no_obs = (nrmp_max_num == 0) or (dune_max_num == 0)

        # robot convex polygon {p : G p <= h} (rectangle: half-length 0.5, half-width 0.3)
        G = jnp.array([[1.0, 0.0], [0.0, 1.0], [-1.0, 0.0], [0.0, -1.0]], jnp.float32)
        h = jnp.array([[0.5], [0.3], [0.5], [0.3]], jnp.float32)
        E, H = G.shape[0], int(hidden_dim)
        self.E, self.H = E, H

        # TODO(synk): the real DUNE loads trained ObsPointNet weights from a checkpoint;
        # a random surrogate MLP of identical shape is used here.
        key = jax.random.PRNGKey(seed)
        k1, k2, k3 = jax.random.split(key, 3)
        w2 = (1.0 / np.sqrt(H)) * jax.random.normal(k2, (H, H), jnp.float32)
        w3 = (1.0 / np.sqrt(H)) * jax.random.normal(k3, (E, H), jnp.float32)
        self.params = dict(
            w1=0.5 * jax.random.normal(k1, (H, 2), jnp.float32),
            b1=jnp.zeros((H, 1), jnp.float32),
            w2_bf16=w2.astype(jnp.bfloat16),        # cast once; stable layout across calls
            b2=jnp.zeros((H, 1), jnp.float32),
            w3_bf16=w3.astype(jnp.bfloat16),
            b3=jnp.zeros((E, 1), jnp.float32),
            G=G, h=h,
        )
        self.current_nom_values = [None, None, None, None]
        self.last_converged = None
        self.last_diff = None
        self.printed = False

    # ---- glue ------------------------------------------------------------------
    def _downsample_decimation(self, pts, max_num):
        n = pts.shape[1]
        if n <= max_num:
            return pts
        step = int(np.ceil(n / max_num))
        return pts[:, ::step][:, :max_num]

    def print_once(self, message):
        if not self.printed:
            print(message)
            self.printed = True

    # ---- forward -----------------------------------------------------------------
    def forward(self, nom_s, nom_u, ref_s, ref_us,
                obs_points=None, point_velocities=None):
        # ref_s / ref_us are only consumed by the NRMP convex program (TODO below).
        nom_s = jnp.asarray(nom_s, jnp.float32)
        nom_u = jnp.asarray(nom_u, jnp.float32)

        if obs_points is None or self.no_obs:
            # TODO(synk): NRMP layer (cvxpy/ECOS convex MPC) has no Pallas equivalent;
            # nominal state/control pass through unchanged and distance is +inf.
            self.current_nom_values = [nom_s, nom_u, None, None]
            return nom_s, nom_u, jnp.array(jnp.inf, jnp.float32)

        obs_p = jnp.asarray(obs_points, jnp.float32)
        vel_p = (jnp.zeros_like(obs_p) if point_velocities is None
                 else jnp.asarray(point_velocities, jnp.float32))
        if obs_p.shape[1] > self.dune_max_num:
            self.print_once(
                f"down sample the obs points from {obs_p.shape[1]} to {self.dune_max_num}")
            obs_p = self._downsample_decimation(obs_p, self.dune_max_num)
            vel_p = self._downsample_decimation(vel_p, self.dune_max_num)
        if obs_p.shape[1] == 0:
            self.current_nom_values = [nom_s, nom_u, None, None]
            return nom_s, nom_u, jnp.array(jnp.inf, jnp.float32)

        T1, N, E = nom_s.shape[1], obs_p.shape[1], self.E
        prev = self.current_nom_values
        if (prev[2] is not None and prev[2].shape == (T1, E, N)
                and prev[0].shape == nom_s.shape and prev[1].shape == nom_u.shape):
            prev_s, prev_u, prev_mu, prev_lam = prev
            has_prev = True
        else:
            prev_s, prev_u = jnp.zeros_like(nom_s), jnp.zeros_like(nom_u)
            prev_mu = jnp.zeros((T1, E, N), jnp.float32)
            prev_lam = jnp.zeros((T1, 2, N), jnp.float32)
            has_prev = False

        (out_s, out_u, min_dist, mu_all, lam_all,
         converged, diff) = _pan_forward_jit(
            nom_s, nom_u, obs_p, vel_p, self.params,
            prev_s, prev_u, prev_mu, prev_lam,
            jnp.array(has_prev), jnp.float32(self.iter_threshold),
            dt=self.dt, iter_num=self.iter_num, nrmp_max_num=self.nrmp_max_num)

        # bookkeeping for the next call's stop criteria (device arrays; no host sync)
        self.current_nom_values = [out_s, out_u, mu_all, lam_all]
        self.last_converged = converged
        self.last_diff = diff
        return out_s, out_u, min_dist


# ----------------------------------------------------------------------------- demo
if __name__ == "__main__":
    T = 8            # receding horizon
    N = 100          # obstacle points (== dune_max_num default; padded to 128 internally)

    ts = jnp.arange(T + 1, dtype=jnp.float32)
    nom_s = jnp.stack([0.5 * ts, 0.1 * ts, 0.05 * ts], axis=0)              # (3, T+1)
    nom_u = jnp.stack([jnp.full((T,), 0.5, jnp.float32),
                       jnp.full((T,), 0.05, jnp.float32)], axis=0)          # (2, T)
    ref_s = nom_s + 0.01                                                    # (3, T+1)
    ref_us = jnp.full((T,), 0.5, jnp.float32)                               # (T,)

    key = jax.random.PRNGKey(0)
    kp, kv = jax.random.split(key)
    obs_points = jax.random.uniform(kp, (2, N), jnp.float32, minval=-4.0, maxval=4.0)
    point_velocities = 0.1 * jax.random.normal(kv, (2, N), jnp.float32)

    pan = PANPallas(receding=T, step_time=0.1, iter_num=2,
                    dune_max_num=100, nrmp_max_num=10, iter_threshold=0.1,
                    hidden_dim=32, seed=0)

    out_s, out_u, out_dist = pan.forward(nom_s, nom_u, ref_s, ref_us,
                                         obs_points, point_velocities)
    jax.block_until_ready(out_s)
    jax.block_until_ready(out_u)
    jax.block_until_ready(out_dist)
    print("KERNEL_OK")
</pallas_src>

<mosaic_0001>
module attributes {stable_mosaic.version = 11 : i64} {
  func.func @_pan_dune_kernel(%arg0: i32, %arg1: memref<9x8xf32, #tpu.memory_space<vmem>>, %arg2: memref<4x128xf32, #tpu.memory_space<vmem>>, %arg3: memref<32x2xf32, #tpu.memory_space<vmem>>, %arg4: memref<32x1xf32, #tpu.memory_space<vmem>>, %arg5: memref<32x32xbf16, #tpu.memory_space<vmem>>, %arg6: memref<32x1xf32, #tpu.memory_space<vmem>>, %arg7: memref<4x32xbf16, #tpu.memory_space<vmem>>, %arg8: memref<4x1xf32, #tpu.memory_space<vmem>>, %arg9: memref<4x2xf32, #tpu.memory_space<vmem>>, %arg10: memref<4x1xf32, #tpu.memory_space<vmem>>, %arg11: memref<9x1152xf32, #tpu.memory_space<vmem>>) attributes {dimension_semantics = [#tpu.dimension_semantics<parallel>], iteration_bounds = array<i64: 1>, scalar_prefetch = 0 : i64, scratch_operands = 0 : i64, tpu.core_type = #tpu.core_type<tc>, window_params = [{transform_indices = @transform_0, window_bounds = array<i64: 9, 8>}, {pipeline_mode = #tpu.pipeline_mode<synchronous>, transform_indices = @transform_1, window_bounds = array<i64: 4, 128>}, {pipeline_mode = #tpu.pipeline_mode<synchronous>, transform_indices = @transform_2, window_bounds = array<i64: 32, 2>}, {pipeline_mode = #tpu.pipeline_mode<synchronous>, transform_indices = @transform_3, window_bounds = array<i64: 32, 1>}, {pipeline_mode = #tpu.pipeline_mode<synchronous>, transform_indices = @transform_4, window_bounds = array<i64: 32, 32>}, {pipeline_mode = #tpu.pipeline_mode<synchronous>, transform_indices = @transform_5, window_bounds = array<i64: 32, 1>}, {pipeline_mode = #tpu.pipeline_mode<synchronous>, transform_indices = @transform_6, window_bounds = array<i64: 4, 32>}, {pipeline_mode = #tpu.pipeline_mode<synchronous>, transform_indices = @transform_7, window_bounds = array<i64: 4, 1>}, {pipeline_mode = #tpu.pipeline_mode<synchronous>, transform_indices = @transform_8, window_bounds = array<i64: 4, 2>}, {pipeline_mode = #tpu.pipeline_mode<synchronous>, transform_indices = @transform_9, window_bounds = array<i64: 4, 1>}, {transform_indices = @transform_10, window_bounds = array<i64: 9, 1152>}]} {
    %c0 = arith.constant 0 : index
    %c0_0 = arith.constant 0 : index
    %0 = vector.load %arg2[%c0, %c0_0] : memref<4x128xf32, #tpu.memory_space<vmem>>, vector<4x128xf32>
    %c0_1 = arith.constant 0 : index
    %c0_2 = arith.constant 0 : index
    %1 = vector.load %arg1[%c0_1, %c0_2] : memref<9x8xf32, #tpu.memory_space<vmem>>, vector<9x8xf32>
    %2 = vector.extract_strided_slice %1 {offsets = [0, 0], sizes = [9, 1], strides = [1, 1]} : vector<9x8xf32> to vector<9x1xf32>
    %3 = vector.extract_strided_slice %1 {offsets = [0, 1], sizes = [9, 1], strides = [1, 1]} : vector<9x8xf32> to vector<9x1xf32>
    %4 = vector.extract_strided_slice %1 {offsets = [0, 2], sizes = [9, 1], strides = [1, 1]} : vector<9x8xf32> to vector<9x1xf32>
    %5 = vector.extract_strided_slice %1 {offsets = [0, 3], sizes = [9, 1], strides = [1, 1]} : vector<9x8xf32> to vector<9x1xf32>
    %6 = vector.extract_strided_slice %1 {offsets = [0, 4], sizes = [9, 1], strides = [1, 1]} : vector<9x8xf32> to vector<9x1xf32>
    %7 = vector.extract_strided_slice %0 {offsets = [0, 0], sizes = [1, 128], strides = [1, 1]} : vector<4x128xf32> to vector<1x128xf32>
    %8 = vector.extract_strided_slice %0 {offsets = [2, 0], sizes = [1, 128], strides = [1, 1]} : vector<4x128xf32> to vector<1x128xf32>
    %9 = vector.broadcast %2 : vector<9x1xf32> to vector<9x128xf32>
    %10 = vector.broadcast %8 : vector<1x128xf32> to vector<9x128xf32>
    %11 = arith.mulf %9, %10 : vector<9x128xf32>
    %12 = vector.broadcast %7 : vector<1x128xf32> to vector<9x128xf32>
    %13 = arith.addf %12, %11 : vector<9x128xf32>
    %14 = vector.broadcast %3 : vector<9x1xf32> to vector<9x128xf32>
    %15 = arith.subf %13, %14 : vector<9x128xf32>
    %16 = vector.extract_strided_slice %0 {offsets = [1, 0], sizes = [1, 128], strides = [1, 1]} : vector<4x128xf32> to vector<1x128xf32>
    %17 = vector.extract_strided_slice %0 {offsets = [3, 0], sizes = [1, 128], strides = [1, 1]} : vector<4x128xf32> to vector<1x128xf32>
    %18 = vector.broadcast %2 : vector<9x1xf32> to vector<9x128xf32>
    %19 = vector.broadcast %17 : vector<1x128xf32> to vector<9x128xf32>
    %20 = arith.mulf %18, %19 : vector<9x128xf32>
    %21 = vector.broadcast %16 : vector<1x128xf32> to vector<9x128xf32>
    %22 = arith.addf %21, %20 : vector<9x128xf32>
    %23 = vector.broadcast %4 : vector<9x1xf32> to vector<9x128xf32>
    %24 = arith.subf %22, %23 : vector<9x128xf32>
    %25 = vector.broadcast %5 : vector<9x1xf32> to vector<9x128xf32>
    %26 = arith.mulf %25, %15 : vector<9x128xf32>
    %27 = vector.broadcast %6 : vector<9x1xf32> to vector<9x128xf32>
    %28 = arith.mulf %27, %24 : vector<9x128xf32>
    %29 = arith.addf %26, %28 : vector<9x128xf32>
    %30 = vector.broadcast %5 : vector<9x1xf32> to vector<9x128xf32>
    %31 = arith.mulf %30, %24 : vector<9x128xf32>
    %32 = vector.broadcast %6 : vector<9x1xf32> to vector<9x128xf32>
    %33 = arith.mulf %32, %15 : vector<9x128xf32>
    %34 = arith.subf %31, %33 : vector<9x128xf32>
    %c0_3 = arith.constant 0 : index
    %c0_4 = arith.constant 0 : index
    %35 = vector.load %arg3[%c0_3, %c0_4] : memref<32x2xf32, #tpu.memory_space<vmem>>, vector<32x2xf32>
    %c0_5 = arith.constant 0 : index
    %c0_6 = arith.constant 0 : index
    %36 = vector.load %arg4[%c0_5, %c0_6] : memref<32x1xf32, #tpu.memory_space<vmem>>, vector<32x1xf32>
    %c0_7 = arith.constant 0 : index
    %c0_8 = arith.constant 0 : index
    %37 = vector.load %arg5[%c0_7, %c0_8] : memref<32x32xbf16, #tpu.memory_space<vmem>>, vector<32x32xbf16>
    %c0_9 = arith.constant 0 : index
    %c0_10 = arith.constant 0 : index
    %38 = vector.load %arg6[%c0_9, %c0_10] : memref<32x1xf32, #tpu.memory_space<vmem>>, vector<32x1xf32>
    %c0_11 = arith.constant 0 : index
    %c0_12 = arith.constant 0 : index
    %39 = vector.load %arg7[%c0_11, %c0_12] : memref<4x32xbf16, #tpu.memory_space<vmem>>, vector<4x32xbf16>
    %c0_13 = arith.constant 0 : index
    %c0_14 = arith.constant 0 : index
    %40 = vector.load %arg8[%c0_13, %c0_14] : memref<4x1xf32, #tpu.memory_space<vmem>>, vector<4x1xf32>
    %c0_15 = arith.constant 0 : index
    %c0_16 = arith.constant 0 : index
    %41 = vector.load %arg9[%c0_15, %c0_16] : memref<4x2xf32, #tpu.memory_space<vmem>>, vector<4x2xf32>
    %c0_17 = arith.constant 0 : index
    %c0_18 = arith.constant 0 : index
    %42 = vector.load %arg10[%c0_17, %c0_18] : memref<4x1xf32, #tpu.memory_space<vmem>>, vector<4x1xf32>
    %43 = vector.extract_strided_slice %29 {offsets = [0, 0], sizes = [1, 128], strides = [1, 1]} : vector<9x128xf32> to vector<1x128xf32>
    %44 = vector.extract_strided_slice %34 {offsets = [0, 0], sizes = [1, 128], strides = [1, 1]} : vector<9x128xf32> to vector<1x128xf32>
    %45 = vector.extract_strided_slice %5 {offsets = [0, 0], sizes = [1, 1], strides = [1, 1]} : vector<9x1xf32> to vector<1x1xf32>
    %46 = vector.extract_strided_slice %6 {offsets = [0, 0], sizes = [1, 1], strides = [1, 1]} : vector<9x1xf32> to vector<1x1xf32>
    %47 = vector.extract_strided_slice %35 {offsets = [0, 0], sizes = [32, 1], strides = [1, 1]} : vector<32x2xf32> to vector<32x1xf32>
    %48 = vector.broadcast %47 : vector<32x1xf32> to vector<32x128xf32>
    %49 = vector.broadcast %43 : vector<1x128xf32> to vector<32x128xf32>
    %50 = arith.mulf %48, %49 : vector<32x128xf32>
    %51 = vector.extract_strided_slice %35 {offsets = [0, 1], sizes = [32, 1], strides = [1, 1]} : vector<32x2xf32> to vector<32x1xf32>
    %52 = vector.broadcast %51 : vector<32x1xf32> to vector<32x128xf32>
    %53 = vector.broadcast %44 : vector<1x128xf32> to vector<32x128xf32>
    %54 = arith.mulf %52, %53 : vector<32x128xf32>
    %55 = arith.addf %50, %54 : vector<32x128xf32>
    %56 = vector.broadcast %36 : vector<32x1xf32> to vector<32x128xf32>
    %57 = arith.addf %55, %56 : vector<32x128xf32>
    %cst = arith.constant 0.000000e+00 : f32
    %58 = vector.broadcast %cst : f32 to vector<32x128xf32>
    %59 = arith.maximumf %57, %58 : vector<32x128xf32>
    %60 = arith.truncf %59 : vector<32x128xf32> to vector<32x128xbf16>
    %cst_19 = arith.constant dense<0.000000e+00> : vector<32x128xf32>
    %61 = tpu.matmul %37, %60, %cst_19 {dimension_numbers = #tpu.dot_dimension_numbers<[1], [0], [0], [1], [0, 0, 1, 1], [], []>} : vector<32x32xbf16>, vector<32x128xbf16>, vector<32x128xf32> -> vector<32x128xf32>
    %62 = vector.broadcast %38 : vector<32x1xf32> to vector<32x128xf32>
    %63 = arith.addf %61, %62 : vector<32x128xf32>
    %cst_20 = arith.constant 0.000000e+00 : f32
    %64 = vector.broadcast %cst_20 : f32 to vector<32x128xf32>
    %65 = arith.maximumf %63, %64 : vector<32x128xf32>
    %66 = arith.truncf %65 : vector<32x128xf32> to vector<32x128xbf16>
    %cst_21 = arith.constant dense<0.000000e+00> : vector<4x128xf32>
    %67 = tpu.matmul %39, %66, %cst_21 {dimension_numbers = #tpu.dot_dimension_numbers<[1], [0], [0], [1], [0, 0, 1, 1], [], []>} : vector<4x32xbf16>, vector<32x128xbf16>, vector<4x128xf32> -> vector<4x128xf32>
    %68 = vector.broadcast %40 : vector<4x1xf32> to vector<4x128xf32>
    %69 = arith.addf %67, %68 : vector<4x128xf32>
    %cst_22 = arith.constant 0.000000e+00 : f32
    %70 = vector.broadcast %cst_22 : f32 to vector<4x128xf32>
    %71 = arith.maximumf %69, %70 : vector<4x128xf32>
    %72 = vector.extract_strided_slice %41 {offsets = [0, 0], sizes = [4, 1], strides = [1, 1]} : vector<4x2xf32> to vector<4x1xf32>
    %73 = vector.broadcast %72 : vector<4x1xf32> to vector<4x128xf32>
    %74 = arith.mulf %73, %71 : vector<4x128xf32>
    %cst_23 = arith.constant dense<0.000000e+00> : vector<128xf32>
    %75 = vector.multi_reduction <add>, %74, %cst_23 [0] : vector<4x128xf32> to vector<128xf32>
    %76 = vector.shape_cast %75 : vector<128xf32> to vector<1x128xf32>
    %77 = vector.extract_strided_slice %41 {offsets = [0, 1], sizes = [4, 1], strides = [1, 1]} : vector<4x2xf32> to vector<4x1xf32>
    %78 = vector.broadcast %77 : vector<4x1xf32> to vector<4x128xf32>
    %79 = arith.mulf %78, %71 : vector<4x128xf32>
    %cst_24 = arith.constant dense<0.000000e+00> : vector<128xf32>
    %80 = vector.multi_reduction <add>, %79, %cst_24 [0] : vector<4x128xf32> to vector<128xf32>
    %81 = vector.shape_cast %80 : vector<128xf32> to vector<1x128xf32>
    %82 = vector.broadcast %45 : vector<1x1xf32> to vector<1x128xf32>
    %83 = arith.mulf %82, %76 : vector<1x128xf32>
    %84 = vector.broadcast %46 : vector<1x1xf32> to vector<1x128xf32>
    %85 = arith.mulf %84, %81 : vector<1x128xf32>
    %86 = arith.subf %83, %85 : vector<1x128xf32>
    %cst_25 = arith.constant 0.000000e+00 : f32
    %87 = vector.broadcast %cst_25 : f32 to vector<1x128xf32>
    %88 = arith.subf %87, %86 : vector<1x128xf32>
    %89 = vector.broadcast %46 : vector<1x1xf32> to vector<1x128xf32>
    %90 = arith.mulf %89, %76 : vector<1x128xf32>
    %91 = vector.broadcast %45 : vector<1x1xf32> to vector<1x128xf32>
    %92 = arith.mulf %91, %81 : vector<1x128xf32>
    %93 = arith.addf %90, %92 : vector<1x128xf32>
    %cst_26 = arith.constant 0.000000e+00 : f32
    %94 = vector.broadcast %cst_26 : f32 to vector<1x128xf32>
    %95 = arith.subf %94, %93 : vector<1x128xf32>
    %96 = vector.extract_strided_slice %41 {offsets = [0, 0], sizes = [4, 1], strides = [1, 1]} : vector<4x2xf32> to vector<4x1xf32>
    %97 = vector.broadcast %96 : vector<4x1xf32> to vector<4x128xf32>
    %98 = vector.broadcast %43 : vector<1x128xf32> to vector<4x128xf32>
    %99 = arith.mulf %97, %98 : vector<4x128xf32>
    %100 = vector.extract_strided_slice %41 {offsets = [0, 1], sizes = [4, 1], strides = [1, 1]} : vector<4x2xf32> to vector<4x1xf32>
    %101 = vector.broadcast %100 : vector<4x1xf32> to vector<4x128xf32>
    %102 = vector.broadcast %44 : vector<1x128xf32> to vector<4x128xf32>
    %103 = arith.mulf %101, %102 : vector<4x128xf32>
    %104 = arith.addf %99, %103 : vector<4x128xf32>
    %105 = vector.broadcast %42 : vector<4x1xf32> to vector<4x128xf32>
    %106 = arith.subf %104, %105 : vector<4x128xf32>
    %107 = arith.mulf %71, %106 : vector<4x128xf32>
    %cst_27 = arith.constant dense<0.000000e+00> : vector<128xf32>
    %108 = vector.multi_reduction <add>, %107, %cst_27 [0] : vector<4x128xf32> to vector<128xf32>
    %109 = vector.shape_cast %108 : vector<128xf32> to vector<1x128xf32>
    %c0_28 = arith.constant 0 : index
    %c0_29 = arith.constant 0 : index
    %110 = vector.load %arg11[%c0_28, %c0_29] : memref<9x1152xf32, #tpu.memory_space<vmem>>, vector<1x128xf32>
    tpu.vector_store %arg11[%c0_28, %c0_29], %43 {strides = array<i32>} : memref<9x1152xf32, #tpu.memory_space<vmem>>, vector<1x128xf32>,
    %c1 = arith.constant 1 : index
    %c0_30 = arith.constant 0 : index
    %111 = vector.load %arg11[%c1, %c0_30] : memref<9x1152xf32, #tpu.memory_space<vmem>>, vector<1x128xf32>
    tpu.vector_store %arg11[%c1, %c0_30], %44 {strides = array<i32>} : memref<9x1152xf32, #tpu.memory_space<vmem>>, vector<1x128xf32>,
    %c2 = arith.constant 2 : index
    %c0_31 = arith.constant 0 : index
    %112 = vector.load %arg11[%c2, %c0_31] : memref<9x1152xf32, #tpu.memory_space<vmem>>, vector<4x128xf32>
    tpu.vector_store %arg11[%c2, %c0_31], %71 {strides = array<i32>} : memref<9x1152xf32, #tpu.memory_space<vmem>>, vector<4x128xf32>,
    %c6 = arith.constant 6 : index
    %c0_32 = arith.constant 0 : index
    %113 = vector.load %arg11[%c6, %c0_32] : memref<9x1152xf32, #tpu.memory_space<vmem>>, vector<1x128xf32>
    tpu.vector_store %arg11[%c6, %c0_32], %88 {strides = array<i32>} : memref<9x1152xf32, #tpu.memory_space<vmem>>, vector<1x128xf32>,
    %c7 = arith.constant 7 : index
    %c0_33 = arith.constant 0 : index
    %114 = vector.load %arg11[%c7, %c0_33] : memref<9x1152xf32, #tpu.memory_space<vmem>>, vector<1x128xf32>
    tpu.vector_store %arg11[%c7, %c0_33], %95 {strides = array<i32>} : memref<9x1152xf32, #tpu.memory_space<vmem>>, vector<1x128xf32>,
    %c8 = arith.constant 8 : index
    %c0_34 = arith.constant 0 : index
    %115 = vector.load %arg11[%c8, %c0_34] : memref<9x1152xf32, #tpu.memory_space<vmem>>, vector<1x128xf32>
    tpu.vector_store %arg11[%c8, %c0_34], %109 {strides = array<i32>} : memref<9x1152xf32, #tpu.memory_space<vmem>>, vector<1x128xf32>,
    %116 = vector.extract_strided_slice %29 {offsets = [1, 0], sizes = [1, 128], strides = [1, 1]} : vector<9x128xf32> to vector<1x128xf32>
    %117 = vector.extract_strided_slice %34 {offsets = [1, 0], sizes = [1, 128], strides = [1, 1]} : vector<9x128xf32> to vector<1x128xf32>
    %118 = vector.extract_strided_slice %5 {offsets = [1, 0], sizes = [1, 1], strides = [1, 1]} : vector<9x1xf32> to vector<1x1xf32>
    %119 = vector.extract_strided_slice %6 {offsets = [1, 0], sizes = [1, 1], strides = [1, 1]} : vector<9x1xf32> to vector<1x1xf32>
    %120 = vector.extract_strided_slice %35 {offsets = [0, 0], sizes = [32, 1], strides = [1, 1]} : vector<32x2xf32> to vector<32x1xf32>
    %121 = vector.broadcast %120 : vector<32x1xf32> to vector<32x128xf32>
    %122 = vector.broadcast %116 : vector<1x128xf32> to vector<32x128xf32>
    %123 = arith.mulf %121, %122 : vector<32x128xf32>
    %124 = vector.extract_strided_slice %35 {offsets = [0, 1], sizes = [32, 1], strides = [1, 1]} : vector<32x2xf32> to vector<32x1xf32>
    %125 = vector.broadcast %124 : vector<32x1xf32> to vector<32x128xf32>
    %126 = vector.broadcast %117 : vector<1x128xf32> to vector<32x128xf32>
    %127 = arith.mulf %125, %126 : vector<32x128xf32>
    %128 = arith.addf %123, %127 : vector<32x128xf32>
    %129 = vector.broadcast %36 : vector<32x1xf32> to vector<32x128xf32>
    %130 = arith.addf %128, %129 : vector<32x128xf32>
    %cst_35 = arith.constant 0.000000e+00 : f32
    %131 = vector.broadcast %cst_35 : f32 to vector<32x128xf32>
    %132 = arith.maximumf %130, %131 : vector<32x128xf32>
    %133 = arith.truncf %132 : vector<32x128xf32> to vector<32x128xbf16>
    %cst_36 = arith.constant dense<0.000000e+00> : vector<32x128xf32>
    %134 = tpu.matmul %37, %133, %cst_36 {dimension_numbers = #tpu.dot_dimension_numbers<[1], [0], [0], [1], [0, 0, 1, 1], [], []>} : vector<32x32xbf16>, vector<32x128xbf16>, vector<32x128xf32> -> vector<32x128xf32>
    %135 = vector.broadcast %38 : vector<32x1xf32> to vector<32x128xf32>
    %136 = arith.addf %134, %135 : vector<32x128xf32>
    %cst_37 = arith.constant 0.000000e+00 : f32
    %137 = vector.broadcast %cst_37 : f32 to vector<32x128xf32>
    %138 = arith.maximumf %136, %137 : vector<32x128xf32>
    %139 = arith.truncf %138 : vector<32x128xf32> to vector<32x128xbf16>
    %cst_38 = arith.constant dense<0.000000e+00> : vector<4x128xf32>
    %140 = tpu.matmul %39, %139, %cst_38 {dimension_numbers = #tpu.dot_dimension_numbers<[1], [0], [0], [1], [0, 0, 1, 1], [], []>} : vector<4x32xbf16>, vector<32x128xbf16>, vector<4x128xf32> -> vector<4x128xf32>
    %141 = vector.broadcast %40 : vector<4x1xf32> to vector<4x128xf32>
    %142 = arith.addf %140, %141 : vector<4x128xf32>
    %cst_39 = arith.constant 0.000000e+00 : f32
    %143 = vector.broadcast %cst_39 : f32 to vector<4x128xf32>
    %144 = arith.maximumf %142, %143 : vector<4x128xf32>
    %145 = vector.extract_strided_slice %41 {offsets = [0, 0], sizes = [4, 1], strides = [1, 1]} : vector<4x2xf32> to vector<4x1xf32>
    %146 = vector.broadcast %145 : vector<4x1xf32> to vector<4x128xf32>
    %147 = arith.mulf %146, %144 : vector<4x128xf32>
    %cst_40 = arith.constant dense<0.000000e+00> : vector<128xf32>
    %148 = vector.multi_reduction <add>, %147, %cst_40 [0] : vector<4x128xf32> to vector<128xf32>
    %149 = vector.shape_cast %148 : vector<128xf32> to vector<1x128xf32>
    %150 = vector.extract_strided_slice %41 {offsets = [0, 1], sizes = [4, 1], strides = [1, 1]} : vector<4x2xf32> to vector<4x1xf32>
    %151 = vector.broadcast %150 : vector<4x1xf32> to vector<4x128xf32>
    %152 = arith.mulf %151, %144 : vector<4x128xf32>
    %cst_41 = arith.constant dense<0.000000e+00> : vector<128xf32>
    %153 = vector.multi_reduction <add>, %152, %cst_41 [0] : vector<4x128xf32> to vector<128xf32>
    %154 = vector.shape_cast %153 : vector<128xf32> to vector<1x128xf32>
    %155 = vector.broadcast %118 : vector<1x1xf32> to vector<1x128xf32>
    %156 = arith.mulf %155, %149 : vector<1x128xf32>
    %157 = vector.broadcast %119 : vector<1x1xf32> to vector<1x128xf32>
    %158 = arith.mulf %157, %154 : vector<1x128xf32>
    %159 = arith.subf %156, %158 : vector<1x128xf32>
    %cst_42 = arith.constant 0.000000e+00 : f32
    %160 = vector.broadcast %cst_42 : f32 to vector<1x128xf32>
    %161 = arith.subf %160, %159 : vector<1x128xf32>
    %162 = vector.broadcast %119 : vector<1x1xf32> to vector<1x128xf32>
    %163 = arith.mulf %162, %149 : vector<1x128xf32>
    %164 = vector.broadcast %118 : vector<1x1xf32> to vector<1x128xf32>
    %165 = arith.mulf %164, %154 : vector<1x128xf32>
    %166 = arith.addf %163, %165 : vector<1x128xf32>
    %cst_43 = arith.constant 0.000000e+00 : f32
    %167 = vector.broadcast %cst_43 : f32 to vector<1x128xf32>
    %168 = arith.subf %167, %166 : vector<1x128xf32>
    %169 = vector.extract_strided_slice %41 {offsets = [0, 0], sizes = [4, 1], strides = [1, 1]} : vector<4x2xf32> to vector<4x1xf32>
    %170 = vector.broadcast %169 : vector<4x1xf32> to vector<4x128xf32>
    %171 = vector.broadcast %116 : vector<1x128xf32> to vector<4x128xf32>
    %172 = arith.mulf %170, %171 : vector<4x128xf32>
    %173 = vector.extract_strided_slice %41 {offsets = [0, 1], sizes = [4, 1], strides = [1, 1]} : vector<4x2xf32> to vector<4x1xf32>
    %174 = vector.broadcast %173 : vector<4x1xf32> to vector<4x128xf32>
    %175 = vector.broadcast %117 : vector<1x128xf32> to vector<4x128xf32>
    %176 = arith.mulf %174, %175 : vector<4x128xf32>
    %177 = arith.addf %172, %176 : vector<4x128xf32>
    %178 = vector.broadcast %42 : vector<4x1xf32> to vector<4x128xf32>
    %179 = arith.subf %177, %178 : vector<4x128xf32>
    %180 = arith.mulf %144, %179 : vector<4x128xf32>
    %cst_44 = arith.constant dense<0.000000e+00> : vector<128xf32>
    %181 = vector.multi_reduction <add>, %180, %cst_44 [0] : vector<4x128xf32> to vector<128xf32>
    %182 = vector.shape_cast %181 : vector<128xf32> to vector<1x128xf32>
    %c0_45 = arith.constant 0 : index
    %c128 = arith.constant 128 : index
    %183 = vector.load %arg11[%c0_45, %c128] : memref<9x1152xf32, #tpu.memory_space<vmem>>, vector<1x128xf32>
    tpu.vector_store %arg11[%c0_45, %c128], %116 {strides = array<i32>} : memref<9x1152xf32, #tpu.memory_space<vmem>>, vector<1x128xf32>,
    %c1_46 = arith.constant 1 : index
    %c128_47 = arith.constant 128 : index
    %184 = vector.load %arg11[%c1_46, %c128_47] : memref<9x1152xf32, #tpu.memory_space<vmem>>, vector<1x128xf32>
    tpu.vector_store %arg11[%c1_46, %c128_47], %117 {strides = array<i32>} : memref<9x1152xf32, #tpu.memory_space<vmem>>, vector<1x128xf32>,
    %c2_48 = arith.constant 2 : index
    %c128_49 = arith.constant 128 : index
    %185 = vector.load %arg11[%c2_48, %c128_49] : memref<9x1152xf32, #tpu.memory_space<vmem>>, vector<4x128xf32>
    tpu.vector_store %arg11[%c2_48, %c128_49], %144 {strides = array<i32>} : memref<9x1152xf32, #tpu.memory_space<vmem>>, vector<4x128xf32>,
    %c6_50 = arith.constant 6 : index
    %c128_51 = arith.constant 128 : index
    %186 = vector.load %arg11[%c6_50, %c128_51] : memref<9x1152xf32, #tpu.memory_space<vmem>>, vector<1x128xf32>
    tpu.vector_store %arg11[%c6_50, %c128_51], %161 {strides = array<i32>} : memref<9x1152xf32, #tpu.memory_space<vmem>>, vector<1x128xf32>,
    %c7_52 = arith.constant 7 : index
    %c128_53 = arith.constant 128 : index
    %187 = vector.load %arg11[%c7_52, %c128_53] : memref<9x1152xf32, #tpu.memory_space<vmem>>, vector<1x128xf32>
    tpu.vector_store %arg11[%c7_52, %c128_53], %168 {strides = array<i32>} : memref<9x1152xf32, #tpu.memory_space<vmem>>, vector<1x128xf32>,
    %c8_54 = arith.constant 8 : index
    %c128_55 = arith.constant 128 : index
    %188 = vector.load %arg11[%c8_54, %c128_55] : memref<9x1152xf32, #tpu.memory_space<vmem>>, vector<1x128xf32>
    tpu.vector_store %arg11[%c8_54, %c128_55], %182 {strides = array<i32>} : memref<9x1152xf32, #tpu.memory_space<vmem>>, vector<1x128xf32>,
    %189 = vector.extract_strided_slice %29 {offsets = [2, 0], sizes = [1, 128], strides = [1, 1]} : vector<9x128xf32> to vector<1x128xf32>
    %190 = vector.extract_strided_slice %34 {offsets = [2, 0], sizes = [1, 128], strides = [1, 1]} : vector<9x128xf32> to vector<1x128xf32>
    %191 = vector.extract_strided_slice %5 {offsets = [2, 0], sizes = [1, 1], strides = [1, 1]} : vector<9x1xf32> to vector<1x1xf32>
    %192 = vector.extract_strided_slice %6 {offsets = [2, 0], sizes = [1, 1], strides = [1, 1]} : vector<9x1xf32> to vector<1x1xf32>
    %193 = vector.extract_strided_slice %35 {offsets = [0, 0], sizes = [32, 1], strides = [1, 1]} : vector<32x2xf32> to vector<32x1xf32>
    %194 = vector.broadcast %193 : vector<32x1xf32> to vector<32x128xf32>
    %195 = vector.broadcast %189 : vector<1x128xf32> to vector<32x128xf32>
    %196 = arith.mulf %194, %195 : vector<32x128xf32>
    %197 = vector.extract_strided_slice %35 {offsets = [0, 1], sizes = [32, 1], strides = [1, 1]} : vector<32x2xf32> to vector<32x1xf32>
    %198 = vector.broadcast %197 : vector<32x1xf32> to vector<32x128xf32>
    %199 = vector.broadcast %190 : vector<1x128xf32> to vector<32x128xf32>
    %200 = arith.mulf %198, %199 : vector<32x128xf32>
    %201 = arith.addf %196, %200 : vector<32x128xf32>
    %202 = vector.broadcast %36 : vector<32x1xf32> to vector<32x128xf32>
    %203 = arith.addf %201, %202 : vector<32x128xf32>
    %cst_56 = arith.constant 0.000000e+00 : f32
    %204 = vector.broadcast %cst_56 : f32 to vector<32x128xf32>
    %205 = arith.maximumf %203, %204 : vector<32x128xf32>
    %206 = arith.truncf %205 : vector<32x128xf32> to vector<32x128xbf16>
    %cst_57 = arith.constant dense<0.000000e+00> : vector<32x128xf32>
    %207 = tpu.matmul %37, %206, %cst_57 {dimension_numbers = #tpu.dot_dimension_numbers<[1], [0], [0], [1], [0, 0, 1, 1], [], []>} : vector<32x32xbf16>, vector<32x128xbf16>, vector<32x128xf32> -> vector<32x128xf32>
    %208 = vector.broadcast %38 : vector<32x1xf32> to vector<32x128xf32>
    %209 = arith.addf %207, %208 : vector<32x128xf32>
    %cst_58 = arith.constant 0.000000e+00 : f32
    %210 = vector.broadcast %cst_58 : f32 to vector<32x128xf32>
    %211 = arith.maximumf %209, %210 : vector<32x128xf32>
    %212 = arith.truncf %211 : vector<32x128xf32> to vector<32x128xbf16>
    %cst_59 = arith.constant dense<0.000000e+00> : vector<4x128xf32>
    %213 = tpu.matmul %39, %212, %cst_59 {dimension_numbers = #tpu.dot_dimension_numbers<[1], [0], [0], [1], [0, 0, 1, 1], [], []>} : vector<4x32xbf16>, vector<32x128xbf16>, vector<4x128xf32> -> vector<4x128xf32>
    %214 = vector.broadcast %40 : vector<4x1xf32> to vector<4x128xf32>
    %215 = arith.addf %213, %214 : vector<4x128xf32>
    %cst_60 = arith.constant 0.000000e+00 : f32
    %216 = vector.broadcast %cst_60 : f32 to vector<4x128xf32>
    %217 = arith.maximumf %215, %216 : vector<4x128xf32>
    %218 = vector.extract_strided_slice %41 {offsets = [0, 0], sizes = [4, 1], strides = [1, 1]} : vector<4x2xf32> to vector<4x1xf32>
    %219 = vector.broadcast %218 : vector<4x1xf32> to vector<4x128xf32>
    %220 = arith.mulf %219, %217 : vector<4x128xf32>
    %cst_61 = arith.constant dense<0.000000e+00> : vector<128xf32>
    %221 = vector.multi_reduction <add>, %220, %cst_61 [0] : vector<4x128xf32> to vector<128xf32>
    %222 = vector.shape_cast %221 : vector<128xf32> to vector<1x128xf32>
    %223 = vector.extract_strided_slice %41 {offsets = [0, 1], sizes = [4, 1], strides = [1, 1]} : vector<4x2xf32> to vector<4x1xf32>
    %224 = vector.broadcast %223 : vector<4x1xf32> to vector<4x128xf32>
    %225 = arith.mulf %224, %217 : vector<4x128xf32>
    %cst_62 = arith.constant dense<0.000000e+00> : vector<128xf32>
    %226 = vector.multi_reduction <add>, %225, %cst_62 [0] : vector<4x128xf32> to vector<128xf32>
    %227 = vector.shape_cast %226 : vector<128xf32> to vector<1x128xf32>
    %228 = vector.broadcast %191 : vector<1x1xf32> to vector<1x128xf32>
    %229 = arith.mulf %228, %222 : vector<1x128xf32>
    %230 = vector.broadcast %192 : vector<1x1xf32> to vector<1x128xf32>
    %231 = arith.mulf %230, %227 : vector<1x128xf32>
    %232 = arith.subf %229, %231 : vector<1x128xf32>
    %cst_63 = arith.constant 0.000000e+00 : f32
    %233 = vector.broadcast %cst_63 : f32 to vector<1x128xf32>
    %234 = arith.subf %233, %232 : vector<1x128xf32>
    %235 = vector.broadcast %192 : vector<1x1xf32> to vector<1x128xf32>
    %236 = arith.mulf %235, %222 : vector<1x128xf32>
    %237 = vector.broadcast %191 : vector<1x1xf32> to vector<1x128xf32>
    %238 = arith.mulf %237, %227 : vector<1x128xf32>
    %239 = arith.addf %236, %238 : vector<1x128xf32>
    %cst_64 = arith.constant 0.000000e+00 : f32
    %240 = vector.broadcast %cst_64 : f32 to vector<1x128xf32>
    %241 = arith.subf %240, %239 : vector<1x128xf32>
    %242 = vector.extract_strided_slice %41 {offsets = [0, 0], sizes = [4, 1], strides = [1, 1]} : vector<4x2xf32> to vector<4x1xf32>
    %243 = vector.broadcast %242 : vector<4x1xf32> to vector<4x128xf32>
    %244 = vector.broadcast %189 : vector<1x128xf32> to vector<4x128xf32>
    %245 = arith.mulf %243, %244 : vector<4x128xf32>
    %246 = vector.extract_strided_slice %41 {offsets = [0, 1], sizes = [4, 1], strides = [1, 1]} : vector<4x2xf32> to vector<4x1xf32>
    %247 = vector.broadcast %246 : vector<4x1xf32> to vector<4x128xf32>
    %248 = vector.broadcast %190 : vector<1x128xf32> to vector<4x128xf32>
    %249 = arith.mulf %247, %248 : vector<4x128xf32>
    %250 = arith.addf %245, %249 : vector<4x128xf32>
    %251 = vector.broadcast %42 : vector<4x1xf32> to vector<4x128xf32>
    %252 = arith.subf %250, %251 : vector<4x128xf32>
    %253 = arith.mulf %217, %252 : vector<4x128xf32>
    %cst_65 = arith.constant dense<0.000000e+00> : vector<128xf32>
    %254 = vector.multi_reduction <add>, %253, %cst_65 [0] : vector<4x128xf32> to vector<128xf32>
    %255 = vector.shape_cast %254 : vector<128xf32> to vector<1x128xf32>
    %c0_66 = arith.constant 0 : index
    %c256 = arith.constant 256 : index
    %256 = vector.load %arg11[%c0_66, %c256] : memref<9x1152xf32, #tpu.memory_space<vmem>>, vector<1x128xf32>
    tpu.vector_store %arg11[%c0_66, %c256], %189 {strides = array<i32>} : memref<9x1152xf32, #tpu.memory_space<vmem>>, vector<1x128xf32>,
    %c1_67 = arith.constant 1 : index
    %c256_68 = arith.constant 256 : index
    %257 = vector.load %arg11[%c1_67, %c256_68] : memref<9x1152xf32, #tpu.memory_space<vmem>>, vector<1x128xf32>
    tpu.vector_store %arg11[%c1_67, %c256_68], %190 {strides = array<i32>} : memref<9x1152xf32, #tpu.memory_space<vmem>>, vector<1x128xf32>,
    %c2_69 = arith.constant 2 : index
    %c256_70 = arith.constant 256 : index
    %258 = vector.load %arg11[%c2_69, %c256_70] : memref<9x1152xf32, #tpu.memory_space<vmem>>, vector<4x128xf32>
    tpu.vector_store %arg11[%c2_69, %c256_70], %217 {strides = array<i32>} : memref<9x1152xf32, #tpu.memory_space<vmem>>, vector<4x128xf32>,
    %c6_71 = arith.constant 6 : index
    %c256_72 = arith.constant 256 : index
    %259 = vector.load %arg11[%c6_71, %c256_72] : memref<9x1152xf32, #tpu.memory_space<vmem>>, vector<1x128xf32>
    tpu.vector_store %arg11[%c6_71, %c256_72], %234 {strides = array<i32>} : memref<9x1152xf32, #tpu.memory_space<vmem>>, vector<1x128xf32>,
    %c7_73 = arith.constant 7 : index
    %c256_74 = arith.constant 256 : index
    %260 = vector.load %arg11[%c7_73, %c256_74] : memref<9x1152xf32, #tpu.memory_space<vmem>>, vector<1x128xf32>
    tpu.vector_store %arg11[%c7_73, %c256_74], %241 {strides = array<i32>} : memref<9x1152xf32, #tpu.memory_space<vmem>>, vector<1x128xf32>,
    %c8_75 = arith.constant 8 : index
    %c256_76 = arith.constant 256 : index
    %261 = vector.load %arg11[%c8_75, %c256_76] : memref<9x1152xf32, #tpu.memory_space<vmem>>, vector<1x128xf32>
    tpu.vector_store %arg11[%c8_75, %c256_76], %255 {strides = array<i32>} : memref<9x1152xf32, #tpu.memory_space<vmem>>, vector<1x128xf32>,
    %262 = vector.extract_strided_slice %29 {offsets = [3, 0], sizes = [1, 128], strides = [1, 1]} : vector<9x128xf32> to vector<1x128xf32>
    %263 = vector.extract_strided_slice %34 {offsets = [3, 0], sizes = [1, 128], strides = [1, 1]} : vector<9x128xf32> to vector<1x128xf32>
    %264 = vector.extract_strided_slice %5 {offsets = [3, 0], sizes = [1, 1], strides = [1, 1]} : vector<9x1xf32> to vector<1x1xf32>
    %265 = vector.extract_strided_slice %6 {offsets = [3, 0], sizes = [1, 1], strides = [1, 1]} : vector<9x1xf32> to vector<1x1xf32>
    %266 = vector.extract_strided_slice %35 {offsets = [0, 0], sizes = [32, 1], strides = [1, 1]} : vector<32x2xf32> to vector<32x1xf32>
    %267 = vector.broadcast %266 : vector<32x1xf32> to vector<32x128xf32>
    %268 = vector.broadcast %262 : vector<1x128xf32> to vector<32x128xf32>
    %269 = arith.mulf %267, %268 : vector<32x128xf32>
    %270 = vector.extract_strided_slice %35 {offsets = [0, 1], sizes = [32, 1], strides = [1, 1]} : vector<32x2xf32> to vector<32x1xf32>
    %271 = vector.broadcast %270 : vector<32x1xf32> to vector<32x128xf32>
    %272 = vector.broadcast %263 : vector<1x128xf32> to vector<32x128xf32>
    %273 = arith.mulf %271, %272 : vector<32x128xf32>
    %274 = arith.addf %269, %273 : vector<32x128xf32>
    %275 = vector.broadcast %36 : vector<32x1xf32> to vector<32x128xf32>
    %276 = arith.addf %274, %275 : vector<32x128xf32>
    %cst_77 = arith.constant 0.000000e+00 : f32
    %277 = vector.broadcast %cst_77 : f32 to vector<32x128xf32>
    %278 = arith.maximumf %276, %277 : vector<32x128xf32>
    %279 = arith.truncf %278 : vector<32x128xf32> to vector<32x128xbf16>
    %cst_78 = arith.constant dense<0.000000e+00> : vector<32x128xf32>
    %280 = tpu.matmul %37, %279, %cst_78 {dimension_numbers = #tpu.dot_dimension_numbers<[1], [0], [0], [1], [0, 0, 1, 1], [], []>} : vector<32x32xbf16>, vector<32x128xbf16>, vector<32x128xf32> -> vector<32x128xf32>
    %281 = vector.broadcast %38 : vector<32x1xf32> to vector<32x128xf32>
    %282 = arith.addf %280, %281 : vector<32x128xf32>
    %cst_79 = arith.constant 0.000000e+00 : f32
    %283 = vector.broadcast %cst_79 : f32 to vector<32x128xf32>
    %284 = arith.maximumf %282, %283 : vector<32x128xf32>
    %285 = arith.truncf %284 : vector<32x128xf32> to vector<32x128xbf16>
    %cst_80 = arith.constant dense<0.000000e+00> : vector<4x128xf32>
    %286 = tpu.matmul %39, %285, %cst_80 {dimension_numbers = #tpu.dot_dimension_numbers<[1], [0], [0], [1], [0, 0, 1, 1], [], []>} : vector<4x32xbf16>, vector<32x128xbf16>, vector<4x128xf32> -> vector<4x128xf32>
    %287 = vector.broadcast %40 : vector<4x1xf32> to vector<4x128xf32>
    %288 = arith.addf %286, %287 : vector<4x128xf32>
    %cst_81 = arith.constant 0.000000e+00 : f32
    %289 = vector.broadcast %cst_81 : f32 to vector<4x128xf32>
    %290 = arith.maximumf %288, %289 : vector<4x128xf32>
    %291 = vector.extract_strided_slice %41 {offsets = [0, 0], sizes = [4, 1], strides = [1, 1]} : vector<4x2xf32> to vector<4x1xf32>
    %292 = vector.broadcast %291 : vector<4x1xf32> to vector<4x128xf32>
    %293 = arith.mulf %292, %290 : vector<4x128xf32>
    %cst_82 = arith.constant dense<0.000000e+00> : vector<128xf32>
    %294 = vector.multi_reduction <add>, %293, %cst_82 [0] : vector<4x128xf32> to vector<128xf32>
    %295 = vector.shape_cast %294 : vector<128xf32> to vector<1x128xf32>
    %296 = vector.extract_strided_slice %41 {offsets = [0, 1], sizes = [4, 1], strides = [1, 1]} : vector<4x2xf32> to vector<4x1xf32>
    %297 = vector.broadcast %296 : vector<4x1xf32> to vector<4x128xf32>
    %298 = arith.mulf %297, %290 : vector<4x128xf32>
    %cst_83 = arith.constant dense<0.000000e+00> : vector<128xf32>
    %299 = vector.multi_reduction <add>, %298, %cst_83 [0] : vector<4x128xf32> to vector<128xf32>
    %300 = vector.shape_cast %299 : vector<128xf32> to vector<1x128xf32>
    %301 = vector.broadcast %264 : vector<1x1xf32> to vector<1x128xf32>
    %302 = arith.mulf %301, %295 : vector<1x128xf32>
    %303 = vector.broadcast %265 : vector<1x1xf32> to vector<1x128xf32>
    %304 = arith.mulf %303, %300 : vector<1x128xf32>
    %305 = arith.subf %302, %304 : vector<1x128xf32>
    %cst_84 = arith.constant 0.000000e+00 : f32
    %306 = vector.broadcast %cst_84 : f32 to vector<1x128xf32>
    %307 = arith.subf %306, %305 : vector<1x128xf32>
    %308 = vector.broadcast %265 : vector<1x1xf32> to vector<1x128xf32>
    %309 = arith.mulf %308, %295 : vector<1x128xf32>
    %310 = vector.broadcast %264 : vector<1x1xf32> to vector<1x128xf32>
    %311 = arith.mulf %310, %300 : vector<1x128xf32>
    %312 = arith.addf %309, %311 : vector<1x128xf32>
    %cst_85 = arith.constant 0.000000e+00 : f32
    %313 = vector.broadcast %cst_85 : f32 to vector<1x128xf32>
    %314 = arith.subf %313, %312 : vector<1x128xf32>
    %315 = vector.extract_strided_slice %41 {offsets = [0, 0], sizes = [4, 1], strides = [1, 1]} : vector<4x2xf32> to vector<4x1xf32>
    %316 = vector.broadcast %315 : vector<4x1xf32> to vector<4x128xf32>
    %317 = vector.broadcast %262 : vector<1x128xf32> to vector<4x128xf32>
    %318 = arith.mulf %316, %317 : vector<4x128xf32>
    %319 = vector.extract_strided_slice %41 {offsets = [0, 1], sizes = [4, 1], strides = [1, 1]} : vector<4x2xf32> to vector<4x1xf32>
    %320 = vector.broadcast %319 : vector<4x1xf32> to vector<4x128xf32>
    %321 = vector.broadcast %263 : vector<1x128xf32> to vector<4x128xf32>
    %322 = arith.mulf %320, %321 : vector<4x128xf32>
    %323 = arith.addf %318, %322 : vector<4x128xf32>
    %324 = vector.broadcast %42 : vector<4x1xf32> to vector<4x128xf32>
    %325 = arith.subf %323, %324 : vector<4x128xf32>
    %326 = arith.mulf %290, %325 : vector<4x128xf32>
    %cst_86 = arith.constant dense<0.000000e+00> : vector<128xf32>
    %327 = vector.multi_reduction <add>, %326, %cst_86 [0] : vector<4x128xf32> to vector<128xf32>
    %328 = vector.shape_cast %327 : vector<128xf32> to vector<1x128xf32>
    %c0_87 = arith.constant 0 : index
    %c384 = arith.constant 384 : index
    %329 = vector.load %arg11[%c0_87, %c384] : memref<9x1152xf32, #tpu.memory_space<vmem>>, vector<1x128xf32>
    tpu.vector_store %arg11[%c0_87, %c384], %262 {strides = array<i32>} : memref<9x1152xf32, #tpu.memory_space<vmem>>, vector<1x128xf32>,
    %c1_88 = arith.constant 1 : index
    %c384_89 = arith.constant 384 : index
    %330 = vector.load %arg11[%c1_88, %c384_89] : memref<9x1152xf32, #tpu.memory_space<vmem>>, vector<1x128xf32>
    tpu.vector_store %arg11[%c1_88, %c384_89], %263 {strides = array<i32>} : memref<9x1152xf32, #tpu.memory_space<vmem>>, vector<1x128xf32>,
    %c2_90 = arith.constant 2 : index
    %c384_91 = arith.constant 384 : index
    %331 = vector.load %arg11[%c2_90, %c384_91] : memref<9x1152xf32, #tpu.memory_space<vmem>>, vector<4x128xf32>
    tpu.vector_store %arg11[%c2_90, %c384_91], %290 {strides = array<i32>} : memref<9x1152xf32, #tpu.memory_space<vmem>>, vector<4x128xf32>,
    %c6_92 = arith.constant 6 : index
    %c384_93 = arith.constant 384 : index
    %332 = vector.load %arg11[%c6_92, %c384_93] : memref<9x1152xf32, #tpu.memory_space<vmem>>, vector<1x128xf32>
    tpu.vector_store %arg11[%c6_92, %c384_93], %307 {strides = array<i32>} : memref<9x1152xf32, #tpu.memory_space<vmem>>, vector<1x128xf32>,
    %c7_94 = arith.constant 7 : index
    %c384_95 = arith.constant 384 : index
    %333 = vector.load %arg11[%c7_94, %c384_95] : memref<9x1152xf32, #tpu.memory_space<vmem>>, vector<1x128xf32>
    tpu.vector_store %arg11[%c7_94, %c384_95], %314 {strides = array<i32>} : memref<9x1152xf32, #tpu.memory_space<vmem>>, vector<1x128xf32>,
    %c8_96 = arith.constant 8 : index
    %c384_97 = arith.constant 384 : index
    %334 = vector.load %arg11[%c8_96, %c384_97] : memref<9x1152xf32, #tpu.memory_space<vmem>>, vector<1x128xf32>
    tpu.vector_store %arg11[%c8_96, %c384_97], %328 {strides = array<i32>} : memref<9x1152xf32, #tpu.memory_space<vmem>>, vector<1x128xf32>,
    %335 = vector.extract_strided_slice %29 {offsets = [4, 0], sizes = [1, 128], strides = [1, 1]} : vector<9x128xf32> to vector<1x128xf32>
    %336 = vector.extract_strided_slice %34 {offsets = [4, 0], sizes = [1, 128], strides = [1, 1]} : vector<9x128xf32> to vector<1x128xf32>
    %337 = vector.extract_strided_slice %5 {offsets = [4, 0], sizes = [1, 1], strides = [1, 1]} : vector<9x1xf32> to vector<1x1xf32>
    %338 = vector.extract_strided_slice %6 {offsets = [4, 0], sizes = [1, 1], strides = [1, 1]} : vector<9x1xf32> to vector<1x1xf32>
    %339 = vector.extract_strided_slice %35 {offsets = [0, 0], sizes = [32, 1], strides = [1, 1]} : vector<32x2xf32> to vector<32x1xf32>
    %340 = vector.broadcast %339 : vector<32x1xf32> to vector<32x128xf32>
    %341 = vector.broadcast %335 : vector<1x128xf32> to vector<32x128xf32>
    %342 = arith.mulf %340, %341 : vector<32x128xf32>
    %343 = vector.extract_strided_slice %35 {offsets = [0, 1], sizes = [32, 1], strides = [1, 1]} : vector<32x2xf32> to vector<32x1xf32>
    %344 = vector.broadcast %343 : vector<32x1xf32> to vector<32x128xf32>
    %345 = vector.broadcast %336 : vector<1x128xf32> to vector<32x128xf32>
    %346 = arith.mulf %344, %345 : vector<32x128xf32>
    %347 = arith.addf %342, %346 : vector<32x128xf32>
    %348 = vector.broadcast %36 : vector<32x1xf32> to vector<32x128xf32>
    %349 = arith.addf %347, %348 : vector<32x128xf32>
    %cst_98 = arith.constant 0.000000e+00 : f32
    %350 = vector.broadcast %cst_98 : f32 to vector<32x128xf32>
    %351 = arith.maximumf %349, %350 : vector<32x128xf32>
    %352 = arith.truncf %351 : vector<32x128xf32> to vector<32x128xbf16>
    %cst_99 = arith.constant dense<0.000000e+00> : vector<32x128xf32>
    %353 = tpu.matmul %37, %352, %cst_99 {dimension_numbers = #tpu.dot_dimension_numbers<[1], [0], [0], [1], [0, 0, 1, 1], [], []>} : vector<32x32xbf16>, vector<32x128xbf16>, vector<32x128xf32> -> vector<32x128xf32>
    %354 = vector.broadcast %38 : vector<32x1xf32> to vector<32x128xf32>
    %355 = arith.addf %353, %354 : vector<32x128xf32>
    %cst_100 = arith.constant 0.000000e+00 : f32
    %356 = vector.broadcast %cst_100 : f32 to vector<32x128xf32>
    %357 = arith.maximumf %355, %356 : vector<32x128xf32>
    %358 = arith.truncf %357 : vector<32x128xf32> to vector<32x128xbf16>
    %cst_101 = arith.constant dense<0.000000e+00> : vector<4x128xf32>
    %359 = tpu.matmul %39, %358, %cst_101 {dimension_numbers = #tpu.dot_dimension_numbers<[1], [0], [0], [1], [0, 0, 1, 1], [], []>} : vector<4x32xbf16>, vector<32x128xbf16>, vector<4x128xf32> -> vector<4x128xf32>
    %360 = vector.broadcast %40 : vector<4x1xf32> to vector<4x128xf32>
    %361 = arith.addf %359, %360 : vector<4x128xf32>
    %cst_102 = arith.constant 0.000000e+00 : f32
    %362 = vector.broadcast %cst_102 : f32 to vector<4x128xf32>
    %363 = arith.maximumf %361, %362 : vector<4x128xf32>
    %364 = vector.extract_strided_slice %41 {offsets = [0, 0], sizes = [4, 1], strides = [1, 1]} : vector<4x2xf32> to vector<4x1xf32>
    %365 = vector.broadcast %364 : vector<4x1xf32> to vector<4x128xf32>
    %366 = arith.mulf %365, %363 : vector<4x128xf32>
    %cst_103 = arith.constant dense<0.000000e+00> : vector<128xf32>
    %367 = vector.multi_reduction <add>, %366, %cst_103 [0] : vector<4x128xf32> to vector<128xf32>
    %368 = vector.shape_cast %367 : vector<128xf32> to vector<1x128xf32>
    %369 = vector.extract_strided_slice %41 {offsets = [0, 1], sizes = [4, 1], strides = [1, 1]} : vector<4x2xf32> to vector<4x1xf32>
    %370 = vector.broadcast %369 : vector<4x1xf32> to vector<4x128xf32>
    %371 = arith.mulf %370, %363 : vector<4x128xf32>
    %cst_104 = arith.constant dense<0.000000e+00> : vector<128xf32>
    %372 = vector.multi_reduction <add>, %371, %cst_104 [0] : vector<4x128xf32> to vector<128xf32>
    %373 = vector.shape_cast %372 : vector<128xf32> to vector<1x128xf32>
    %374 = vector.broadcast %337 : vector<1x1xf32> to vector<1x128xf32>
    %375 = arith.mulf %374, %368 : vector<1x128xf32>
    %376 = vector.broadcast %338 : vector<1x1xf32> to vector<1x128xf32>
    %377 = arith.mulf %376, %373 : vector<1x128xf32>
    %378 = arith.subf %375, %377 : vector<1x128xf32>
    %cst_105 = arith.constant 0.000000e+00 : f32
    %379 = vector.broadcast %cst_105 : f32 to vector<1x128xf32>
    %380 = arith.subf %379, %378 : vector<1x128xf32>
    %381 = vector.broadcast %338 : vector<1x1xf32> to vector<1x128xf32>
    %382 = arith.mulf %381, %368 : vector<1x128xf32>
    %383 = vector.broadcast %337 : vector<1x1xf32> to vector<1x128xf32>
    %384 = arith.mulf %383, %373 : vector<1x128xf32>
    %385 = arith.addf %382, %384 : vector<1x128xf32>
    %cst_106 = arith.constant 0.000000e+00 : f32
    %386 = vector.broadcast %cst_106 : f32 to vector<1x128xf32>
    %387 = arith.subf %386, %385 : vector<1x128xf32>
    %388 = vector.extract_strided_slice %41 {offsets = [0, 0], sizes = [4, 1], strides = [1, 1]} : vector<4x2xf32> to vector<4x1xf32>
    %389 = vector.broadcast %388 : vector<4x1xf32> to vector<4x128xf32>
    %390 = vector.broadcast %335 : vector<1x128xf32> to vector<4x128xf32>
    %391 = arith.mulf %389, %390 : vector<4x128xf32>
    %392 = vector.extract_strided_slice %41 {offsets = [0, 1], sizes = [4, 1], strides = [1, 1]} : vector<4x2xf32> to vector<4x1xf32>
    %393 = vector.broadcast %392 : vector<4x1xf32> to vector<4x128xf32>
    %394 = vector.broadcast %336 : vector<1x128xf32> to vector<4x128xf32>
    %395 = arith.mulf %393, %394 : vector<4x128xf32>
    %396 = arith.addf %391, %395 : vector<4x128xf32>
    %397 = vector.broadcast %42 : vector<4x1xf32> to vector<4x128xf32>
    %398 = arith.subf %396, %397 : vector<4x128xf32>
    %399 = arith.mulf %363, %398 : vector<4x128xf32>
    %cst_107 = arith.constant dense<0.000000e+00> : vector<128xf32>
    %400 = vector.multi_reduction <add>, %399, %cst_107 [0] : vector<4x128xf32> to vector<128xf32>
    %401 = vector.shape_cast %400 : vector<128xf32> to vector<1x128xf32>
    %c0_108 = arith.constant 0 : index
    %c512 = arith.constant 512 : index
    %402 = vector.load %arg11[%c0_108, %c512] : memref<9x1152xf32, #tpu.memory_space<vmem>>, vector<1x128xf32>
    tpu.vector_store %arg11[%c0_108, %c512], %335 {strides = array<i32>} : memref<9x1152xf32, #tpu.memory_space<vmem>>, vector<1x128xf32>,
    %c1_109 = arith.constant 1 : index
    %c512_110 = arith.constant 512 : index
    %403 = vector.load %arg11[%c1_109, %c512_110] : memref<9x1152xf32, #tpu.memory_space<vmem>>, vector<1x128xf32>
    tpu.vector_store %arg11[%c1_109, %c512_110], %336 {strides = array<i32>} : memref<9x1152xf32, #tpu.memory_space<vmem>>, vector<1x128xf32>,
    %c2_111 = arith.constant 2 : index
    %c512_112 = arith.constant 512 : index
    %404 = vector.load %arg11[%c2_111, %c512_112] : memref<9x1152xf32, #tpu.memory_space<vmem>>, vector<4x128xf32>
    tpu.vector_store %arg11[%c2_111, %c512_112], %363 {strides = array<i32>} : memref<9x1152xf32, #tpu.memory_space<vmem>>, vector<4x128xf32>,
    %c6_113 = arith.constant 6 : index
    %c512_114 = arith.constant 512 : index
    %405 = vector.load %arg11[%c6_113, %c512_114] : memref<9x1152xf32, #tpu.memory_space<vmem>>, vector<1x128xf32>
    tpu.vector_store %arg11[%c6_113, %c512_114], %380 {strides = array<i32>} : memref<9x1152xf32, #tpu.memory_space<vmem>>, vector<1x128xf32>,
    %c7_115 = arith.constant 7 : index
    %c512_116 = arith.constant 512 : index
    %406 = vector.load %arg11[%c7_115, %c512_116] : memref<9x1152xf32, #tpu.memory_space<vmem>>, vector<1x128xf32>
    tpu.vector_store %arg11[%c7_115, %c512_116], %387 {strides = array<i32>} : memref<9x1152xf32, #tpu.memory_space<vmem>>, vector<1x128xf32>,
    %c8_117 = arith.constant 8 : index
    %c512_118 = arith.constant 512 : index
    %407 = vector.load %arg11[%c8_117, %c512_118] : memref<9x1152xf32, #tpu.memory_space<vmem>>, vector<1x128xf32>
    tpu.vector_store %arg11[%c8_117, %c512_118], %401 {strides = array<i32>} : memref<9x1152xf32, #tpu.memory_space<vmem>>, vector<1x128xf32>,
    %408 = vector.extract_strided_slice %29 {offsets = [5, 0], sizes = [1, 128], strides = [1, 1]} : vector<9x128xf32> to vector<1x128xf32>
    %409 = vector.extract_strided_slice %34 {offsets = [5, 0], sizes = [1, 128], strides = [1, 1]} : vector<9x128xf32> to vector<1x128xf32>
    %410 = vector.extract_strided_slice %5 {offsets = [5, 0], sizes = [1, 1], strides = [1, 1]} : vector<9x1xf32> to vector<1x1xf32>
    %411 = vector.extract_strided_slice %6 {offsets = [5, 0], sizes = [1, 1], strides = [1, 1]} : vector<9x1xf32> to vector<1x1xf32>
    %412 = vector.extract_strided_slice %35 {offsets = [0, 0], sizes = [32, 1], strides = [1, 1]} : vector<32x2xf32> to vector<32x1xf32>
    %413 = vector.broadcast %412 : vector<32x1xf32> to vector<32x128xf32>
    %414 = vector.broadcast %408 : vector<1x128xf32> to vector<32x128xf32>
    %415 = arith.mulf %413, %414 : vector<32x128xf32>
    %416 = vector.extract_strided_slice %35 {offsets = [0, 1], sizes = [32, 1], strides = [1, 1]} : vector<32x2xf32> to vector<32x1xf32>
    %417 = vector.broadcast %416 : vector<32x1xf32> to vector<32x128xf32>
    %418 = vector.broadcast %409 : vector<1x128xf32> to vector<32x128xf32>
    %419 = arith.mulf %417, %418 : vector<32x128xf32>
    %420 = arith.addf %415, %419 : vector<32x128xf32>
    %421 = vector.broadcast %36 : vector<32x1xf32> to vector<32x128xf32>
    %422 = arith.addf %420, %421 : vector<32x128xf32>
    %cst_119 = arith.constant 0.000000e+00 : f32
    %423 = vector.broadcast %cst_119 : f32 to vector<32x128xf32>
    %424 = arith.maximumf %422, %423 : vector<32x128xf32>
    %425 = arith.truncf %424 : vector<32x128xf32> to vector<32x128xbf16>
    %cst_120 = arith.constant dense<0.000000e+00> : vector<32x128xf32>
    %426 = tpu.matmul %37, %425, %cst_120 {dimension_numbers = #tpu.dot_dimension_numbers<[1], [0], [0], [1], [0, 0, 1, 1], [], []>} : vector<32x32xbf16>, vector<32x128xbf16>, vector<32x128xf32> -> vector<32x128xf32>
    %427 = vector.broadcast %38 : vector<32x1xf32> to vector<32x128xf32>
    %428 = arith.addf %426, %427 : vector<32x128xf32>
    %cst_121 = arith.constant 0.000000e+00 : f32
    %429 = vector.broadcast %cst_121 : f32 to vector<32x128xf32>
    %430 = arith.maximumf %428, %429 : vector<32x128xf32>
    %431 = arith.truncf %430 : vector<32x128xf32> to vector<32x128xbf16>
    %cst_122 = arith.constant dense<0.000000e+00> : vector<4x128xf32>
    %432 = tpu.matmul %39, %431, %cst_122 {dimension_numbers = #tpu.dot_dimension_numbers<[1], [0], [0], [1], [0, 0, 1, 1], [], []>} : vector<4x32xbf16>, vector<32x128xbf16>, vector<4x128xf32> -> vector<4x128xf32>
    %433 = vector.broadcast %40 : vector<4x1xf32> to vector<4x128xf32>
    %434 = arith.addf %432, %433 : vector<4x128xf32>
    %cst_123 = arith.constant 0.000000e+00 : f32
    %435 = vector.broadcast %cst_123 : f32 to vector<4x128xf32>
    %436 = arith.maximumf %434, %435 : vector<4x128xf32>
    %437 = vector.extract_strided_slice %41 {offsets = [0, 0], sizes = [4, 1], strides = [1, 1]} : vector<4x2xf32> to vector<4x1xf32>
    %438 = vector.broadcast %437 : vector<4x1xf32> to vector<4x128xf32>
    %439 = arith.mulf %438, %436 : vector<4x128xf32>
    %cst_124 = arith.constant dense<0.000000e+00> : vector<128xf32>
    %440 = vector.multi_reduction <add>, %439, %cst_124 [0] : vector<4x128xf32> to vector<128xf32>
    %441 = vector.shape_cast %440 : vector<128xf32> to vector<1x128xf32>
    %442 = vector.extract_strided_slice %41 {offsets = [0, 1], sizes = [4, 1], strides = [1, 1]} : vector<4x2xf32> to vector<4x1xf32>
    %443 = vector.broadcast %442 : vector<4x1xf32> to vector<4x128xf32>
    %444 = arith.mulf %443, %436 : vector<4x128xf32>
    %cst_125 = arith.constant dense<0.000000e+00> : vector<128xf32>
    %445 = vector.multi_reduction <add>, %444, %cst_125 [0] : vector<4x128xf32> to vector<128xf32>
    %446 = vector.shape_cast %445 : vector<128xf32> to vector<1x128xf32>
    %447 = vector.broadcast %410 : vector<1x1xf32> to vector<1x128xf32>
    %448 = arith.mulf %447, %441 : vector<1x128xf32>
    %449 = vector.broadcast %411 : vector<1x1xf32> to vector<1x128xf32>
    %450 = arith.mulf %449, %446 : vector<1x128xf32>
    %451 = arith.subf %448, %450 : vector<1x128xf32>
    %cst_126 = arith.constant 0.000000e+00 : f32
    %452 = vector.broadcast %cst_126 : f32 to vector<1x128xf32>
    %453 = arith.subf %452, %451 : vector<1x128xf32>
    %454 = vector.broadcast %411 : vector<1x1xf32> to vector<1x128xf32>
    %455 = arith.mulf %454, %441 : vector<1x128xf32>
    %456 = vector.broadcast %410 : vector<1x1xf32> to vector<1x128xf32>
    %457 = arith.mulf %456, %446 : vector<1x128xf32>
    %458 = arith.addf %455, %457 : vector<1x128xf32>
    %cst_127 = arith.constant 0.000000e+00 : f32
    %459 = vector.broadcast %cst_127 : f32 to vector<1x128xf32>
    %460 = arith.subf %459, %458 : vector<1x128xf32>
    %461 = vector.extract_strided_slice %41 {offsets = [0, 0], sizes = [4, 1], strides = [1, 1]} : vector<4x2xf32> to vector<4x1xf32>
    %462 = vector.broadcast %461 : vector<4x1xf32> to vector<4x128xf32>
    %463 = vector.broadcast %408 : vector<1x128xf32> to vector<4x128xf32>
    %464 = arith.mulf %462, %463 : vector<4x128xf32>
    %465 = vector.extract_strided_slice %41 {offsets = [0, 1], sizes = [4, 1], strides = [1, 1]} : vector<4x2xf32> to vector<4x1xf32>
    %466 = vector.broadcast %465 : vector<4x1xf32> to vector<4x128xf32>
    %467 = vector.broadcast %409 : vector<1x128xf32> to vector<4x128xf32>
    %468 = arith.mulf %466, %467 : vector<4x128xf32>
    %469 = arith.addf %464, %468 : vector<4x128xf32>
    %470 = vector.broadcast %42 : vector<4x1xf32> to vector<4x128xf32>
    %471 = arith.subf %469, %470 : vector<4x128xf32>
    %472 = arith.mulf %436, %471 : vector<4x128xf32>
    %cst_128 = arith.constant dense<0.000000e+00> : vector<128xf32>
    %473 = vector.multi_reduction <add>, %472, %cst_128 [0] : vector<4x128xf32> to vector<128xf32>
    %474 = vector.shape_cast %473 : vector<128xf32> to vector<1x128xf32>
    %c0_129 = arith.constant 0 : index
    %c640 = arith.constant 640 : index
    %475 = vector.load %arg11[%c0_129, %c640] : memref<9x1152xf32, #tpu.memory_space<vmem>>, vector<1x128xf32>
    tpu.vector_store %arg11[%c0_129, %c640], %408 {strides = array<i32>} : memref<9x1152xf32, #tpu.memory_space<vmem>>, vector<1x128xf32>,
    %c1_130 = arith.constant 1 : index
    %c640_131 = arith.constant 640 : index
    %476 = vector.load %arg11[%c1_130, %c640_131] : memref<9x1152xf32, #tpu.memory_space<vmem>>, vector<1x128xf32>
    tpu.vector_store %arg11[%c1_130, %c640_131], %409 {strides = array<i32>} : memref<9x1152xf32, #tpu.memory_space<vmem>>, vector<1x128xf32>,
    %c2_132 = arith.constant 2 : index
    %c640_133 = arith.constant 640 : index
    %477 = vector.load %arg11[%c2_132, %c640_133] : memref<9x1152xf32, #tpu.memory_space<vmem>>, vector<4x128xf32>
    tpu.vector_store %arg11[%c2_132, %c640_133], %436 {strides = array<i32>} : memref<9x1152xf32, #tpu.memory_space<vmem>>, vector<4x128xf32>,
    %c6_134 = arith.constant 6 : index
    %c640_135 = arith.constant 640 : index
    %478 = vector.load %arg11[%c6_134, %c640_135] : memref<9x1152xf32, #tpu.memory_space<vmem>>, vector<1x128xf32>
    tpu.vector_store %arg11[%c6_134, %c640_135], %453 {strides = array<i32>} : memref<9x1152xf32, #tpu.memory_space<vmem>>, vector<1x128xf32>,
    %c7_136 = arith.constant 7 : index
    %c640_137 = arith.constant 640 : index
    %479 = vector.load %arg11[%c7_136, %c640_137] : memref<9x1152xf32, #tpu.memory_space<vmem>>, vector<1x128xf32>
    tpu.vector_store %arg11[%c7_136, %c640_137], %460 {strides = array<i32>} : memref<9x1152xf32, #tpu.memory_space<vmem>>, vector<1x128xf32>,
    %c8_138 = arith.constant 8 : index
    %c640_139 = arith.constant 640 : index
    %480 = vector.load %arg11[%c8_138, %c640_139] : memref<9x1152xf32, #tpu.memory_space<vmem>>, vector<1x128xf32>
    tpu.vector_store %arg11[%c8_138, %c640_139], %474 {strides = array<i32>} : memref<9x1152xf32, #tpu.memory_space<vmem>>, vector<1x128xf32>,
    %481 = vector.extract_strided_slice %29 {offsets = [6, 0], sizes = [1, 128], strides = [1, 1]} : vector<9x128xf32> to vector<1x128xf32>
    %482 = vector.extract_strided_slice %34 {offsets = [6, 0], sizes = [1, 128], strides = [1, 1]} : vector<9x128xf32> to vector<1x128xf32>
    %483 = vector.extract_strided_slice %5 {offsets = [6, 0], sizes = [1, 1], strides = [1, 1]} : vector<9x1xf32> to vector<1x1xf32>
    %484 = vector.extract_strided_slice %6 {offsets = [6, 0], sizes = [1, 1], strides = [1, 1]} : vector<9x1xf32> to vector<1x1xf32>
    %485 = vector.extract_strided_slice %35 {offsets = [0, 0], sizes = [32, 1], strides = [1, 1]} : vector<32x2xf32> to vector<32x1xf32>
    %486 = vector.broadcast %485 : vector<32x1xf32> to vector<32x128xf32>
    %487 = vector.broadcast %481 : vector<1x128xf32> to vector<32x128xf32>
    %488 = arith.mulf %486, %487 : vector<32x128xf32>
    %489 = vector.extract_strided_slice %35 {offsets = [0, 1], sizes = [32, 1], strides = [1, 1]} : vector<32x2xf32> to vector<32x1xf32>
    %490 = vector.broadcast %489 : vector<32x1xf32> to vector<32x128xf32>
    %491 = vector.broadcast %482 : vector<1x128xf32> to vector<32x128xf32>
    %492 = arith.mulf %490, %491 : vector<32x128xf32>
    %493 = arith.addf %488, %492 : vector<32x128xf32>
    %494 = vector.broadcast %36 : vector<32x1xf32> to vector<32x128xf32>
    %495 = arith.addf %493, %494 : vector<32x128xf32>
    %cst_140 = arith.constant 0.000000e+00 : f32
    %496 = vector.broadcast %cst_140 : f32 to vector<32x128xf32>
    %497 = arith.maximumf %495, %496 : vector<32x128xf32>
    %498 = arith.truncf %497 : vector<32x128xf32> to vector<32x128xbf16>
    %cst_141 = arith.constant dense<0.000000e+00> : vector<32x128xf32>
    %499 = tpu.matmul %37, %498, %cst_141 {dimension_numbers = #tpu.dot_dimension_numbers<[1], [0], [0], [1], [0, 0, 1, 1], [], []>} : vector<32x32xbf16>, vector<32x128xbf16>, vector<32x128xf32> -> vector<32x128xf32>
    %500 = vector.broadcast %38 : vector<32x1xf32> to vector<32x128xf32>
    %501 = arith.addf %499, %500 : vector<32x128xf32>
    %cst_142 = arith.constant 0.000000e+00 : f32
    %502 = vector.broadcast %cst_142 : f32 to vector<32x128xf32>
    %503 = arith.maximumf %501, %502 : vector<32x128xf32>
    %504 = arith.truncf %503 : vector<32x128xf32> to vector<32x128xbf16>
    %cst_143 = arith.constant dense<0.000000e+00> : vector<4x128xf32>
    %505 = tpu.matmul %39, %504, %cst_143 {dimension_numbers = #tpu.dot_dimension_numbers<[1], [0], [0], [1], [0, 0, 1, 1], [], []>} : vector<4x32xbf16>, vector<32x128xbf16>, vector<4x128xf32> -> vector<4x128xf32>
    %506 = vector.broadcast %40 : vector<4x1xf32> to vector<4x128xf32>
    %507 = arith.addf %505, %506 : vector<4x128xf32>
    %cst_144 = arith.constant 0.000000e+00 : f32
    %508 = vector.broadcast %cst_144 : f32 to vector<4x128xf32>
    %509 = arith.maximumf %507, %508 : vector<4x128xf32>
    %510 = vector.extract_strided_slice %41 {offsets = [0, 0], sizes = [4, 1], strides = [1, 1]} : vector<4x2xf32> to vector<4x1xf32>
    %511 = vector.broadcast %510 : vector<4x1xf32> to vector<4x128xf32>
    %512 = arith.mulf %511, %509 : vector<4x128xf32>
    %cst_145 = arith.constant dense<0.000000e+00> : vector<128xf32>
    %513 = vector.multi_reduction <add>, %512, %cst_145 [0] : vector<4x128xf32> to vector<128xf32>
    %514 = vector.shape_cast %513 : vector<128xf32> to vector<1x128xf32>
    %515 = vector.extract_strided_slice %41 {offsets = [0, 1], sizes = [4, 1], strides = [1, 1]} : vector<4x2xf32> to vector<4x1xf32>
    %516 = vector.broadcast %515 : vector<4x1xf32> to vector<4x128xf32>
    %517 = arith.mulf %516, %509 : vector<4x128xf32>
    %cst_146 = arith.constant dense<0.000000e+00> : vector<128xf32>
    %518 = vector.multi_reduction <add>, %517, %cst_146 [0] : vector<4x128xf32> to vector<128xf32>
    %519 = vector.shape_cast %518 : vector<128xf32> to vector<1x128xf32>
    %520 = vector.broadcast %483 : vector<1x1xf32> to vector<1x128xf32>
    %521 = arith.mulf %520, %514 : vector<1x128xf32>
    %522 = vector.broadcast %484 : vector<1x1xf32> to vector<1x128xf32>
    %523 = arith.mulf %522, %519 : vector<1x128xf32>
    %524 = arith.subf %521, %523 : vector<1x128xf32>
    %cst_147 = arith.constant 0.000000e+00 : f32
    %525 = vector.broadcast %cst_147 : f32 to vector<1x128xf32>
    %526 = arith.subf %525, %524 : vector<1x128xf32>
    %527 = vector.broadcast %484 : vector<1x1xf32> to vector<1x128xf32>
    %528 = arith.mulf %527, %514 : vector<1x128xf32>
    %529 = vector.broadcast %483 : vector<1x1xf32> to vector<1x128xf32>
    %530 = arith.mulf %529, %519 : vector<1x128xf32>
    %531 = arith.addf %528, %530 : vector<1x128xf32>
    %cst_148 = arith.constant 0.000000e+00 : f32
    %532 = vector.broadcast %cst_148 : f32 to vector<1x128xf32>
    %533 = arith.subf %532, %531 : vector<1x128xf32>
    %534 = vector.extract_strided_slice %41 {offsets = [0, 0], sizes = [4, 1], strides = [1, 1]} : vector<4x2xf32> to vector<4x1xf32>
    %535 = vector.broadcast %534 : vector<4x1xf32> to vector<4x128xf32>
    %536 = vector.broadcast %481 : vector<1x128xf32> to vector<4x128xf32>
    %537 = arith.mulf %535, %536 : vector<4x128xf32>
    %538 = vector.extract_strided_slice %41 {offsets = [0, 1], sizes = [4, 1], strides = [1, 1]} : vector<4x2xf32> to vector<4x1xf32>
    %539 = vector.broadcast %538 : vector<4x1xf32> to vector<4x128xf32>
    %540 = vector.broadcast %482 : vector<1x128xf32> to vector<4x128xf32>
    %541 = arith.mulf %539, %540 : vector<4x128xf32>
    %542 = arith.addf %537, %541 : vector<4x128xf32>
    %543 = vector.broadcast %42 : vector<4x1xf32> to vector<4x128xf32>
    %544 = arith.subf %542, %543 : vector<4x128xf32>
    %545 = arith.mulf %509, %544 : vector<4x128xf32>
    %cst_149 = arith.constant dense<0.000000e+00> : vector<128xf32>
    %546 = vector.multi_reduction <add>, %545, %cst_149 [0] : vector<4x128xf32> to vector<128xf32>
    %547 = vector.shape_cast %546 : vector<128xf32> to vector<1x128xf32>
    %c0_150 = arith.constant 0 : index
    %c768 = arith.constant 768 : index
    %548 = vector.load %arg11[%c0_150, %c768] : memref<9x1152xf32, #tpu.memory_space<vmem>>, vector<1x128xf32>
    tpu.vector_store %arg11[%c0_150, %c768], %481 {strides = array<i32>} : memref<9x1152xf32, #tpu.memory_space<vmem>>, vector<1x128xf32>,
    %c1_151 = arith.constant 1 : index
    %c768_152 = arith.constant 768 : index
    %549 = vector.load %arg11[%c1_151, %c768_152] : memref<9x1152xf32, #tpu.memory_space<vmem>>, vector<1x128xf32>
    tpu.vector_store %arg11[%c1_151, %c768_152], %482 {strides = array<i32>} : memref<9x1152xf32, #tpu.memory_space<vmem>>, vector<1x128xf32>,
    %c2_153 = arith.constant 2 : index
    %c768_154 = arith.constant 768 : index
    %550 = vector.load %arg11[%c2_153, %c768_154] : memref<9x1152xf32, #tpu.memory_space<vmem>>, vector<4x128xf32>
    tpu.vector_store %arg11[%c2_153, %c768_154], %509 {strides = array<i32>} : memref<9x1152xf32, #tpu.memory_space<vmem>>, vector<4x128xf32>,
    %c6_155 = arith.constant 6 : index
    %c768_156 = arith.constant 768 : index
    %551 = vector.load %arg11[%c6_155, %c768_156] : memref<9x1152xf32, #tpu.memory_space<vmem>>, vector<1x128xf32>
    tpu.vector_store %arg11[%c6_155, %c768_156], %526 {strides = array<i32>} : memref<9x1152xf32, #tpu.memory_space<vmem>>, vector<1x128xf32>,
    %c7_157 = arith.constant 7 : index
    %c768_158 = arith.constant 768 : index
    %552 = vector.load %arg11[%c7_157, %c768_158] : memref<9x1152xf32, #tpu.memory_space<vmem>>, vector<1x128xf32>
    tpu.vector_store %arg11[%c7_157, %c768_158], %533 {strides = array<i32>} : memref<9x1152xf32, #tpu.memory_space<vmem>>, vector<1x128xf32>,
    %c8_159 = arith.constant 8 : index
    %c768_160 = arith.constant 768 : index
    %553 = vector.load %arg11[%c8_159, %c768_160] : memref<9x1152xf32, #tpu.memory_space<vmem>>, vector<1x128xf32>
    tpu.vector_store %arg11[%c8_159, %c768_160], %547 {strides = array<i32>} : memref<9x1152xf32, #tpu.memory_space<vmem>>, vector<1x128xf32>,
    %554 = vector.extract_strided_slice %29 {offsets = [7, 0], sizes = [1, 128], strides = [1, 1]} : vector<9x128xf32> to vector<1x128xf32>
    %555 = vector.extract_strided_slice %34 {offsets = [7, 0], sizes = [1, 128], strides = [1, 1]} : vector<9x128xf32> to vector<1x128xf32>
    %556 = vector.extract_strided_slice %5 {offsets = [7, 0], sizes = [1, 1], strides = [1, 1]} : vector<9x1xf32> to vector<1x1xf32>
    %557 = vector.extract_strided_slice %6 {offsets = [7, 0], sizes = [1, 1], strides = [1, 1]} : vector<9x1xf32> to vector<1x1xf32>
    %558 = vector.extract_strided_slice %35 {offsets = [0, 0], sizes = [32, 1], strides = [1, 1]} : vector<32x2xf32> to vector<32x1xf32>
    %559 = vector.broadcast %558 : vector<32x1xf32> to vector<32x128xf32>
    %560 = vector.broadcast %554 : vector<1x128xf32> to vector<32x128xf32>
    %561 = arith.mulf %559, %560 : vector<32x128xf32>
    %562 = vector.extract_strided_slice %35 {offsets = [0, 1], sizes = [32, 1], strides = [1, 1]} : vector<32x2xf32> to vector<32x1xf32>
    %563 = vector.broadcast %562 : vector<32x1xf32> to vector<32x128xf32>
    %564 = vector.broadcast %555 : vector<1x128xf32> to vector<32x128xf32>
    %565 = arith.mulf %563, %564 : vector<32x128xf32>
    %566 = arith.addf %561, %565 : vector<32x128xf32>
    %567 = vector.broadcast %36 : vector<32x1xf32> to vector<32x128xf32>
    %568 = arith.addf %566, %567 : vector<32x128xf32>
    %cst_161 = arith.constant 0.000000e+00 : f32
    %569 = vector.broadcast %cst_161 : f32 to vector<32x128xf32>
    %570 = arith.maximumf %568, %569 : vector<32x128xf32>
    %571 = arith.truncf %570 : vector<32x128xf32> to vector<32x128xbf16>
    %cst_162 = arith.constant dense<0.000000e+00> : vector<32x128xf32>
    %572 = tpu.matmul %37, %571, %cst_162 {dimension_numbers = #tpu.dot_dimension_numbers<[1], [0], [0], [1], [0, 0, 1, 1], [], []>} : vector<32x32xbf16>, vector<32x128xbf16>, vector<32x128xf32> -> vector<32x128xf32>
    %573 = vector.broadcast %38 : vector<32x1xf32> to vector<32x128xf32>
    %574 = arith.addf %572, %573 : vector<32x128xf32>
    %cst_163 = arith.constant 0.000000e+00 : f32
    %575 = vector.broadcast %cst_163 : f32 to vector<32x128xf32>
    %576 = arith.maximumf %574, %575 : vector<32x128xf32>
    %577 = arith.truncf %576 : vector<32x128xf32> to vector<32x128xbf16>
    %cst_164 = arith.constant dense<0.000000e+00> : vector<4x128xf32>
    %578 = tpu.matmul %39, %577, %cst_164 {dimension_numbers = #tpu.dot_dimension_numbers<[1], [0], [0], [1], [0, 0, 1, 1], [], []>} : vector<4x32xbf16>, vector<32x128xbf16>, vector<4x128xf32> -> vector<4x128xf32>
    %579 = vector.broadcast %40 : vector<4x1xf32> to vector<4x128xf32>
    %580 = arith.addf %578, %579 : vector<4x128xf32>
    %cst_165 = arith.constant 0.000000e+00 : f32
    %581 = vector.broadcast %cst_165 : f32 to vector<4x128xf32>
    %582 = arith.maximumf %580, %581 : vector<4x128xf32>
    %583 = vector.extract_strided_slice %41 {offsets = [0, 0], sizes = [4, 1], strides = [1, 1]} : vector<4x2xf32> to vector<4x1xf32>
    %584 = vector.broadcast %583 : vector<4x1xf32> to vector<4x128xf32>
    %585 = arith.mulf %584, %582 : vector<4x128xf32>
    %cst_166 = arith.constant dense<0.000000e+00> : vector<128xf32>
    %586 = vector.multi_reduction <add>, %585, %cst_166 [0] : vector<4x128xf32> to vector<128xf32>
    %587 = vector.shape_cast %586 : vector<128xf32> to vector<1x128xf32>
    %588 = vector.extract_strided_slice %41 {offsets = [0, 1], sizes = [4, 1], strides = [1, 1]} : vector<4x2xf32> to vector<4x1xf32>
    %589 = vector.broadcast %588 : vector<4x1xf32> to vector<4x128xf32>
    %590 = arith.mulf %589, %582 : vector<4x128xf32>
    %cst_167 = arith.constant dense<0.000000e+00> : vector<128xf32>
    %591 = vector.multi_reduction <add>, %590, %cst_167 [0] : vector<4x128xf32> to vector<128xf32>
    %592 = vector.shape_cast %591 : vector<128xf32> to vector<1x128xf32>
    %593 = vector.broadcast %556 : vector<1x1xf32> to vector<1x128xf32>
    %594 = arith.mulf %593, %587 : vector<1x128xf32>
    %595 = vector.broadcast %557 : vector<1x1xf32> to vector<1x128xf32>
    %596 = arith.mulf %595, %592 : vector<1x128xf32>
    %597 = arith.subf %594, %596 : vector<1x128xf32>
    %cst_168 = arith.constant 0.000000e+00 : f32
    %598 = vector.broadcast %cst_168 : f32 to vector<1x128xf32>
    %599 = arith.subf %598, %597 : vector<1x128xf32>
    %600 = vector.broadcast %557 : vector<1x1xf32> to vector<1x128xf32>
    %601 = arith.mulf %600, %587 : vector<1x128xf32>
    %602 = vector.broadcast %556 : vector<1x1xf32> to vector<1x128xf32>
    %603 = arith.mulf %602, %592 : vector<1x128xf32>
    %604 = arith.addf %601, %603 : vector<1x128xf32>
    %cst_169 = arith.constant 0.000000e+00 : f32
    %605 = vector.broadcast %cst_169 : f32 to vector<1x128xf32>
    %606 = arith.subf %605, %604 : vector<1x128xf32>
    %607 = vector.extract_strided_slice %41 {offsets = [0, 0], sizes = [4, 1], strides = [1, 1]} : vector<4x2xf32> to vector<4x1xf32>
    %608 = vector.broadcast %607 : vector<4x1xf32> to vector<4x128xf32>
    %609 = vector.broadcast %554 : vector<1x128xf32> to vector<4x128xf32>
    %610 = arith.mulf %608, %609 : vector<4x128xf32>
    %611 = vector.extract_strided_slice %41 {offsets = [0, 1], sizes = [4, 1], strides = [1, 1]} : vector<4x2xf32> to vector<4x1xf32>
    %612 = vector.broadcast %611 : vector<4x1xf32> to vector<4x128xf32>
    %613 = vector.broadcast %555 : vector<1x128xf32> to vector<4x128xf32>
    %614 = arith.mulf %612, %613 : vector<4x128xf32>
    %615 = arith.addf %610, %614 : vector<4x128xf32>
    %616 = vector.broadcast %42 : vector<4x1xf32> to vector<4x128xf32>
    %617 = arith.subf %615, %616 : vector<4x128xf32>
    %618 = arith.mulf %582, %617 : vector<4x128xf32>
    %cst_170 = arith.constant dense<0.000000e+00> : vector<128xf32>
    %619 = vector.multi_reduction <add>, %618, %cst_170 [0] : vector<4x128xf32> to vector<128xf32>
    %620 = vector.shape_cast %619 : vector<128xf32> to vector<1x128xf32>
    %c0_171 = arith.constant 0 : index
    %c896 = arith.constant 896 : index
    %621 = vector.load %arg11[%c0_171, %c896] : memref<9x1152xf32, #tpu.memory_space<vmem>>, vector<1x128xf32>
    tpu.vector_store %arg11[%c0_171, %c896], %554 {strides = array<i32>} : memref<9x1152xf32, #tpu.memory_space<vmem>>, vector<1x128xf32>,
    %c1_172 = arith.constant 1 : index
    %c896_173 = arith.constant 896 : index
    %622 = vector.load %arg11[%c1_172, %c896_173] : memref<9x1152xf32, #tpu.memory_space<vmem>>, vector<1x128xf32>
    tpu.vector_store %arg11[%c1_172, %c896_173], %555 {strides = array<i32>} : memref<9x1152xf32, #tpu.memory_space<vmem>>, vector<1x128xf32>,
    %c2_174 = arith.constant 2 : index
    %c896_175 = arith.constant 896 : index
    %623 = vector.load %arg11[%c2_174, %c896_175] : memref<9x1152xf32, #tpu.memory_space<vmem>>, vector<4x128xf32>
    tpu.vector_store %arg11[%c2_174, %c896_175], %582 {strides = array<i32>} : memref<9x1152xf32, #tpu.memory_space<vmem>>, vector<4x128xf32>,
    %c6_176 = arith.constant 6 : index
    %c896_177 = arith.constant 896 : index
    %624 = vector.load %arg11[%c6_176, %c896_177] : memref<9x1152xf32, #tpu.memory_space<vmem>>, vector<1x128xf32>
    tpu.vector_store %arg11[%c6_176, %c896_177], %599 {strides = array<i32>} : memref<9x1152xf32, #tpu.memory_space<vmem>>, vector<1x128xf32>,
    %c7_178 = arith.constant 7 : index
    %c896_179 = arith.constant 896 : index
    %625 = vector.load %arg11[%c7_178, %c896_179] : memref<9x1152xf32, #tpu.memory_space<vmem>>, vector<1x128xf32>
    tpu.vector_store %arg11[%c7_178, %c896_179], %606 {strides = array<i32>} : memref<9x1152xf32, #tpu.memory_space<vmem>>, vector<1x128xf32>,
    %c8_180 = arith.constant 8 : index
    %c896_181 = arith.constant 896 : index
    %626 = vector.load %arg11[%c8_180, %c896_181] : memref<9x1152xf32, #tpu.memory_space<vmem>>, vector<1x128xf32>
    tpu.vector_store %arg11[%c8_180, %c896_181], %620 {strides = array<i32>} : memref<9x1152xf32, #tpu.memory_space<vmem>>, vector<1x128xf32>,
    %627 = vector.extract_strided_slice %29 {offsets = [8, 0], sizes = [1, 128], strides = [1, 1]} : vector<9x128xf32> to vector<1x128xf32>
    %628 = vector.extract_strided_slice %34 {offsets = [8, 0], sizes = [1, 128], strides = [1, 1]} : vector<9x128xf32> to vector<1x128xf32>
    %629 = vector.extract_strided_slice %5 {offsets = [8, 0], sizes = [1, 1], strides = [1, 1]} : vector<9x1xf32> to vector<1x1xf32>
    %630 = vector.extract_strided_slice %6 {offsets = [8, 0], sizes = [1, 1], strides = [1, 1]} : vector<9x1xf32> to vector<1x1xf32>
    %631 = vector.extract_strided_slice %35 {offsets = [0, 0], sizes = [32, 1], strides = [1, 1]} : vector<32x2xf32> to vector<32x1xf32>
    %632 = vector.broadcast %631 : vector<32x1xf32> to vector<32x128xf32>
    %633 = vector.broadcast %627 : vector<1x128xf32> to vector<32x128xf32>
    %634 = arith.mulf %632, %633 : vector<32x128xf32>
    %635 = vector.extract_strided_slice %35 {offsets = [0, 1], sizes = [32, 1], strides = [1, 1]} : vector<32x2xf32> to vector<32x1xf32>
    %636 = vector.broadcast %635 : vector<32x1xf32> to vector<32x128xf32>
    %637 = vector.broadcast %628 : vector<1x128xf32> to vector<32x128xf32>
    %638 = arith.mulf %636, %637 : vector<32x128xf32>
    %639 = arith.addf %634, %638 : vector<32x128xf32>
    %640 = vector.broadcast %36 : vector<32x1xf32> to vector<32x128xf32>
    %641 = arith.addf %639, %640 : vector<32x128xf32>
    %cst_182 = arith.constant 0.000000e+00 : f32
    %642 = vector.broadcast %cst_182 : f32 to vector<32x128xf32>
    %643 = arith.maximumf %641, %642 : vector<32x128xf32>
    %644 = arith.truncf %643 : vector<32x128xf32> to vector<32x128xbf16>
    %cst_183 = arith.constant dense<0.000000e+00> : vector<32x128xf32>
    %645 = tpu.matmul %37, %644, %cst_183 {dimension_numbers = #tpu.dot_dimension_numbers<[1], [0], [0], [1], [0, 0, 1, 1], [], []>} : vector<32x32xbf16>, vector<32x128xbf16>, vector<32x128xf32> -> vector<32x128xf32>
    %646 = vector.broadcast %38 : vector<32x1xf32> to vector<32x128xf32>
    %647 = arith.addf %645, %646 : vector<32x128xf32>
    %cst_184 = arith.constant 0.000000e+00 : f32
    %648 = vector.broadcast %cst_184 : f32 to vector<32x128xf32>
    %649 = arith.maximumf %647, %648 : vector<32x128xf32>
    %650 = arith.truncf %649 : vector<32x128xf32> to vector<32x128xbf16>
    %cst_185 = arith.constant dense<0.000000e+00> : vector<4x128xf32>
    %651 = tpu.matmul %39, %650, %cst_185 {dimension_numbers = #tpu.dot_dimension_numbers<[1], [0], [0], [1], [0, 0, 1, 1], [], []>} : vector<4x32xbf16>, vector<32x128xbf16>, vector<4x128xf32> -> vector<4x128xf32>
    %652 = vector.broadcast %40 : vector<4x1xf32> to vector<4x128xf32>
    %653 = arith.addf %651, %652 : vector<4x128xf32>
    %cst_186 = arith.constant 0.000000e+00 : f32
    %654 = vector.broadcast %cst_186 : f32 to vector<4x128xf32>
    %655 = arith.maximumf %653, %654 : vector<4x128xf32>
    %656 = vector.extract_strided_slice %41 {offsets = [0, 0], sizes = [4, 1], strides = [1, 1]} : vector<4x2xf32> to vector<4x1xf32>
    %657 = vector.broadcast %656 : vector<4x1xf32> to vector<4x128xf32>
    %658 = arith.mulf %657, %655 : vector<4x128xf32>
    %cst_187 = arith.constant dense<0.000000e+00> : vector<128xf32>
    %659 = vector.multi_reduction <add>, %658, %cst_187 [0] : vector<4x128xf32> to vector<128xf32>
    %660 = vector.shape_cast %659 : vector<128xf32> to vector<1x128xf32>
    %661 = vector.extract_strided_slice %41 {offsets = [0, 1], sizes = [4, 1], strides = [1, 1]} : vector<4x2xf32> to vector<4x1xf32>
    %662 = vector.broadcast %661 : vector<4x1xf32> to vector<4x128xf32>
    %663 = arith.mulf %662, %655 : vector<4x128xf32>
    %cst_188 = arith.constant dense<0.000000e+00> : vector<128xf32>
    %664 = vector.multi_reduction <add>, %663, %cst_188 [0] : vector<4x128xf32> to vector<128xf32>
    %665 = vector.shape_cast %664 : vector<128xf32> to vector<1x128xf32>
    %666 = vector.broadcast %629 : vector<1x1xf32> to vector<1x128xf32>
    %667 = arith.mulf %666, %660 : vector<1x128xf32>
    %668 = vector.broadcast %630 : vector<1x1xf32> to vector<1x128xf32>
    %669 = arith.mulf %668, %665 : vector<1x128xf32>
    %670 = arith.subf %667, %669 : vector<1x128xf32>
    %cst_189 = arith.constant 0.000000e+00 : f32
    %671 = vector.broadcast %cst_189 : f32 to vector<1x128xf32>
    %672 = arith.subf %671, %670 : vector<1x128xf32>
    %673 = vector.broadcast %630 : vector<1x1xf32> to vector<1x128xf32>
    %674 = arith.mulf %673, %660 : vector<1x128xf32>
    %675 = vector.broadcast %629 : vector<1x1xf32> to vector<1x128xf32>
    %676 = arith.mulf %675, %665 : vector<1x128xf32>
    %677 = arith.addf %674, %676 : vector<1x128xf32>
    %cst_190 = arith.constant 0.000000e+00 : f32
    %678 = vector.broadcast %cst_190 : f32 to vector<1x128xf32>
    %679 = arith.subf %678, %677 : vector<1x128xf32>
    %680 = vector.extract_strided_slice %41 {offsets = [0, 0], sizes = [4, 1], strides = [1, 1]} : vector<4x2xf32> to vector<4x1xf32>
    %681 = vector.broadcast %680 : vector<4x1xf32> to vector<4x128xf32>
    %682 = vector.broadcast %627 : vector<1x128xf32> to vector<4x128xf32>
    %683 = arith.mulf %681, %682 : vector<4x128xf32>
    %684 = vector.extract_strided_slice %41 {offsets = [0, 1], sizes = [4, 1], strides = [1, 1]} : vector<4x2xf32> to vector<4x1xf32>
    %685 = vector.broadcast %684 : vector<4x1xf32> to vector<4x128xf32>
    %686 = vector.broadcast %628 : vector<1x128xf32> to vector<4x128xf32>
    %687 = arith.mulf %685, %686 : vector<4x128xf32>
    %688 = arith.addf %683, %687 : vector<4x128xf32>
    %689 = vector.broadcast %42 : vector<4x1xf32> to vector<4x128xf32>
    %690 = arith.subf %688, %689 : vector<4x128xf32>
    %691 = arith.mulf %655, %690 : vector<4x128xf32>
    %cst_191 = arith.constant dense<0.000000e+00> : vector<128xf32>
    %692 = vector.multi_reduction <add>, %691, %cst_191 [0] : vector<4x128xf32> to vector<128xf32>
    %693 = vector.shape_cast %692 : vector<128xf32> to vector<1x128xf32>
    %c0_192 = arith.constant 0 : index
    %c1024 = arith.constant 1024 : index
    %694 = vector.load %arg11[%c0_192, %c1024] : memref<9x1152xf32, #tpu.memory_space<vmem>>, vector<1x128xf32>
    tpu.vector_store %arg11[%c0_192, %c1024], %627 {strides = array<i32>} : memref<9x1152xf32, #tpu.memory_space<vmem>>, vector<1x128xf32>,
    %c1_193 = arith.constant 1 : index
    %c1024_194 = arith.constant 1024 : index
    %695 = vector.load %arg11[%c1_193, %c1024_194] : memref<9x1152xf32, #tpu.memory_space<vmem>>, vector<1x128xf32>
    tpu.vector_store %arg11[%c1_193, %c1024_194], %628 {strides = array<i32>} : memref<9x1152xf32, #tpu.memory_space<vmem>>, vector<1x128xf32>,
    %c2_195 = arith.constant 2 : index
    %c1024_196 = arith.constant 1024 : index
    %696 = vector.load %arg11[%c2_195, %c1024_196] : memref<9x1152xf32, #tpu.memory_space<vmem>>, vector<4x128xf32>
    tpu.vector_store %arg11[%c2_195, %c1024_196], %655 {strides = array<i32>} : memref<9x1152xf32, #tpu.memory_space<vmem>>, vector<4x128xf32>,
    %c6_197 = arith.constant 6 : index
    %c1024_198 = arith.constant 1024 : index
    %697 = vector.load %arg11[%c6_197, %c1024_198] : memref<9x1152xf32, #tpu.memory_space<vmem>>, vector<1x128xf32>
    tpu.vector_store %arg11[%c6_197, %c1024_198], %672 {strides = array<i32>} : memref<9x1152xf32, #tpu.memory_space<vmem>>, vector<1x128xf32>,
    %c7_199 = arith.constant 7 : index
    %c1024_200 = arith.constant 1024 : index
    %698 = vector.load %arg11[%c7_199, %c1024_200] : memref<9x1152xf32, #tpu.memory_space<vmem>>, vector<1x128xf32>
    tpu.vector_store %arg11[%c7_199, %c1024_200], %679 {strides = array<i32>} : memref<9x1152xf32, #tpu.memory_space<vmem>>, vector<1x128xf32>,
    %c8_201 = arith.constant 8 : index
    %c1024_202 = arith.constant 1024 : index
    %699 = vector.load %arg11[%c8_201, %c1024_202] : memref<9x1152xf32, #tpu.memory_space<vmem>>, vector<1x128xf32>
    tpu.vector_store %arg11[%c8_201, %c1024_202], %693 {strides = array<i32>} : memref<9x1152xf32, #tpu.memory_space<vmem>>, vector<1x128xf32>,
    return
  }
  func.func @transform_0(%arg0: i32) -> (i32, i32) {
    %c0_i32 = arith.constant 0 : i32
    %c0_i32_0 = arith.constant 0 : i32
    return %arg0, %c0_i32 : i32, i32
  }
  func.func @transform_1(%arg0: i32) -> (i32, i32) {
    %c0_i32 = arith.constant 0 : i32
    %c0_i32_0 = arith.constant 0 : i32
    %c0_i32_1 = arith.constant 0 : i32
    return %c0_i32, %c0_i32_0 : i32, i32
  }
  func.func @transform_2(%arg0: i32) -> (i32, i32) {
    %c0_i32 = arith.constant 0 : i32
    %c0_i32_0 = arith.constant 0 : i32
    %c0_i32_1 = arith.constant 0 : i32
    return %c0_i32, %c0_i32_0 : i32, i32
  }
  func.func @transform_3(%arg0: i32) -> (i32, i32) {
    %c0_i32 = arith.constant 0 : i32
    %c0_i32_0 = arith.constant 0 : i32
    %c0_i32_1 = arith.constant 0 : i32
    return %c0_i32, %c0_i32_0 : i32, i32
  }
  func.func @transform_4(%arg0: i32) -> (i32, i32) {
    %c0_i32 = arith.constant 0 : i32
    %c0_i32_0 = arith.constant 0 : i32
    %c0_i32_1 = arith.constant 0 : i32
    return %c0_i32, %c0_i32_0 : i32, i32
  }
  func.func @transform_5(%arg0: i32) -> (i32, i32) {
    %c0_i32 = arith.constant 0 : i32
    %c0_i32_0 = arith.constant 0 : i32
    %c0_i32_1 = arith.constant 0 : i32
    return %c0_i32, %c0_i32_0 : i32, i32
  }
  func.func @transform_6(%arg0: i32) -> (i32, i32) {
    %c0_i32 = arith.constant 0 : i32
    %c0_i32_0 = arith.constant 0 : i32
    %c0_i32_1 = arith.constant 0 : i32
    return %c0_i32, %c0_i32_0 : i32, i32
  }
  func.func @transform_7(%arg0: i32) -> (i32, i32) {
    %c0_i32 = arith.constant 0 : i32
    %c0_i32_0 = arith.constant 0 : i32
    %c0_i32_1 = arith.constant 0 : i32
    return %c0_i32, %c0_i32_0 : i32, i32
  }
  func.func @transform_8(%arg0: i32) -> (i32, i32) {
    %c0_i32 = arith.constant 0 : i32
    %c0_i32_0 = arith.constant 0 : i32
    %c0_i32_1 = arith.constant 0 : i32
    return %c0_i32, %c0_i32_0 : i32, i32
  }
  func.func @transform_9(%arg0: i32) -> (i32, i32) {
    %c0_i32 = arith.constant 0 : i32
    %c0_i32_0 = arith.constant 0 : i32
    %c0_i32_1 = arith.constant 0 : i32
    return %c0_i32, %c0_i32_0 : i32, i32
  }
  func.func @transform_10(%arg0: i32) -> (i32, i32) {
    %c0_i32 = arith.constant 0 : i32
    %c0_i32_0 = arith.constant 0 : i32
    return %c0_i32, %arg0 : i32, i32
  }
}

</mosaic_0001>

<bundles_post_ra>
// kernel: _pan_forward_jit.2
= control target key start
LH: loop header
LB: loop body
LE: loop exit
PB: predicated region body
PF: predicated region fallthrough
CT: control target
= control target key end

     0   :  { %v2135_v0 = vmov 2   ;;  %v2136_v1 = vmov 0   ;;  %v2137_v3 = vmov 3   ;;  %v2138_v4 = vmov 1   ;;  %s3173_s0 = inlined_call_operand.vmem [shape: f32[9,8], index: 0, kind: input, shape index: {}]   ;;  %s3174_s2 = inlined_call_operand.vmem [shape: f32[32,2], index: 2, kind: input, shape index: {}]   ;;  %s3175_s3 = inlined_call_operand.vmem [shape: f32[32,1], index: 3, kind: input, shape index: {}]   ;;  %s3176_s5 = inlined_call_operand.vmem [shape: f32[32,1], index: 5, kind: input, shape index: {}]   ;;  %s3177_s8 = inlined_call_operand.vmem [shape: f32[4,2], index: 8, kind: input, shape index: {}]   ;;  %s3178_s9 = inlined_call_operand.vmem [shape: f32[4,1], index: 9, kind: input, shape index: {}]   ;;  %s3179_s4 = inlined_call_operand.vmem [shape: bf16[32,32], index: 4, kind: input, shape index: {}]   ;;  %s3180_s7 = inlined_call_operand.vmem [shape: f32[4,1], index: 7, kind: input, shape index: {}]   ;;  %s3181_s1 = inlined_call_operand.vmem [shape: f32[4,128], index: 1, kind: input, shape index: {}]   ;;  %s3182_s10 = inlined_call_operand.vmem [shape: f32[9,1152], index: 10, kind: output, shape index: {}]   ;;  %s3183_s6 = inlined_call_operand.vmem [shape: bf16[4,32], index: 6, kind: input, shape index: {}]  }
   0x1   :  { %2117 = vset.pattern.permute.xlu1 %v2135_v0  ;;  %2115 = vset.pattern.permute.xlu0 %v2136_v1  ;;  %v37_v2 = vld [vmem:[%s3173_s0] sm:$0xff]  ;;  %v122_v5 = vld [vmem:[%s3174_s2 + $0x8] sm:$0xff]  ;;  %v2139_v6 = vmov 4   ;;  %v123_v7 = vld [vmem:[%s3174_s2 + $0x10] sm:$0xff]  ;;  %vm257_vm0 = vcmask 261120   ;;  %v49_v23 = vlaneseq  ;;  %vm2141_vm1 = vmmov 0  }
   0x2   :  { %84 = vperm.xlu1 %2117, %v37_v2   ;;  %41 = vperm.xlu0 %2115, %v37_v2   ;;  %v121_v8 = vld [vmem:[%s3174_s2] sm:$0xff]  ;;  %v128_v10 = vld [vmem:[%s3175_s3 + $0x18] sm:$0xff]  ;;  %v38_v12 = vld [vmem:[%s3173_s0 + $0x8] sm:$0x1]  ;;  %vm374_vm2 = vcmask 1043456  }
   0x3   :  { %v125_v9 = vld [vmem:[%s3175_s3] sm:$0xff]  ;;  %v124_v11 = vld [vmem:[%s3174_s2 + $0x18] sm:$0xff]  ;;  %v126_v13 = vld [vmem:[%s3175_s3 + $0x8] sm:$0xff]  ;;  %v2267_v24 = vshrl.u32 %v49_v23, 7 }
   0x4   :  { %v135_v14 = vld [vmem:[%s3176_s5 + $0x10] sm:$0xff]  ;;  %v139_v16 = vld [vmem:[%s3177_s8] sm:$0xf]  ;;  %v134_v20 = vld [vmem:[%s3176_s5 + $0x8] sm:$0xff] }
   0x5   :  { %v127_v15 = vld [vmem:[%s3175_s3 + $0x10] sm:$0xff]  ;;  %v140_v17 = vld [vmem:[%s3178_s9] sm:$0xf]  ;;  %v136_v21 = vld [vmem:[%s3176_s5 + $0x18] sm:$0xff]  ;;  %v2270_v25 = vsub.s32 2, %v2267_v24  ;;  %v2273_v26 = vsub.s32 3, %v2267_v24 }
   0x6   :  { %2118 = vset.pattern.permute.xlu1 %v2137_v3  ;;  %2116 = vset.pattern.permute.xlu0 %v2138_v4  ;;  %v2249_v18 = vld [vmem:[%s3179_s4] sm:$0xff]   ;;  %v79_v28 = vsub.s32 1, %v2267_v24  ;;  %v2280_v29 = vsub.s32 0, %v2267_v24 }
   0x7   :  { %94 = vperm.xlu1 %2118, %v37_v2   ;;  %62 = vperm.xlu0 %2116, %v37_v2   ;;  %v133_v19 = vld [vmem:[%s3176_s5] sm:$0xff] }
   0x8   :  { %1968 = vmatprep.mubr.msk.bf16.mxu0 %vm257_vm0, %v2249_v18  ;;  %v138_v22 = vld [vmem:[%s3180_s7] sm:$0xf] }
   0x9   :  { %v36_v27 = vld [vmem:[%s3181_s1] sm:$0xf] }
   0xa   :  { %v2283_v30 = vrot.slane %v36_v27, %v2270_v25  ;;  %v2286_v31 = vrot.slane %v36_v27, %v2273_v26  ;;  %v2288_v32 = vrot.slane %v36_v27, %v79_v28  ;;  %v2291_v33 = vrot.slane %v36_v27, %v2280_v29 }
   0xb   :  { %2119 = vset.pattern.permute.xlu1 %v2139_v6  ;;  %174 = vperm.xlu0 %2116, %v122_v5   ;;  %v1156_v27 = vsub.s32 5, %v2267_v24 }
   0xc   :  { %104 = vperm.xlu1 %2119, %v37_v2  }
   0xf   :  { %178 = vperm.xlu0 %2116, %v123_v7  }
  0x10   :  { %2120 = vset.pattern.permute.xlu1 %v2136_v1 }
  0x11   :  { %148 = vperm.xlu1 %2120, %v122_v5  }
  0x13   :  { %2123 = vset.pattern.permute.xlu0 %v2136_v1 }
  0x14   :  { %143 = vperm.xlu0 %2123, %v121_v8  }
  0x15   :  { %2121 = vset.pattern.permute.xlu1 %v2138_v4 }
  0x16   :  { %170 = vperm.xlu1 %2121, %v121_v8  }
  0x18   :  { %199 = vperm.xlu0 %2123, %v125_v9  }
  0x1a   :  { %2122 = vset.pattern.permute.xlu1 %v2136_v1 }
  0x1b   :  { %153 = vperm.xlu1 %2122, %v123_v7  }
  0x1c   :  { %214 = vperm.xlu0 %2123, %v128_v10  }
  0x1f   :  { %158 = vperm.xlu1 %2122, %v124_v11  }
  0x20   :  { %2126 = vset.pattern.permute.xlu0 %v2138_v4 }
  0x21   :  { %66 = vperm.xlu0 %2126, %v38_v12  }
  0x23   :  { %2124 = vset.pattern.permute.xlu1 %v2138_v4 }
  0x24   :  { %182 = vperm.xlu1 %2124, %v124_v11  }
  0x25   :  { %2129 = vset.pattern.permute.xlu0 %v2139_v6 }
  0x26   :  { %108 = vperm.xlu0 %2129, %v38_v12  }
  0x28   :  { %2125 = vset.pattern.permute.xlu1 %v2136_v1 }
  0x29   :  { %204 = vperm.xlu1 %2125, %v126_v13  }
  0x2a   :  { %2131 = vset.pattern.permute.xlu0 %v2136_v1 }
  0x2b   :  { %239 = vperm.xlu0 %2131, %v135_v14  }
  0x2d   :  { %209 = vperm.xlu1 %2125, %v127_v15  }
  0x2f   :  { %370 = vperm.xlu0 %2131, %v139_v16  }
  0x31   :  { %46 = vperm.xlu1 %2125, %v38_v12  }
  0x33   :  { %407 = vperm.xlu0 %2131, %v140_v17  }
  0x35   :  { %2127 = vset.pattern.permute.xlu1 %v2135_v0 }
  0x36   :  { %88 = vperm.xlu1 %2127, %v38_v12  }
  0x3a   :  { %2128 = vset.pattern.permute.xlu1 %v2137_v3 }
  0x3b   :  { %98 = vperm.xlu1 %2128, %v38_v12  }
  0x3f   :  { %2130 = vset.pattern.permute.xlu1 %v2136_v1 }
  0x40   :  { %229 = vperm.xlu1 %2130, %v133_v19  }
  0x44   :  { %234 = vperm.xlu1 %2130, %v134_v20  }
  0x48   :  { %244 = vperm.xlu1 %2130, %v136_v21  }
  0x4c   :  { %321 = vperm.xlu1 %2130, %v138_v22  }
  0x50   :  { %2132 = vset.pattern.permute.xlu1 %v2138_v4 }
  0x51   :  { %383 = vperm.xlu1 %2132, %v139_v16   ;;  %v975_v16 = vsub.s32 4, %v2267_v24 }
  0x81   :  { %v85_v34 = vpop.permute.xlu1 %84  ;;  %v42_v35 = vpop.permute.xlu0 %41 }
  0x82   :  { %v53_v36 = vmul.f32 %v2283_v30, %v42_v35  ;;  %v75_v37 = vmul.f32 %v2286_v31, %v42_v35 }
  0x84   :  { %v81_v38 = vadd.f32 %v2288_v32, %v75_v37  ;;  %v59_v39 = vadd.f32 %v2291_v33, %v53_v36 }
  0x86   :  { %v2297_v40 = vpop.permute.xlu1 %94  ;;  %v63_v41 = vpop.permute.xlu0 %62  ;;  %v91_v42 = vsub.f32 %v81_v38, %v85_v34 }
  0x87   :  { %3194 = vst [vmem:[#allocation2_spill] sm:$0xff] %v2297_v40  ;;  %v69_v43 = vsub.f32 %v59_v39, %v63_v41 }
  0x88   :  { %v115_v46 = vmul.f32 %v2297_v40, %v91_v42 }
  0x89   :  { %v101_v47 = vmul.f32 %v2297_v40, %v69_v43 }
  0x8a   :  { %v2299_v44 = vpop.permute.xlu0 %174 }
  0x8b   :  { %v2301_v45 = vpop.permute.xlu1 %104 }
  0x8c   :  { %3195 = vst [vmem:[#allocation3_spill] sm:$0xff] %v2301_v45  ;;  %v111_v48 = vmul.f32 %v2301_v45, %v91_v42  ;;  %v117_v49 = vmul.f32 %v2301_v45, %v69_v43 }
  0x8e   :  { %v2307_v50 = vadd.f32 %v111_v48, %v101_v47  ;;  %v2309_v51 = vsub.f32 %v115_v46, %v117_v49  ;;  %v2311_v52 = vpop.permute.xlu0 %178 }
  0x90   :  { %419 = vst [vmem:[%s3182_s10] sm:$0x1] %v2307_v50  ;;  %420 = vst [vmem:[%s3182_s10 + $0x1] sm:$0x1] %v2309_v51  ;;  %v591_v53 = vrot.slane %v2307_v50, 1  ;;  %v595_v54 = vrot.slane %v2309_v51, 1  ;;  %v773_v55 = vrot.slane %v2307_v50, 2  ;;  %v2325_v57 = vpop.permute.xlu1 %148  ;;  %v2377_v5 = vrot.slane %v2307_v50, %v2280_v29 }
  0x91   :  { %v776_v56 = vrot.slane %v2309_v51, 2  ;;  %v954_v58 = vrot.slane %v2307_v50, 3  ;;  %v957_v59 = vrot.slane %v2309_v51, 3  ;;  %v1135_v60 = vrot.slane %v2307_v50, 4 }
  0x92   :  { %v1138_v61 = vrot.slane %v2309_v51, 4  ;;  %593 = vst [vmem:[%s3182_s10 + $0x8] sm:$0x1] %v591_v53  ;;  %597 = vst [vmem:[%s3182_s10 + $0x9] sm:$0x1] %v595_v54  ;;  %v1316_v62 = vrot.slane %v2307_v50, 5  ;;  %v2381_v6 = vrot.slane %v2309_v51, %v2280_v29  ;;  %v2384_v7 = vrot.slane %v2307_v50, %v79_v28 }
  0x93   :  { %775 = vst [vmem:[%s3182_s10 + $0x10] sm:$0x1] %v773_v55  ;;  %778 = vst [vmem:[%s3182_s10 + $0x11] sm:$0x1] %v776_v56  ;;  %v1319_v63 = vrot.slane %v2309_v51, 5  ;;  %v1497_v0 = vrot.slane %v2307_v50, 6  ;;  %v2361_v4 = vpop.permute.xlu0 %143  ;;  %v2387_v8 = vrot.slane %v2309_v51, %v79_v28  ;;  %v2399_v10 = vrot.slane %v2307_v50, %v2270_v25 }
  0x94   :  { %v1500_v1 = vrot.slane %v2309_v51, 6  ;;  %956 = vst [vmem:[%s3182_s10 + $0x18] sm:$0x1] %v954_v58  ;;  %959 = vst [vmem:[%s3182_s10 + $0x19] sm:$0x1] %v957_v59  ;;  %v1678_v2 = vrot.slane %v2307_v50, 7  ;;  %v2403_v11 = vrot.slane %v2309_v51, %v2270_v25  ;;  %v165_v12 = vmul.f32 %v2377_v5, %v2361_v4 }
  0x95   :  { %1137 = vst [vmem:[%s3182_s10 + $0x20] sm:$0x1] %v1135_v60  ;;  %1140 = vst [vmem:[%s3182_s10 + $0x21] sm:$0x1] %v1138_v61  ;;  %v1681_v3 = vrot.slane %v2309_v51, 7  ;;  %v2395_v9 = vpop.permute.xlu1 %170  ;;  %v432_v14 = vmul.f32 %v2384_v7, %v2361_v4  ;;  %v615_v21 = vmul.f32 %v2399_v10, %v2361_v4  ;;  %v166_v23 = vmul.f32 %v2377_v5, %v2325_v57 }
  0x96   :  { %1318 = vst [vmem:[%s3182_s10 + $0x28] sm:$0x1] %v1316_v62  ;;  %1321 = vst [vmem:[%s3182_s10 + $0x29] sm:$0x1] %v1319_v63  ;;  %v189_v13 = vmul.f32 %v2381_v6, %v2395_v9  ;;  %v440_v15 = vmul.f32 %v2387_v8, %v2395_v9  ;;  %v623_v22 = vmul.f32 %v2403_v11, %v2395_v9  ;;  %v3184_v28 = vsub.s32 6, %v2267_v24 }
  0x97   :  { %1499 = vst [vmem:[%s3182_s10 + $0x30] sm:$0x1] %v1497_v0  ;;  %1502 = vst [vmem:[%s3182_s10 + $0x31] sm:$0x1] %v1500_v1  ;;  %v2414_v17 = vpop.permute.xlu0 %199  ;;  %v190_v25 = vmul.f32 %v2381_v6, %v2299_v44  ;;  %v433_v35 = vmul.f32 %v2384_v7, %v2325_v57  ;;  %v441_v36 = vmul.f32 %v2387_v8, %v2299_v44 }
  0x98   :  { %3196 = vst [vmem:[#allocation4_spill] sm:$0xff] %v2381_v6  ;;  %3197 = vst [vmem:[#allocation5_spill] sm:$0xff] %v2387_v8  ;;  %v193_v19 = vadd.f32 %v189_v13, %v165_v12  ;;  %v444_v20 = vadd.f32 %v440_v15, %v432_v14  ;;  %v616_v37 = vmul.f32 %v2399_v10, %v2325_v57 }
  0x99   :  { %1680 = vst [vmem:[%s3182_s10 + $0x38] sm:$0x1] %v1678_v2  ;;  %1683 = vst [vmem:[%s3182_s10 + $0x39] sm:$0x1] %v1681_v3  ;;  %v627_v38 = vadd.f32 %v623_v22, %v615_v21  ;;  %v624_v42 = vmul.f32 %v2403_v11, %v2299_v44  ;;  %v2444_v43 = vrot.slane %v2307_v50, %v2273_v26 }
  0x9a   :  { %3198 = vst [vmem:[#allocation6_spill] sm:$0xff] %v2403_v11  ;;  %v2426_v34 = vpop.permute.xlu1 %153  ;;  %v2435_v39 = vadd.f32 %v2414_v17, %v193_v19  ;;  %v2438_v41 = vadd.f32 %v444_v20, %v2414_v17  ;;  %v2454_v49 = vrot.slane %v2309_v51, %v2273_v26  ;;  %v194_v53 = vadd.f32 %v190_v25, %v166_v23 }
  0x9b   :  { %v167_v46 = vmul.f32 %v2377_v5, %v2426_v34  ;;  %v434_v47 = vmul.f32 %v2384_v7, %v2426_v34  ;;  %v617_v48 = vmul.f32 %v2399_v10, %v2426_v34  ;;  %v191_v54 = vmul.f32 %v2381_v6, %v2311_v52 }
  0x9c   :  { %3199 = vst [vmem:[#allocation7_spill] sm:$0xff] %v2454_v49  ;;  %v442_v55 = vmul.f32 %v2387_v8, %v2311_v52  ;;  %v445_v59 = vadd.f32 %v441_v36, %v433_v35  ;;  %v2464_v60 = vadd.f32 %v627_v38, %v2414_v17  ;;  %v625_v61 = vmul.f32 %v2403_v11, %v2311_v52 }
  0x9d   :  { %v804_v26 = vmul.f32 %v2454_v49, %v2395_v9  ;;  %v221_v62 = vmax.f32 %v2435_v39, 0.0  ;;  %v628_v0 = vadd.f32 %v624_v42, %v616_v37  ;;  %v796_v1 = vmul.f32 %v2444_v43, %v2361_v4 }
  0x9e   :  { %v2461_v58 = vpop.permute.xlu1 %158  ;;  %v195_v2 = vadd.f32 %v191_v54, %v167_v46  ;;  %v446_v3 = vadd.f32 %v442_v55, %v434_v47  ;;  %v629_v12 = vadd.f32 %v625_v61, %v617_v48  ;;  %v797_v13 = vmul.f32 %v2444_v43, %v2325_v57 }
  0x9f   :  { %v805_v14 = vmul.f32 %v2454_v49, %v2299_v44  ;;  %v808_v15 = vadd.f32 %v804_v26, %v796_v1  ;;  %v2479_v19 = vrot.slane %v2309_v51, %v975_v16  ;;  %v2484_v20 = vrot.slane %v2307_v50, %v3184_v28 }
  0xa0   :  { %v168_v21 = vmul.f32 %v2377_v5, %v2461_v58  ;;  %v798_v23 = vmul.f32 %v2444_v43, %v2426_v34  ;;  %v2492_v25 = vrot.slane %v2307_v50, %v975_v16  ;;  %v435_v36 = vmul.f32 %v2384_v7, %v2461_v58 }
  0xa1   :  { %3200 = vst [vmem:[#allocation8_spill] sm:$0xff] %v2479_v19  ;;  %v618_v37 = vmul.f32 %v2399_v10, %v2461_v58  ;;  %v799_v38 = vmul.f32 %v2444_v43, %v2461_v58  ;;  %v985_v39 = vmul.f32 %v2479_v19, %v2395_v9  ;;  %v809_v48 = vadd.f32 %v805_v14, %v797_v13 }
  0xa2   :  { %v977_v47 = vmul.f32 %v2492_v25, %v2361_v4  ;;  %v2513_v54 = vadd.f32 %v808_v15, %v2414_v17  ;;  %v806_v55 = vmul.f32 %v2454_v49, %v2311_v52  ;;  %v978_v1 = vmul.f32 %v2492_v25, %v2325_v57 }
  0xa3   :  { %v2494_v35 = vpop.permute.xlu1 %182  ;;  %v986_v56 = vmul.f32 %v2479_v19, %v2299_v44  ;;  %v2524_v13 = vrot.slane %v2307_v50, %v1156_v27  ;;  %v2527_v14 = vrot.slane %v2309_v51, %v1156_v27  ;;  %v980_v27 = vmul.f32 %v2492_v25, %v2461_v58 }
  0xa4   :  { %v192_v42 = vmul.f32 %v2381_v6, %v2494_v35  ;;  %v443_v16 = vmul.f32 %v2387_v8, %v2494_v35  ;;  %v626_v46 = vmul.f32 %v2403_v11, %v2494_v35  ;;  %v807_v61 = vmul.f32 %v2454_v49, %v2494_v35  ;;  %v2535_v49 = vpop.permute.xlu0 %214 }
  0xa5   :  { %v989_v28 = vadd.f32 %v985_v39, %v977_v47  ;;  %v810_v45 = vadd.f32 %v806_v55, %v798_v23  ;;  %v816_v39 = vmax.f32 %v2513_v54, 0.0 }
  0xa6   :  { %v196_v26 = vadd.f32 %v192_v42, %v168_v21  ;;  %v447_v22 = vadd.f32 %v443_v16, %v435_v36  ;;  %v630_v63 = vadd.f32 %v626_v46, %v618_v37  ;;  %v811_v40 = vadd.f32 %v807_v61, %v799_v38 }
  0xa7   :  { %v979_v21 = vmul.f32 %v2492_v25, %v2426_v34  ;;  %v988_v42 = vmul.f32 %v2479_v19, %v2494_v35  ;;  %v990_v38 = vadd.f32 %v986_v56, %v978_v1  ;;  %v2544_v16 = vadd.f32 %v989_v28, %v2414_v17 }
  0xa8   :  { %v2529_v15 = vpop.permute.xlu1 %204  ;;  %v220_v23 = vadd.f32 %v2535_v49, %v196_v26  ;;  %v987_v46 = vmul.f32 %v2479_v19, %v2311_v52  ;;  %v451_v55 = vadd.f32 %v447_v22, %v2535_v49  ;;  %v815_v26 = vadd.f32 %v811_v40, %v2535_v49 }
  0xa9   :  { %v218_v36 = vadd.f32 %v2529_v15, %v194_v53  ;;  %v449_v37 = vadd.f32 %v445_v59, %v2529_v15  ;;  %v632_v53 = vadd.f32 %v628_v0, %v2529_v15  ;;  %v634_v59 = vadd.f32 %v630_v63, %v2535_v49 }
  0xaa   :  { %v813_v61 = vadd.f32 %v809_v48, %v2529_v15  ;;  %v991_v56 = vadd.f32 %v987_v46, %v979_v21  ;;  %v992_v1 = vadd.f32 %v988_v42, %v980_v27  ;;  %v224_v22 = vmax.f32 %v220_v23, 0.0  ;;  %v67_v46 = vpop.permute.xlu0 %66 }
  0xab   :  { %v222_v47 = vmax.f32 %v218_v36, 0.0  ;;  %v453_v8 = vmax.f32 %v449_v37, 0.0  ;;  %v1158_v36 = vmul.f32 %v2524_v13, %v2361_v4  ;;  %v455_v6 = vmax.f32 %v451_v55, 0.0 }
  0xac   :  { %v2551_v54 = vpop.permute.xlu1 %209  ;;  %v636_v40 = vmax.f32 %v632_v53, 0.0  ;;  %v638_v21 = vmax.f32 %v634_v59, 0.0  ;;  %v2562_v37 = vadd.f32 %v990_v38, %v2529_v15  ;;  %v2565_v27 = vadd.f32 %v992_v1, %v2535_v49 }
  0xad   :  { %v225_v28 = vpack.c.bf16 %v222_v47, %v221_v62  ;;  %v219_v11 = vadd.f32 %v2551_v54, %v195_v2  ;;  %v450_v0 = vadd.f32 %v446_v3, %v2551_v54  ;;  %v633_v63 = vadd.f32 %v629_v12, %v2551_v54 }
  0xae   :  { %v814_v19 = vadd.f32 %v810_v45, %v2551_v54  ;;  %v817_v62 = vmax.f32 %v813_v61, 0.0  ;;  %v819_v2 = vmax.f32 %v815_v26, 0.0  ;;  %v1159_v59 = vmul.f32 %v2524_v13, %v2325_v57 }
  0xaf   :  { %1964 = vmatprep.subr.bf16.mxu0 %v225_v28  ;;  %v223_v48 = vmax.f32 %v219_v11, 0.0  ;;  %v3201_v11 = vmax.f32 %v2438_v41, 0.0  ;;  %v454_v47 = vmax.f32 %v450_v0, 0.0  ;;  %v637_v55 = vmax.f32 %v633_v63, 0.0 }
  0xb0   :  { %v47_v42 = vpop.permute.xlu1 %46  ;;  %1965 = vmatpush3.bf16.msra.mxu0 %v225_v28  ;;  %v818_v53 = vmax.f32 %v814_v19, 0.0  ;;  %v3202_v41 = vmax.f32 %v2464_v60, 0.0  ;;  %v2586_v26 = vpack.c.bf16 %v817_v62, %v816_v39  ;;  %v1160_v63 = vmul.f32 %v2524_v13, %v2426_v34 }
  0xb1   :  { %v54_v3 = vmul.f32 %v2283_v30, %v47_v42  ;;  %v76_v12 = vmul.f32 %v2286_v31, %v47_v42  ;;  %v226_v45 = vpack.c.bf16 %v224_v22, %v223_v48  ;;  %v456_v23 = vpack.c.bf16 %v453_v8, %v3201_v11  ;;  %v2578_v30 = vld [vmem:[%s3179_s4 + $0x8] sm:$0xff]  }
  0xb2   :  { %v1166_v31 = vmul.f32 %v2527_v14, %v2395_v9  ;;  %v1167_v8 = vmul.f32 %v2527_v14, %v2299_v44  ;;  %v639_v19 = vpack.c.bf16 %v636_v40, %v3202_v41  ;;  %v998_v22 = vmax.f32 %v2562_v37, 0.0 }
  0xb3   :  { %v60_v38 = vadd.f32 %v2291_v33, %v54_v3  ;;  %1966 = vmatprep.subr.bf16.mxu0 %v226_v45  ;;  %v82_v61 = vadd.f32 %v2288_v32, %v76_v12  ;;  %v997_v33 = vmax.f32 %v2544_v16, 0.0  ;;  %v2590_v32 = vadd.f32 %v991_v56, %v2551_v54  ;;  %v2606_v3 = vpop.permute.xlu0 %108 }
  0xb4   :  { %1967 = vmatpush3.bf16.msra.mxu0 %v226_v45  ;;  %v1170_v0 = vadd.f32 %v1166_v31, %v1158_v36  ;;  %v457_v48 = vpack.c.bf16 %v455_v6, %v454_v47  ;;  %v2595_v42 = vpack.c.bf16 %v638_v21, %v637_v55  ;;  %v2597_v60 = vpack.c.bf16 %v819_v2, %v818_v53 }
  0xb5   :  { %v70_v1 = vsub.f32 %v60_v38, %v67_v46  ;;  %v89_v28 = vpop.permute.xlu1 %88  ;;  %1980 = vmatprep.subr.bf16.mxu0 %v456_v23  ;;  %v1171_v56 = vadd.f32 %v1167_v8, %v1159_v59  ;;  %v1161_v62 = vmul.f32 %v2524_v13, %v2461_v58  ;;  %v1168_v36 = vmul.f32 %v2527_v14, %v2311_v52 }
  0xb6   :  { %v92_v40 = vsub.f32 %v82_v61, %v89_v28  ;;  %v1169_v21 = vmul.f32 %v2527_v14, %v2494_v35  ;;  %v1340_v2 = vmul.f32 %v2484_v20, %v2325_v57  ;;  %v3203_v12 = vsub.s32 6, %v2267_v24 }
  0xb7   :  { %1969 = vmatmul.mubr.msk.bf16.vlgmr.msra.gmra.mrb[0].mxu0 %vm257_vm0, %v2578_v30  ;;  %v118_v11 = vmul.f32 %v2606_v3, %v70_v1  ;;  %v2624_v46 = vadd.f32 %v1168_v36, %v1160_v63  ;;  %v1339_v47 = vmul.f32 %v2484_v20, %v2361_v4  ;;  %v2631_v53 = vadd.f32 %v1171_v56, %v2529_v15 }
  0xb8   :  { %1981 = vmatpush3.bf16.msra.mxu0 %v456_v23  ;;  %1984 = vmatprep.mubr.msk.bf16.mxu0 %vm257_vm0, %v2249_v18  ;;  %v2618_v45 = vrot.slane %v2309_v51, %v3203_v12  ;;  %v2622_v23 = vadd.f32 %v1170_v0, %v2414_v17  ;;  %v1341_v61 = vmul.f32 %v2484_v20, %v2426_v34  ;;  %v3206_v37 = vmax.f32 %v2590_v32, 0.0 }
  0xb9   :  { %1982 = vmatprep.subr.bf16.mxu0 %v457_v48  ;;  %v112_v31 = vmul.f32 %v2606_v3, %v92_v40  ;;  %v1342_v28 = vmul.f32 %v2484_v20, %v2461_v58  ;;  %v2648_v6 = vadd.f32 %v1169_v21, %v1161_v62 }
  0xba   :  { %v2628_v55 = vpop.permute.xlu1 %98  ;;  %v1347_v59 = vmul.f32 %v2618_v45, %v2395_v9  ;;  %v1348_v38 = vmul.f32 %v2618_v45, %v2299_v44  ;;  %v1349_v56 = vmul.f32 %v2618_v45, %v2311_v52  ;;  %v1350_v36 = vmul.f32 %v2618_v45, %v2494_v35 }
  0xbb   :  { %v102_v8 = vmul.f32 %v2628_v55, %v70_v1  ;;  %v116_v41 = vmul.f32 %v2628_v55, %v92_v40  ;;  %v3204_v1 = vsub.s32 7, %v2267_v24 }
  0xbc   :  { %1983 = vmatpush3.bf16.msra.mxu0 %v457_v48  ;;  %v1351_v0 = vadd.f32 %v1347_v59, %v1339_v47  ;;  %v1352_v63 = vadd.f32 %v1348_v38, %v1340_v2  ;;  %v1353_v47 = vadd.f32 %v1349_v56, %v1341_v61  ;;  %v1354_v59 = vadd.f32 %v1350_v36, %v1342_v28 }
  0xbd   :  { %v114_v12 = vadd.f32 %v112_v31, %v102_v8  ;;  %v120_v39 = vsub.f32 %v116_v41, %v118_v11  ;;  %1996 = vmatprep.subr.bf16.mxu0 %v639_v19  ;;  %v2653_v40 = vrot.slane %v2307_v50, %v3204_v1  ;;  %v3205_v8 = vmov %v3204_v1 }
  0xbe   :  { %v1355_v48 = vadd.f32 %v1351_v0, %v2414_v17  ;;  %v1356_v2 = vadd.f32 %v1352_v63, %v2529_v15  ;;  %v1357_v61 = vadd.f32 %v1353_v47, %v2551_v54  ;;  %v2685_v41 = vrot.slane %v2309_v51, %v3205_v8 }
  0xbf   :  { %v2658_v38 = vrot.slane %v114_v12, %v2280_v29  ;;  %v2661_v31 = vrot.slane %v120_v39, %v2280_v29  ;;  %1859 = vst [vmem:[%s3182_s10 + $0x40] sm:$0x1] %v114_v12  ;;  %1860 = vst [vmem:[%s3182_s10 + $0x41] sm:$0x1] %v120_v39  ;;  %1985 = vmatmul.mubr.msk.bf16.vlgmr.msra.gmra.mrb[4].mxu0 %vm257_vm0, %v2578_v30  ;;  %v2671_v50 = vpop.permute.xlu1 %229  ;;  %v1520_v62 = vmul.f32 %v2653_v40, %v2361_v4 }
  0xc0   :  { %v1521_v29 = vmul.f32 %v2653_v40, %v2325_v57  ;;  %1997 = vmatpush3.bf16.msra.mxu0 %v639_v19  ;;  %2000 = vmatprep.mubr.msk.bf16.mxu0 %vm257_vm0, %v2249_v18  ;;  %v1359_v21 = vmax.f32 %v1355_v48, 0.0  ;;  %v1360_v11 = vmax.f32 %v1356_v2, 0.0  ;;  %v1358_v39 = vadd.f32 %v1354_v59, %v2535_v49 }
  0xc1   :  { %1998 = vmatprep.subr.bf16.mxu0 %v2595_v42  ;;  %v1522_v28 = vmul.f32 %v2653_v40, %v2426_v34  ;;  %v1523_v19 = vmul.f32 %v2653_v40, %v2461_v58  ;;  %v1701_v0 = vmul.f32 %v2658_v38, %v2361_v4  ;;  %v1361_v56 = vmax.f32 %v1357_v61, 0.0 }
  0xc2   :  { %v2693_v63 = vpack.c.bf16 %v1360_v11, %v1359_v21  ;;  %v1362_v36 = vmax.f32 %v1358_v39, 0.0  ;;  %v1702_v12 = vmul.f32 %v2658_v38, %v2325_v57  ;;  %v1528_v51 = vmul.f32 %v2685_v41, %v2395_v9  ;;  %v2716_v21 = vpop.permute.xlu0 %239 }
  0xc3   :  { %v2697_v24 = vpop.permute.xlu1 %234  ;;  %v1529_v1 = vmul.f32 %v2685_v41, %v2299_v44  ;;  %v1530_v48 = vmul.f32 %v2685_v41, %v2311_v52  ;;  %v1531_v4 = vmul.f32 %v2685_v41, %v2494_v35  ;;  %v1709_v57 = vmul.f32 %v2661_v31, %v2395_v9 }
  0xc4   :  { %1999 = vmatpush3.bf16.msra.mxu0 %v2595_v42  ;;  %v2708_v2 = vpack.c.bf16 %v1362_v36, %v1361_v56  ;;  %v1710_v47 = vmul.f32 %v2661_v31, %v2299_v44  ;;  %v1703_v59 = vmul.f32 %v2658_v38, %v2426_v34  ;;  %v1532_v11 = vadd.f32 %v1528_v51, %v1520_v62 }
  0xc5   :  { %2012 = vmatprep.subr.bf16.mxu0 %v2586_v26  ;;  %v1533_v61 = vadd.f32 %v1529_v1, %v1521_v29  ;;  %v1534_v39 = vadd.f32 %v1530_v48, %v1522_v28  ;;  %v1535_v8 = vadd.f32 %v1531_v4, %v1523_v19  ;;  %v1713_v42 = vadd.f32 %v1709_v57, %v1701_v0 }
  0xc6   :  { %v1714_v56 = vadd.f32 %v1710_v47, %v1702_v12  ;;  %v1704_v36 = vmul.f32 %v2658_v38, %v2461_v58  ;;  %v1711_v9 = vmul.f32 %v2661_v31, %v2311_v52  ;;  %v1536_v34 = vadd.f32 %v1532_v11, %v2414_v17  ;;  %v2740_v11 = vpop.permute.xlu0 %370 }
  0xc7   :  { %2001 = vmatmul.mubr.msk.bf16.vlgmr.msra.gmra.mrb[8].mxu0 %vm257_vm0, %v2578_v30  ;;  %v2725_v44 = vpop.permute.xlu1 %244  ;;  %v1537_v62 = vadd.f32 %v1533_v61, %v2529_v15  ;;  %v1538_v29 = vadd.f32 %v1534_v39, %v2551_v54  ;;  %v1539_v28 = vadd.f32 %v1535_v8, %v2535_v49  ;;  %v1179_v52 = vmax.f32 %v2631_v53, 0.0 }
  0xc8   :  { %2013 = vmatpush3.bf16.msra.mxu0 %v2586_v26  ;;  %2016 = vmatprep.mubr.msk.bf16.mxu0 %vm257_vm0, %v2249_v18  ;;  %v1717_v58 = vadd.f32 %v1713_v42, %v2414_v17  ;;  %v1718_v19 = vadd.f32 %v1714_v56, %v2529_v15  ;;  %v1712_v0 = vmul.f32 %v2661_v31, %v2494_v35  ;;  %v1540_v12 = vmax.f32 %v1536_v34, 0.0 }
  0xc9   :  { %2014 = vmatprep.subr.bf16.mxu0 %v2597_v60  ;;  %v1541_v51 = vmax.f32 %v1537_v62, 0.0  ;;  %v1542_v1 = vmax.f32 %v1538_v29, 0.0  ;;  %v1543_v48 = vmax.f32 %v1539_v28, 0.0  ;;  %v1715_v57 = vadd.f32 %v1711_v9, %v1703_v59  ;;  %v3208_v9 = vld [vmem:[#allocation4_spill] sm:$0xff]  ;;  %v3210_v62 = vld [vmem:[#allocation6_spill] sm:$0xff]  ;;  %v3211_v28 = vld [vmem:[#allocation7_spill] sm:$0xff] }
  0xca   :  { %v1721_v4 = vmax.f32 %v1717_v58, 0.0  ;;  %v1722_v26 = vmax.f32 %v1718_v19, 0.0  ;;  %v1716_v47 = vadd.f32 %v1712_v0, %v1704_v36  ;;  %v1001_v17 = vpack.c.bf16 %v998_v22, %v997_v33  ;;  %v3212_v58 = vld [vmem:[#allocation8_spill] sm:$0xff] }
  0xcb   :  { %v2742_v53 = vpop.permute.xlu1 %321  ;;  %v1178_v35 = vmax.f32 %v2622_v23, 0.0  ;;  %v2749_v15 = vpack.c.bf16 %v1541_v51, %v1540_v12  ;;  %v2751_v61 = vpack.c.bf16 %v1543_v48, %v1542_v1  ;;  %v1176_v59 = vadd.f32 %v2624_v46, %v2551_v54  ;;  %v2804_v12 = vpop.permute.xlu0 %407 }
  0xcc   :  { %2015 = vmatpush3.bf16.msra.mxu0 %v2597_v60  ;;  %v2756_v39 = vpack.c.bf16 %v1722_v26, %v1721_v4  ;;  %v1719_v8 = vadd.f32 %v1715_v57, %v2551_v54  ;;  %v1720_v16 = vadd.f32 %v1716_v47, %v2535_v49  ;;  %v3207_v33 = vmax.f32 %v2565_v27, 0.0 }
  0xcd   :  { %2028 = vmatprep.subr.bf16.mxu0 %v1001_v17  ;;  %v1182_v23 = vpack.c.bf16 %v1179_v52, %v1178_v35  ;;  %v1177_v42 = vadd.f32 %v2648_v6, %v2535_v49  ;;  %v402_v46 = vmul.f32 %v2740_v11, %v2377_v5  ;;  %v578_v54 = vmul.f32 %v2384_v7, %v2740_v11 }
  0xce   :  { %v1002_v22 = vpack.c.bf16 %v3207_v33, %v3206_v37  ;;  %v1723_v60 = vmax.f32 %v1719_v8, 0.0  ;;  %v1724_v56 = vmax.f32 %v1720_v16, 0.0  ;;  %v761_v32 = vmul.f32 %v2399_v10, %v2740_v11 }
  0xcf   :  { %2017 = vmatmul.mubr.msk.bf16.vlgmr.msra.gmra.mrb[12].mxu0 %vm257_vm0, %v2578_v30  ;;  %v942_v27 = vmul.f32 %v2444_v43, %v2740_v11  ;;  %v1123_v49 = vmul.f32 %v2492_v25, %v2740_v11  ;;  %v1304_v6 = vmul.f32 %v2524_v13, %v2740_v11  ;;  %v1180_v5 = vmax.f32 %v1176_v59, 0.0  ;;  %v3209_v13 = vld [vmem:[#allocation5_spill] sm:$0xff] }
  0xd0   :  { %v2780_v36 = vpop.permute.xlu1 %383  ;;  %2029 = vmatpush3.bf16.msra.mxu0 %v1001_v17  ;;  %2032 = vmatprep.mubr.msk.bf16.mxu0 %vm257_vm0, %v2249_v18  ;;  %v1726_v7 = vpack.c.bf16 %v1724_v56, %v1723_v60  ;;  %v1485_v10 = vmul.f32 %v2484_v20, %v2740_v11  ;;  %v1666_v43 = vmul.f32 %v2653_v40, %v2740_v11 }
  0xd1   :  { %2030 = vmatprep.subr.bf16.mxu0 %v1002_v22  ;;  %v403_v25 = vmul.f32 %v2780_v36, %v3208_v9  ;;  %v579_v34 = vmul.f32 %v3209_v13, %v2780_v36  ;;  %v762_v29 = vmul.f32 %v3210_v62, %v2780_v36  ;;  %v943_v52 = vmul.f32 %v3211_v28, %v2780_v36 }
  0xd2   :  { %v1124_v19 = vmul.f32 %v3212_v58, %v2780_v36  ;;  %v1305_v20 = vmul.f32 %v2527_v14, %v2780_v36  ;;  %v1486_v40 = vmul.f32 %v2618_v45, %v2780_v36  ;;  %v1667_v0 = vmul.f32 %v2685_v41, %v2780_v36 }
  0xd3   :  { %v2806_v51 = vadd.f32 %v403_v25, %v402_v46  ;;  %v2808_v1 = vadd.f32 %v579_v34, %v578_v54  ;;  %v2810_v48 = vadd.f32 %v762_v29, %v761_v32  ;;  %v2812_v4 = vadd.f32 %v943_v52, %v942_v27  ;;  %v2875_v25 = vld [vmem:[%s3183_s6] sm:$0x3] }
  0xd4   :  { %2031 = vmatpush3.bf16.msra.mxu0 %v1002_v22  ;;  %v2814_v26 = vadd.f32 %v1124_v19, %v1123_v49  ;;  %v2816_v14 = vadd.f32 %v1305_v20, %v1304_v6  ;;  %v2818_v57 = vadd.f32 %v1486_v40, %v1485_v10  ;;  %v2820_v45 = vadd.f32 %v1667_v0, %v1666_v43 }
  0xd5   :  { %2044 = vmatprep.subr.bf16.mxu0 %v1182_v23  ;;  %v1181_v41 = vmax.f32 %v1177_v42, 0.0  ;;  %v1847_v35 = vmul.f32 %v2658_v38, %v2740_v11  ;;  %v1848_v59 = vmul.f32 %v2661_v31, %v2780_v36  ;;  %v2140_v38 = vmov 0.0  }
  0xd6   :  { %v1669_v47 = vsub.f32 %v2820_v45, %v2804_v12  ;;  %1972 = vmatprep.subr.bf16.mxu1 %v2140_v38  ;;  %1976 = vmatprep.mubr.msk.bf16.mxu1 %vm2141_vm1, %v2140_v38 }
  0xd7   :  { %2033 = vmatmul.mubr.msk.bf16.vlgmr.msra.gmra.mrb[16].mxu0 %vm257_vm0, %v2578_v30  ;;  %v1183_v17 = vpack.c.bf16 %v1181_v41, %v1180_v5  ;;  %v2832_v8 = vadd.f32 %v1848_v59, %v1847_v35 }
  0xd8   :  { %2045 = vmatpush3.bf16.msra.mxu0 %v1182_v23  ;;  %2048 = vmatprep.mubr.msk.bf16.mxu0 %vm257_vm0, %v2249_v18 }
  0xd9   :  { %2046 = vmatprep.subr.bf16.mxu0 %v1183_v17  ;;  %v1850_v16 = vsub.f32 %v2832_v8, %v2804_v12 }
  0xdc   :  { %2047 = vmatpush3.bf16.msra.mxu0 %v1183_v17 }
  0xdd   :  { %2060 = vmatprep.subr.bf16.mxu0 %v2693_v63 }
  0xdf   :  { %2049 = vmatmul.mubr.msk.bf16.vlgmr.msra.gmra.mrb[20].mxu0 %vm257_vm0, %v2578_v30 }
  0xe0   :  { %2061 = vmatpush3.bf16.msra.mxu0 %v2693_v63  ;;  %2064 = vmatprep.mubr.msk.bf16.mxu0 %vm257_vm0, %v2249_v18 }
  0xe1   :  { %2062 = vmatprep.subr.bf16.mxu0 %v2708_v2 }
  0xe4   :  { %2063 = vmatpush3.bf16.msra.mxu0 %v2708_v2 }
  0xe5   :  { %2076 = vmatprep.subr.bf16.mxu0 %v2749_v15 }
  0xe7   :  { %2065 = vmatmul.mubr.msk.bf16.vlgmr.msra.gmra.mrb[24].mxu0 %vm257_vm0, %v2578_v30 }
  0xe8   :  { %2077 = vmatpush3.bf16.msra.mxu0 %v2749_v15  ;;  %2080 = vmatprep.mubr.msk.bf16.mxu0 %vm257_vm0, %v2249_v18 }
  0xe9   :  { %2078 = vmatprep.subr.bf16.mxu0 %v2751_v61 }
  0xec   :  { %2079 = vmatpush3.bf16.msra.mxu0 %v2751_v61 }
  0xed   :  { %2092 = vmatprep.subr.bf16.mxu0 %v2756_v39 }
  0xef   :  { %2081 = vmatmul.mubr.msk.bf16.vlgmr.msra.gmra.mrb[28].mxu0 %vm257_vm0, %v2578_v30 }
  0xf0   :  { %2093 = vmatpush3.bf16.msra.mxu0 %v2756_v39  ;;  %2096 = vmatprep.mubr.msk.bf16.mxu0 %vm257_vm0, %v2249_v18 }
  0xf1   :  { %2094 = vmatprep.subr.bf16.mxu0 %v1726_v7 }
  0xf4   :  { %2095 = vmatpush3.bf16.msra.mxu0 %v1726_v7 }
  0xf7   :  { %2097 = vmatmul.mubr.msk.bf16.vlgmr.msra.gmra.mrb[32].mxu0 %vm257_vm0, %v2578_v30 }
 0x18a   :  { %v1970_v31 = vpop.f32.mrb[0].mxu0 }
 0x18b   :  { %v307_v63 = vadd.f32 %v1970_v31, %v2716_v21  ;;  %v298_v2 = vpop.f32.mrb[1].mxu0 }
 0x18c   :  { %v299_v15 = vadd.f32 %v298_v2, %v2671_v50  ;;  %v1971_v61 = vpop.f32.mrb[2].mxu0 }
 0x18d   :  { %v310_v18 = vadd.f32 %v1971_v61, %v2725_v44  ;;  %v301_v39 = vpop.f32.mrb[3].mxu0  ;;  %v315_v30 = vmax.f32 %v307_v63, 0.0 }
 0x18e   :  { %v302_v37 = vadd.f32 %v301_v39, %v2697_v24  ;;  %v313_v22 = vmax.f32 %v299_v15, 0.0 }
 0x18f   :  { %v316_v33 = vmax.f32 %v310_v18, 0.0 }
 0x190   :  { %v314_v23 = vmax.f32 %v302_v37, 0.0 }
 0x191   :  { %v318_v42 = vpack.c.bf16 %v316_v33, %v315_v30 }
 0x192   :  { %v1986_v60 = vpop.f32.mrb[4].mxu0  ;;  %v317_v56 = vpack.c.bf16 %v314_v23, %v313_v22 }
 0x193   :  { %v501_v46 = vadd.f32 %v1986_v60, %v2716_v21  ;;  %v492_v54 = vpop.f32.mrb[5].mxu0 }
 0x194   :  { %v493_v32 = vadd.f32 %v492_v54, %v2671_v50  ;;  %1973 = vmatpush3.bf16.msra.mxu1 %v317_v56  ;;  %v1987_v27 = vpop.f32.mrb[6].mxu0 }
 0x195   :  { %v504_v49 = vadd.f32 %v1987_v27, %v2725_v44  ;;  %v495_v6 = vpop.f32.mrb[7].mxu0  ;;  %1974 = vmatprep.subr.bf16.mxu1 %v2140_v38  ;;  %v509_v7 = vmax.f32 %v501_v46, 0.0 }
 0x196   :  { %v496_v5 = vadd.f32 %v495_v6, %v2697_v24  ;;  %v507_v43 = vmax.f32 %v493_v32, 0.0 }
 0x197   :  { %v510_v10 = vmax.f32 %v504_v49, 0.0 }
 0x198   :  { %v508_v9 = vmax.f32 %v496_v5, 0.0  ;;  %1975 = vmatpush3.bf16.msra.mxu1 %v318_v42 }
 0x199   :  { %v512_v13 = vpack.c.bf16 %v510_v10, %v509_v7  ;;  %1988 = vmatprep.subr.bf16.mxu1 %v2140_v38 }
 0x19a   :  { %v511_v34 = vpack.c.bf16 %v508_v9, %v507_v43  ;;  %v2002_v62 = vpop.f32.mrb[8].mxu0 }
 0x19b   :  { %v684_v29 = vadd.f32 %v2002_v62, %v2716_v21  ;;  %1977 = vmatmul.mubr.msk.bf16.vlgmr.msra.gmra.mrb[0].mxu1 %vm257_vm0, %v2875_v25  ;;  %v675_v28 = vpop.f32.mrb[9].mxu0 }
 0x19c   :  { %v676_v52 = vadd.f32 %v675_v28, %v2671_v50  ;;  %1989 = vmatpush3.bf16.msra.mxu1 %v511_v34  ;;  %v2003_v58 = vpop.f32.mrb[10].mxu0  ;;  %1992 = vmatprep.mubr.msk.bf16.mxu1 %vm2141_vm1, %v2140_v38 }
 0x19d   :  { %v687_v19 = vadd.f32 %v2003_v58, %v2725_v44  ;;  %v678_v20 = vpop.f32.mrb[11].mxu0  ;;  %1990 = vmatprep.subr.bf16.mxu1 %v2140_v38  ;;  %v692_v0 = vmax.f32 %v684_v29, 0.0 }
 0x19e   :  { %v679_v40 = vadd.f32 %v678_v20, %v2697_v24  ;;  %v690_v17 = vmax.f32 %v676_v52, 0.0 }
 0x19f   :  { %v693_v41 = vmax.f32 %v687_v19, 0.0 }
 0x1a0   :  { %v691_v35 = vmax.f32 %v679_v40, 0.0  ;;  %1991 = vmatpush3.bf16.msra.mxu1 %v512_v13 }
 0x1a1   :  { %v695_v59 = vpack.c.bf16 %v693_v41, %v692_v0  ;;  %2004 = vmatprep.subr.bf16.mxu1 %v2140_v38 }
 0x1a2   :  { %v694_v31 = vpack.c.bf16 %v691_v35, %v690_v17  ;;  %v2018_v63 = vpop.f32.mrb[12].mxu0 }
 0x1a3   :  { %v865_v2 = vadd.f32 %v2018_v63, %v2716_v21  ;;  %1993 = vmatmul.mubr.msk.bf16.vlgmr.msra.gmra.mrb[4].mxu1 %vm257_vm0, %v2875_v25  ;;  %v856_v15 = vpop.f32.mrb[13].mxu0 }
 0x1a4   :  { %v857_v61 = vadd.f32 %v856_v15, %v2671_v50  ;;  %2005 = vmatpush3.bf16.msra.mxu1 %v694_v31  ;;  %v2019_v18 = vpop.f32.mrb[14].mxu0  ;;  %2008 = vmatprep.mubr.msk.bf16.mxu1 %vm2141_vm1, %v2140_v38 }
 0x1a5   :  { %v868_v39 = vadd.f32 %v2019_v18, %v2725_v44  ;;  %v859_v37 = vpop.f32.mrb[15].mxu0  ;;  %2006 = vmatprep.subr.bf16.mxu1 %v2140_v38  ;;  %v873_v33 = vmax.f32 %v865_v2, 0.0 }
 0x1a6   :  { %v860_v30 = vadd.f32 %v859_v37, %v2697_v24  ;;  %v871_v23 = vmax.f32 %v857_v61, 0.0 }
 0x1a7   :  { %v874_v22 = vmax.f32 %v868_v39, 0.0 }
 0x1a8   :  { %v872_v42 = vmax.f32 %v860_v30, 0.0  ;;  %2007 = vmatpush3.bf16.msra.mxu1 %v695_v59 }
 0x1a9   :  { %v876_v60 = vpack.c.bf16 %v874_v22, %v873_v33  ;;  %2020 = vmatprep.subr.bf16.mxu1 %v2140_v38 }
 0x1aa   :  { %v875_v56 = vpack.c.bf16 %v872_v42, %v871_v23  ;;  %v2034_v46 = vpop.f32.mrb[16].mxu0 }
 0x1ab   :  { %v1046_v54 = vadd.f32 %v2034_v46, %v2716_v21  ;;  %2009 = vmatmul.mubr.msk.bf16.vlgmr.msra.gmra.mrb[8].mxu1 %vm257_vm0, %v2875_v25  ;;  %v1037_v32 = vpop.f32.mrb[17].mxu0 }
 0x1ac   :  { %v1038_v27 = vadd.f32 %v1037_v32, %v2671_v50  ;;  %2021 = vmatpush3.bf16.msra.mxu1 %v875_v56  ;;  %v2035_v49 = vpop.f32.mrb[18].mxu0  ;;  %2024 = vmatprep.mubr.msk.bf16.mxu1 %vm2141_vm1, %v2140_v38 }
 0x1ad   :  { %v1049_v6 = vadd.f32 %v2035_v49, %v2725_v44  ;;  %v1040_v5 = vpop.f32.mrb[19].mxu0  ;;  %2022 = vmatprep.subr.bf16.mxu1 %v2140_v38  ;;  %v1054_v10 = vmax.f32 %v1046_v54, 0.0 }
 0x1ae   :  { %v1041_v7 = vadd.f32 %v1040_v5, %v2697_v24  ;;  %v1052_v9 = vmax.f32 %v1038_v27, 0.0 }
 0x1af   :  { %v1055_v43 = vmax.f32 %v1049_v6, 0.0 }
 0x1b0   :  { %v1053_v13 = vmax.f32 %v1041_v7, 0.0  ;;  %2023 = vmatpush3.bf16.msra.mxu1 %v876_v60 }
 0x1b1   :  { %v1057_v34 = vpack.c.bf16 %v1055_v43, %v1054_v10  ;;  %2036 = vmatprep.subr.bf16.mxu1 %v2140_v38 }
 0x1b2   :  { %v1056_v62 = vpack.c.bf16 %v1053_v13, %v1052_v9  ;;  %v2050_v29 = vpop.f32.mrb[20].mxu0 }
 0x1b3   :  { %v1227_v28 = vadd.f32 %v2050_v29, %v2716_v21  ;;  %2025 = vmatmul.mubr.msk.bf16.vlgmr.msra.gmra.mrb[12].mxu1 %vm257_vm0, %v2875_v25  ;;  %v1218_v52 = vpop.f32.mrb[21].mxu0 }
 0x1b4   :  { %v1219_v58 = vadd.f32 %v1218_v52, %v2671_v50  ;;  %2037 = vmatpush3.bf16.msra.mxu1 %v1056_v62  ;;  %v2051_v19 = vpop.f32.mrb[22].mxu0  ;;  %2040 = vmatprep.mubr.msk.bf16.mxu1 %vm2141_vm1, %v2140_v38 }
 0x1b5   :  { %v1230_v20 = vadd.f32 %v2051_v19, %v2725_v44  ;;  %v1221_v40 = vpop.f32.mrb[23].mxu0  ;;  %2038 = vmatprep.subr.bf16.mxu1 %v2140_v38  ;;  %v1235_v41 = vmax.f32 %v1227_v28, 0.0 }
 0x1b6   :  { %v1222_v0 = vadd.f32 %v1221_v40, %v2697_v24  ;;  %v1233_v35 = vmax.f32 %v1219_v58, 0.0 }
 0x1b7   :  { %v1236_v17 = vmax.f32 %v1230_v20, 0.0 }
 0x1b8   :  { %v1234_v59 = vmax.f32 %v1222_v0, 0.0  ;;  %2039 = vmatpush3.bf16.msra.mxu1 %v1057_v34 }
 0x1b9   :  { %v1238_v31 = vpack.c.bf16 %v1236_v17, %v1235_v41  ;;  %2052 = vmatprep.subr.bf16.mxu1 %v2140_v38 }
 0x1ba   :  { %v1237_v63 = vpack.c.bf16 %v1234_v59, %v1233_v35  ;;  %v2066_v2 = vpop.f32.mrb[24].mxu0 }
 0x1bb   :  { %v1408_v15 = vadd.f32 %v2066_v2, %v2716_v21  ;;  %2041 = vmatmul.mubr.msk.bf16.vlgmr.msra.gmra.mrb[16].mxu1 %vm257_vm0, %v2875_v25  ;;  %v1399_v61 = vpop.f32.mrb[25].mxu0 }
 0x1bc   :  { %v1400_v18 = vadd.f32 %v1399_v61, %v2671_v50  ;;  %2053 = vmatpush3.bf16.msra.mxu1 %v1237_v63  ;;  %v2067_v39 = vpop.f32.mrb[26].mxu0  ;;  %2056 = vmatprep.mubr.msk.bf16.mxu1 %vm2141_vm1, %v2140_v38  ;;  %v410_v61 = vsub.f32 %v2806_v51, %v2804_v12 }
 0x1bd   :  { %v1411_v37 = vadd.f32 %v2067_v39, %v2725_v44  ;;  %v1402_v30 = vpop.f32.mrb[27].mxu0  ;;  %2054 = vmatprep.subr.bf16.mxu1 %v2140_v38  ;;  %v1416_v22 = vmax.f32 %v1408_v15, 0.0 }
 0x1be   :  { %v1403_v33 = vadd.f32 %v1402_v30, %v2697_v24  ;;  %v1414_v42 = vmax.f32 %v1400_v18, 0.0 }
 0x1bf   :  { %v1417_v23 = vmax.f32 %v1411_v37, 0.0 }
 0x1c0   :  { %v1415_v60 = vmax.f32 %v1403_v33, 0.0  ;;  %2055 = vmatpush3.bf16.msra.mxu1 %v1238_v31 }
 0x1c1   :  { %v1419_v56 = vpack.c.bf16 %v1417_v23, %v1416_v22  ;;  %2068 = vmatprep.subr.bf16.mxu1 %v2140_v38 }
 0x1c2   :  { %v1418_v46 = vpack.c.bf16 %v1415_v60, %v1414_v42  ;;  %v2082_v54 = vpop.f32.mrb[28].mxu0 }
 0x1c3   :  { %v1589_v32 = vadd.f32 %v2082_v54, %v2716_v21  ;;  %2057 = vmatmul.mubr.msk.bf16.vlgmr.msra.gmra.mrb[20].mxu1 %vm257_vm0, %v2875_v25  ;;  %v1580_v27 = vpop.f32.mrb[29].mxu0 }
 0x1c4   :  { %v1581_v49 = vadd.f32 %v1580_v27, %v2671_v50  ;;  %2069 = vmatpush3.bf16.msra.mxu1 %v1418_v46  ;;  %v2083_v6 = vpop.f32.mrb[30].mxu0  ;;  %2072 = vmatprep.mubr.msk.bf16.mxu1 %vm2141_vm1, %v2140_v38 }
 0x1c5   :  { %v1592_v5 = vadd.f32 %v2083_v6, %v2725_v44  ;;  %v1583_v7 = vpop.f32.mrb[31].mxu0  ;;  %2070 = vmatprep.subr.bf16.mxu1 %v2140_v38  ;;  %v1597_v43 = vmax.f32 %v1589_v32, 0.0 }
 0x1c6   :  { %v1584_v10 = vadd.f32 %v1583_v7, %v2697_v24  ;;  %v1595_v13 = vmax.f32 %v1581_v49, 0.0 }
 0x1c7   :  { %v1598_v9 = vmax.f32 %v1592_v5, 0.0  ;;  %v581_v5 = vsub.f32 %v2808_v1, %v2804_v12 }
 0x1c8   :  { %v1596_v34 = vmax.f32 %v1584_v10, 0.0  ;;  %2071 = vmatpush3.bf16.msra.mxu1 %v1419_v56 }
 0x1c9   :  { %v1600_v62 = vpack.c.bf16 %v1598_v9, %v1597_v43  ;;  %2084 = vmatprep.subr.bf16.mxu1 %v2140_v38 }
 0x1ca   :  { %v1599_v29 = vpack.c.bf16 %v1596_v34, %v1595_v13  ;;  %v2098_v28 = vpop.f32.mrb[32].mxu0 }
 0x1cb   :  { %v1770_v52 = vadd.f32 %v2098_v28, %v2716_v21  ;;  %2073 = vmatmul.mubr.msk.bf16.vlgmr.msra.gmra.mrb[24].mxu1 %vm257_vm0, %v2875_v25  ;;  %v1761_v58 = vpop.f32.mrb[33].mxu0 }
 0x1cc   :  { %v1762_v19 = vadd.f32 %v1761_v58, %v2671_v50  ;;  %2085 = vmatpush3.bf16.msra.mxu1 %v1599_v29  ;;  %v2099_v20 = vpop.f32.mrb[34].mxu0  ;;  %2088 = vmatprep.mubr.msk.bf16.mxu1 %vm2141_vm1, %v2140_v38 }
 0x1cd   :  { %v1773_v40 = vadd.f32 %v2099_v20, %v2725_v44  ;;  %v1764_v0 = vpop.f32.mrb[35].mxu0  ;;  %2086 = vmatprep.subr.bf16.mxu1 %v2140_v38  ;;  %v1778_v17 = vmax.f32 %v1770_v52, 0.0 }
 0x1ce   :  { %v1765_v41 = vadd.f32 %v1764_v0, %v2697_v24  ;;  %v1776_v35 = vmax.f32 %v1762_v19, 0.0 }
 0x1cf   :  { %v1779_v21 = vmax.f32 %v1773_v40, 0.0 }
 0x1d0   :  { %v1777_v59 = vmax.f32 %v1765_v41, 0.0  ;;  %2087 = vmatpush3.bf16.msra.mxu1 %v1600_v62 }
 0x1d1   :  { %v1781_v31 = vpack.c.bf16 %v1779_v21, %v1778_v17  ;;  %2100 = vmatprep.subr.bf16.mxu1 %v2140_v38 }
 0x1d2   :  { %v1780_v50 = vpack.c.bf16 %v1777_v59, %v1776_v35 }
 0x1d3   :  { %2089 = vmatmul.mubr.msk.bf16.vlgmr.msra.gmra.mrb[28].mxu1 %vm257_vm0, %v2875_v25 }
 0x1d4   :  { %2101 = vmatpush3.bf16.msra.mxu1 %v1780_v50  ;;  %2104 = vmatprep.mubr.msk.bf16.mxu1 %vm2141_vm1, %v2140_v38 }
 0x1d5   :  { %2102 = vmatprep.subr.bf16.mxu1 %v2140_v38 }
 0x1d8   :  { %2103 = vmatpush3.bf16.msra.mxu1 %v1781_v31 }
 0x1db   :  { %2105 = vmatmul.mubr.msk.bf16.vlgmr.msra.gmra.mrb[32].mxu1 %vm257_vm0, %v2875_v25 }
 0x26e   :  { %v361_v24 = vpop.f32.mrb[0].mxu1 }
 0x26f   :  { %v362_v44 = vadd.f32 %v361_v24, %v2742_v53  ;;  %v1978_v63 = vpop.f32.mrb[1].mxu1 }
 0x270   :  { %v364_v2 = vpop.f32.mrb[2].mxu1 }
 0x271   :  { %v367_v15 = vmax.f32 %v362_v44, 0.0  ;;  %v1979_v18 = vpop.f32.mrb[3].mxu1 }
 0x273   :  { %v373_v39 = vmul.f32 %v2740_v11, %v367_v15  ;;  %v386_v37 = vmul.f32 %v2780_v36, %v367_v15  ;;  %v411_v38 = vmul.f32 %v410_v61, %v367_v15  ;;  %v422_v30 = vrot.slane %v367_v15, 6 }
 0x275   :  { %v375_v33 = vsel %vm374_vm2, %v373_v39, 0.0  ;;  %v387_v25 = vsel %vm374_vm2, %v386_v37, 0.0  ;;  %v412_v22 = vsel %vm374_vm2, %v411_v38, 0.0  ;;  %424 = vst [vmem:[%s3182_s10] sm:$0x3c] %v422_v30  ;;  %v764_v37 = vsub.f32 %v2810_v48, %v2804_v12  ;;  %v3213_v30 = vld [vmem:[#allocation2_spill] sm:$0xff] }
 0x276   :  { %v376_v23 = vrot.slane %v375_v33, 4  ;;  %v388_v51 = vrot.slane %v387_v25, 4  ;;  %v413_v42 = vrot.slane %v412_v22, 4  ;;  %v547_v60 = vpop.f32.mrb[4].mxu1 }
 0x277   :  { %v548_v56 = vadd.f32 %v547_v60, %v2742_v53  ;;  %v1994_v46 = vpop.f32.mrb[5].mxu1 }
 0x278   :  { %v377_v54 = vadd.f32 %v376_v23, %v375_v33  ;;  %v389_v32 = vadd.f32 %v388_v51, %v387_v25  ;;  %v414_v27 = vadd.f32 %v413_v42, %v412_v22  ;;  %v550_v49 = vpop.f32.mrb[6].mxu1  ;;  %v3214_v25 = vld [vmem:[#allocation3_spill] sm:$0xff] }
 0x279   :  { %v553_v6 = vmax.f32 %v548_v56, 0.0  ;;  %v1995_v7 = vpop.f32.mrb[7].mxu1 }
 0x27a   :  { %v378_v10 = vrot.slane %v377_v54, 2  ;;  %v390_v43 = vrot.slane %v389_v32, 2  ;;  %v415_v9 = vrot.slane %v414_v27, 2 }
 0x27b   :  { %v554_v13 = vmul.f32 %v553_v6, %v2740_v11  ;;  %v562_v34 = vmul.f32 %v553_v6, %v2780_v36  ;;  %v582_v62 = vmul.f32 %v581_v5, %v553_v6  ;;  %v599_v29 = vrot.slane %v553_v6, 6 }
 0x27c   :  { %v379_v28 = vadd.f32 %v378_v10, %v377_v54  ;;  %v391_v52 = vadd.f32 %v390_v43, %v389_v32  ;;  %v416_v58 = vadd.f32 %v415_v9, %v414_v27 }
 0x27d   :  { %v555_v19 = vsel %vm374_vm2, %v554_v13, 0.0  ;;  %v563_v20 = vsel %vm374_vm2, %v562_v34, 0.0  ;;  %v583_v40 = vsel %vm374_vm2, %v582_v62, 0.0  ;;  %601 = vst [vmem:[%s3182_s10 + $0x8] sm:$0x3c] %v599_v29 }
 0x27e   :  { %v380_v1 = vrot.slane %v379_v28, 1  ;;  %v392_v0 = vrot.slane %v391_v52, 1  ;;  %v417_v41 = vrot.slane %v416_v58, 1  ;;  %v556_v17 = vrot.slane %v555_v19, 4  ;;  %v730_v21 = vpop.f32.mrb[8].mxu1 }
 0x27f   :  { %v564_v35 = vrot.slane %v563_v20, 4  ;;  %v584_v59 = vrot.slane %v583_v40, 4  ;;  %v731_v31 = vadd.f32 %v730_v21, %v2742_v53  ;;  %v2010_v50 = vpop.f32.mrb[9].mxu1 }
 0x280   :  { %v381_v24 = vadd.f32 %v380_v1, %v379_v28  ;;  %v393_v44 = vadd.f32 %v392_v0, %v391_v52  ;;  %v418_v63 = vadd.f32 %v417_v41, %v416_v58  ;;  %v557_v2 = vadd.f32 %v556_v17, %v555_v19  ;;  %v733_v15 = vpop.f32.mrb[10].mxu1 }
 0x281   :  { %v565_v61 = vadd.f32 %v564_v35, %v563_v20  ;;  %v585_v18 = vadd.f32 %v584_v59, %v583_v40  ;;  %v736_v39 = vmax.f32 %v731_v31, 0.0  ;;  %v2011_v38 = vpop.f32.mrb[11].mxu1 }
 0x282   :  { %v394_v33 = vmul.f32 %v381_v24, %v3213_v30  ;;  %v395_v22 = vmul.f32 %v393_v44, %v3214_v25  ;;  %v398_v23 = vmul.f32 %v381_v24, %v3214_v25  ;;  %v399_v51 = vmul.f32 %v393_v44, %v3213_v30  ;;  %427 = vst [vmem:[%s3182_s10 + $0x48] sm:$0x1] %v418_v63 }
 0x283   :  { %v558_v42 = vrot.slane %v557_v2, 2  ;;  %v566_v60 = vrot.slane %v565_v61, 2  ;;  %v586_v56 = vrot.slane %v585_v18, 2  ;;  %v737_v46 = vmul.f32 %v736_v39, %v2740_v11 }
 0x284   :  { %v396_v54 = vsub.f32 %v394_v33, %v395_v22  ;;  %v400_v48 = vadd.f32 %v399_v51, %v398_v23  ;;  %v745_v32 = vmul.f32 %v736_v39, %v2780_v36  ;;  %v765_v27 = vmul.f32 %v764_v37, %v736_v39 }
 0x285   :  { %v559_v49 = vadd.f32 %v558_v42, %v557_v2  ;;  %v567_v6 = vadd.f32 %v566_v60, %v565_v61  ;;  %v587_v5 = vadd.f32 %v586_v56, %v585_v18  ;;  %v738_v7 = vsel %vm374_vm2, %v737_v46, 0.0 }
 0x286   :  { %v397_v10 = vsub.f32 0.0, %v396_v54  ;;  %v401_v43 = vsub.f32 0.0, %v400_v48  ;;  %v739_v9 = vrot.slane %v738_v7, 4  ;;  %v746_v13 = vsel %vm374_vm2, %v745_v32, 0.0  ;;  %v911_v34 = vpop.f32.mrb[12].mxu1 }
 0x287   :  { %v560_v62 = vrot.slane %v559_v49, 1  ;;  %v568_v29 = vrot.slane %v567_v6, 1  ;;  %v588_v28 = vrot.slane %v587_v5, 1  ;;  %v747_v52 = vrot.slane %v746_v13, 4  ;;  %v2026_v58 = vpop.f32.mrb[13].mxu1 }
 0x288   :  { %425 = vst [vmem:[%s3182_s10 + $0x6] sm:$0x1] %v397_v10  ;;  %426 = vst [vmem:[%s3182_s10 + $0x7] sm:$0x1] %v401_v43  ;;  %v740_v19 = vadd.f32 %v739_v9, %v738_v7  ;;  %v766_v20 = vsel %vm374_vm2, %v765_v27, 0.0  ;;  %v780_v40 = vrot.slane %v736_v39, 6  ;;  %v912_v1 = vadd.f32 %v911_v34, %v2742_v53 }
 0x289   :  { %v914_v0 = vpop.f32.mrb[14].mxu1  ;;  %v561_v41 = vadd.f32 %v560_v62, %v559_v49  ;;  %v569_v17 = vadd.f32 %v568_v29, %v567_v6  ;;  %v589_v21 = vadd.f32 %v588_v28, %v587_v5  ;;  %v748_v35 = vadd.f32 %v747_v52, %v746_v13 }
 0x28a   :  { %v2027_v59 = vpop.f32.mrb[15].mxu1  ;;  %v741_v31 = vrot.slane %v740_v19, 2  ;;  %v767_v50 = vrot.slane %v766_v20, 4  ;;  %782 = vst [vmem:[%s3182_s10 + $0x10] sm:$0x3c] %v780_v40  ;;  %v917_v24 = vmax.f32 %v912_v1, 0.0  ;;  %v945_v44 = vsub.f32 %v2812_v4, %v2804_v12 }
 0x28b   :  { %v570_v63 = vmul.f32 %v561_v41, %v3213_v30  ;;  %v571_v2 = vmul.f32 %v569_v17, %v3214_v25  ;;  %v574_v15 = vmul.f32 %v561_v41, %v3214_v25  ;;  %v575_v61 = vmul.f32 %v569_v17, %v3213_v30  ;;  %610 = vst [vmem:[%s3182_s10 + $0x50] sm:$0x1] %v589_v21 }
 0x28c   :  { %v742_v18 = vadd.f32 %v741_v31, %v740_v19  ;;  %v749_v39 = vrot.slane %v748_v35, 2  ;;  %v768_v37 = vadd.f32 %v767_v50, %v766_v20  ;;  %v918_v38 = vmul.f32 %v917_v24, %v2740_v11 }
 0x28d   :  { %v572_v33 = vsub.f32 %v570_v63, %v571_v2  ;;  %v576_v22 = vadd.f32 %v575_v61, %v574_v15  ;;  %v926_v4 = vmul.f32 %v917_v24, %v2780_v36  ;;  %v946_v23 = vmul.f32 %v945_v44, %v917_v24 }
 0x28e   :  { %v743_v51 = vrot.slane %v742_v18, 1  ;;  %v750_v42 = vadd.f32 %v749_v39, %v748_v35  ;;  %v769_v60 = vrot.slane %v768_v37, 2  ;;  %v919_v56 = vsel %vm374_vm2, %v918_v38, 0.0  ;;  %v1092_v46 = vpop.f32.mrb[16].mxu1 }
 0x28f   :  { %v573_v54 = vsub.f32 0.0, %v572_v33  ;;  %v577_v48 = vsub.f32 0.0, %v576_v22  ;;  %v920_v32 = vrot.slane %v919_v56, 4  ;;  %v927_v27 = vsel %vm374_vm2, %v926_v4, 0.0  ;;  %v2042_v49 = vpop.f32.mrb[17].mxu1 }
 0x290   :  { %v744_v6 = vadd.f32 %v743_v51, %v742_v18  ;;  %v751_v5 = vrot.slane %v750_v42, 1  ;;  %v770_v7 = vadd.f32 %v769_v60, %v768_v37  ;;  %v928_v10 = vrot.slane %v927_v27, 4  ;;  %v1095_v43 = vpop.f32.mrb[18].mxu1 }
 0x291   :  { %v603_v9 = vrot.slane %v573_v54, 1  ;;  %v607_v13 = vrot.slane %v577_v48, 1  ;;  %v921_v34 = vadd.f32 %v920_v32, %v919_v56  ;;  %v947_v62 = vsel %vm374_vm2, %v946_v23, 0.0  ;;  %v2043_v29 = vpop.f32.mrb[19].mxu1 }
 0x292   :  { %v752_v28 = vadd.f32 %v751_v5, %v750_v42  ;;  %v753_v52 = vmul.f32 %v744_v6, %v3213_v30  ;;  %v757_v58 = vmul.f32 %v744_v6, %v3214_v25  ;;  %v771_v19 = vrot.slane %v770_v7, 1 }
 0x293   :  { %605 = vst [vmem:[%s3182_s10 + $0xe] sm:$0x1] %v603_v9  ;;  %609 = vst [vmem:[%s3182_s10 + $0xf] sm:$0x1] %v607_v13  ;;  %v922_v20 = vrot.slane %v921_v34, 2  ;;  %v929_v40 = vadd.f32 %v928_v10, %v927_v27  ;;  %v948_v1 = vrot.slane %v947_v62, 4  ;;  %v1093_v35 = vadd.f32 %v1092_v46, %v2742_v53 }
 0x294   :  { %v961_v0 = vrot.slane %v917_v24, 6  ;;  %v754_v41 = vmul.f32 %v752_v28, %v3214_v25  ;;  %v758_v17 = vmul.f32 %v752_v28, %v3213_v30  ;;  %v772_v21 = vadd.f32 %v771_v19, %v770_v7 }
 0x295   :  { %v923_v59 = vadd.f32 %v922_v20, %v921_v34  ;;  %v930_v31 = vrot.slane %v929_v40, 2  ;;  %v949_v50 = vadd.f32 %v948_v1, %v947_v62  ;;  %v1126_v44 = vsub.f32 %v2814_v26, %v2804_v12 }
 0x296   :  { %963 = vst [vmem:[%s3182_s10 + $0x18] sm:$0x3c] %v961_v0  ;;  %v755_v63 = vsub.f32 %v753_v52, %v754_v41  ;;  %v759_v2 = vadd.f32 %v758_v17, %v757_v58  ;;  %791 = vst [vmem:[%s3182_s10 + $0x58] sm:$0x1] %v772_v21  ;;  %v1098_v24 = vmax.f32 %v1093_v35, 0.0  ;;  %v1273_v15 = vpop.f32.mrb[20].mxu1  ;;  %v1307_v61 = vsub.f32 %v2816_v14, %v2804_v12 }
 0x297   :  { %v924_v18 = vrot.slane %v923_v59, 1  ;;  %v931_v39 = vadd.f32 %v930_v31, %v929_v40  ;;  %v950_v37 = vrot.slane %v949_v50, 2  ;;  %v1274_v38 = vadd.f32 %v1273_v15, %v2742_v53  ;;  %v2058_v33 = vpop.f32.mrb[21].mxu1 }
 0x298   :  { %v756_v22 = vsub.f32 0.0, %v755_v63  ;;  %v760_v4 = vsub.f32 0.0, %v759_v2  ;;  %v1099_v26 = vmul.f32 %v1098_v24, %v2740_v11  ;;  %v1107_v23 = vmul.f32 %v1098_v24, %v2780_v36  ;;  %v1276_v51 = vpop.f32.mrb[22].mxu1 }
 0x299   :  { %v925_v42 = vadd.f32 %v924_v18, %v923_v59  ;;  %v932_v60 = vrot.slane %v931_v39, 1  ;;  %v951_v56 = vadd.f32 %v950_v37, %v949_v50  ;;  %v1127_v46 = vmul.f32 %v1126_v44, %v1098_v24  ;;  %v2059_v54 = vpop.f32.mrb[23].mxu1 }
 0x29a   :  { %v784_v48 = vrot.slane %v756_v22, 2  ;;  %v788_v14 = vrot.slane %v760_v4, 2  ;;  %v1100_v32 = vsel %vm374_vm2, %v1099_v26, 0.0  ;;  %v1108_v27 = vsel %vm374_vm2, %v1107_v23, 0.0 }
 0x29b   :  { %v933_v49 = vadd.f32 %v932_v60, %v931_v39  ;;  %v934_v6 = vmul.f32 %v925_v42, %v3213_v30  ;;  %v938_v5 = vmul.f32 %v925_v42, %v3214_v25  ;;  %v952_v7 = vrot.slane %v951_v56, 1 }
 0x29c   :  { %786 = vst [vmem:[%s3182_s10 + $0x16] sm:$0x1] %v784_v48  ;;  %790 = vst [vmem:[%s3182_s10 + $0x17] sm:$0x1] %v788_v14  ;;  %v1101_v10 = vrot.slane %v1100_v32, 4  ;;  %v1109_v43 = vrot.slane %v1108_v27, 4  ;;  %v1488_v40 = vsub.f32 %v2818_v57, %v2804_v12 }
 0x29d   :  { %v1128_v9 = vsel %vm374_vm2, %v1127_v46, 0.0  ;;  %v1142_v13 = vrot.slane %v1098_v24, 6  ;;  %v935_v34 = vmul.f32 %v933_v49, %v3214_v25  ;;  %v939_v62 = vmul.f32 %v933_v49, %v3213_v30 }
 0x29e   :  { %v953_v29 = vadd.f32 %v952_v7, %v951_v56  ;;  %v1129_v28 = vrot.slane %v1128_v9, 4  ;;  %v1102_v52 = vadd.f32 %v1101_v10, %v1100_v32  ;;  %v1110_v58 = vadd.f32 %v1109_v43, %v1108_v27  ;;  %v1454_v20 = vpop.f32.mrb[24].mxu1 }
 0x29f   :  { %1144 = vst [vmem:[%s3182_s10 + $0x20] sm:$0x3c] %v1142_v13  ;;  %v1279_v19 = vmax.f32 %v1274_v38, 0.0  ;;  %v936_v1 = vsub.f32 %v934_v6, %v935_v34  ;;  %v940_v0 = vadd.f32 %v939_v62, %v938_v5  ;;  %v1455_v17 = vadd.f32 %v1454_v20, %v2742_v53  ;;  %v2074_v21 = vpop.f32.mrb[25].mxu1 }
 0x2a0   :  { %972 = vst [vmem:[%s3182_s10 + $0x60] sm:$0x1] %v953_v29  ;;  %v1130_v41 = vadd.f32 %v1129_v28, %v1128_v9  ;;  %v1103_v35 = vrot.slane %v1102_v52, 2  ;;  %v1111_v59 = vrot.slane %v1110_v58, 2  ;;  %v1457_v44 = vpop.f32.mrb[26].mxu1 }
 0x2a1   :  { %v1280_v31 = vmul.f32 %v1279_v19, %v2740_v11  ;;  %v1288_v50 = vmul.f32 %v1279_v19, %v2780_v36  ;;  %v937_v63 = vsub.f32 0.0, %v936_v1  ;;  %v941_v2 = vsub.f32 0.0, %v940_v0  ;;  %v2075_v15 = vpop.f32.mrb[27].mxu1 }
 0x2a2   :  { %v1131_v57 = vrot.slane %v1130_v41, 2  ;;  %v1308_v24 = vmul.f32 %v1307_v61, %v1279_v19  ;;  %v1104_v18 = vadd.f32 %v1103_v35, %v1102_v52  ;;  %v1112_v39 = vadd.f32 %v1111_v59, %v1110_v58 }
 0x2a3   :  { %v1281_v37 = vsel %vm374_vm2, %v1280_v31, 0.0  ;;  %v1289_v38 = vsel %vm374_vm2, %v1288_v50, 0.0  ;;  %v965_v33 = vrot.slane %v937_v63, 3  ;;  %v969_v22 = vrot.slane %v941_v2, 3 }
 0x2a4   :  { %v1132_v4 = vadd.f32 %v1131_v57, %v1130_v41  ;;  %v1282_v26 = vrot.slane %v1281_v37, 4  ;;  %v1105_v23 = vrot.slane %v1104_v18, 1  ;;  %v1113_v51 = vrot.slane %v1112_v39, 1 }
 0x2a5   :  { %v1290_v42 = vrot.slane %v1289_v38, 4  ;;  %v1309_v60 = vsel %vm374_vm2, %v1308_v24, 0.0  ;;  %967 = vst [vmem:[%s3182_s10 + $0x1e] sm:$0x1] %v965_v33  ;;  %971 = vst [vmem:[%s3182_s10 + $0x1f] sm:$0x1] %v969_v22 }
 0x2a6   :  { %v1133_v61 = vrot.slane %v1132_v4, 1  ;;  %v1283_v56 = vadd.f32 %v1282_v26, %v1281_v37  ;;  %v1310_v46 = vrot.slane %v1309_v60, 4  ;;  %v1323_v54 = vrot.slane %v1279_v19, 6  ;;  %v1635_v49 = vpop.f32.mrb[28].mxu1 }
 0x2a7   :  { %v1106_v48 = vadd.f32 %v1105_v23, %v1104_v18  ;;  %v1114_v14 = vadd.f32 %v1113_v51, %v1112_v39  ;;  %v1291_v32 = vadd.f32 %v1290_v42, %v1289_v38  ;;  %v1460_v27 = vmax.f32 %v1455_v17, 0.0  ;;  %v2090_v43 = vpop.f32.mrb[29].mxu1 }
 0x2a8   :  { %v1134_v6 = vadd.f32 %v1133_v61, %v1132_v4  ;;  %v1284_v5 = vrot.slane %v1283_v56, 2  ;;  %v1311_v7 = vadd.f32 %v1310_v46, %v1309_v60  ;;  %1325 = vst [vmem:[%s3182_s10 + $0x28] sm:$0x3c] %v1323_v54  ;;  %v1636_v10 = vadd.f32 %v1635_v49, %v2742_v53  ;;  %v1638_v29 = vpop.f32.mrb[30].mxu1 }
 0x2a9   :  { %v1115_v9 = vmul.f32 %v1106_v48, %v3213_v30  ;;  %v1116_v13 = vmul.f32 %v1114_v14, %v3214_v25  ;;  %v1119_v34 = vmul.f32 %v1106_v48, %v3214_v25  ;;  %v1120_v62 = vmul.f32 %v1114_v14, %v3213_v30  ;;  %v2091_v20 = vpop.f32.mrb[31].mxu1 }
 0x2aa   :  { %1153 = vst [vmem:[%s3182_s10 + $0x68] sm:$0x1] %v1134_v6  ;;  %v1285_v28 = vadd.f32 %v1284_v5, %v1283_v56  ;;  %v1292_v52 = vrot.slane %v1291_v32, 2  ;;  %v1312_v58 = vrot.slane %v1311_v7, 2  ;;  %v1461_v19 = vmul.f32 %v1460_v27, %v2740_v11 }
 0x2ab   :  { %v1117_v1 = vsub.f32 %v1115_v9, %v1116_v13  ;;  %v1121_v0 = vadd.f32 %v1120_v62, %v1119_v34  ;;  %v1469_v41 = vmul.f32 %v1460_v27, %v2780_v36  ;;  %v1489_v17 = vmul.f32 %v1488_v40, %v1460_v27 }
 0x2ac   :  { %v1286_v21 = vrot.slane %v1285_v28, 1  ;;  %v1293_v35 = vadd.f32 %v1292_v52, %v1291_v32  ;;  %v1313_v59 = vadd.f32 %v1312_v58, %v1311_v7  ;;  %v1462_v31 = vsel %vm374_vm2, %v1461_v19, 0.0 }
 0x2ad   :  { %v1118_v50 = vsub.f32 0.0, %v1117_v1  ;;  %v1122_v44 = vsub.f32 0.0, %v1121_v0  ;;  %v1463_v63 = vrot.slane %v1462_v31, 4  ;;  %v1470_v2 = vsel %vm374_vm2, %v1469_v41, 0.0 }
 0x2ae   :  { %v1287_v57 = vadd.f32 %v1286_v21, %v1285_v28  ;;  %v1294_v24 = vrot.slane %v1293_v35, 1  ;;  %v1314_v15 = vrot.slane %v1313_v59, 1  ;;  %v1471_v18 = vrot.slane %v1470_v2, 4  ;;  %v1816_v40 = vpop.f32.mrb[32].mxu1 }
 0x2af   :  { %v1146_v39 = vrot.slane %v1118_v50, 4  ;;  %v1150_v37 = vrot.slane %v1122_v44, 4  ;;  %v1464_v38 = vadd.f32 %v1463_v63, %v1462_v31  ;;  %v1490_v33 = vsel %vm374_vm2, %v1489_v17, 0.0  ;;  %v2106_v51 = vpop.f32.mrb[33].mxu1 }
 0x2b0   :  { %v1295_v22 = vadd.f32 %v1294_v24, %v1293_v35  ;;  %v1296_v4 = vmul.f32 %v1287_v57, %v3213_v30  ;;  %v1300_v26 = vmul.f32 %v1287_v57, %v3214_v25  ;;  %v1315_v23 = vadd.f32 %v1314_v15, %v1313_v59  ;;  %v1819_v46 = vpop.f32.mrb[34].mxu1 }
 0x2b1   :  { %1148 = vst [vmem:[%s3182_s10 + $0x26] sm:$0x1] %v1146_v39  ;;  %1152 = vst [vmem:[%s3182_s10 + $0x27] sm:$0x1] %v1150_v37  ;;  %v1465_v42 = vrot.slane %v1464_v38, 2  ;;  %v1472_v60 = vadd.f32 %v1471_v18, %v1470_v2  ;;  %v1491_v61 = vrot.slane %v1490_v33, 4 }
 0x2b2   :  { %v1504_v56 = vrot.slane %v1460_v27, 6  ;;  %v1297_v54 = vmul.f32 %v1295_v22, %v3214_v25  ;;  %v1301_v48 = vmul.f32 %v1295_v22, %v3213_v30  ;;  %1334 = vst [vmem:[%s3182_s10 + $0x70] sm:$0x1] %v1315_v23  ;;  %v1641_v14 = vmax.f32 %v1636_v10, 0.0  ;;  %v2107_v32 = vpop.f32.mrb[35].mxu1 }
 0x2b3   :  { %v1466_v49 = vadd.f32 %v1465_v42, %v1464_v38  ;;  %v1473_v6 = vrot.slane %v1472_v60, 2  ;;  %v1492_v5 = vadd.f32 %v1491_v61, %v1490_v33  ;;  %v1817_v27 = vadd.f32 %v1816_v40, %v2742_v53 }
 0x2b4   :  { %1506 = vst [vmem:[%s3182_s10 + $0x30] sm:$0x3c] %v1504_v56  ;;  %v1298_v7 = vsub.f32 %v1296_v4, %v1297_v54  ;;  %v1302_v43 = vadd.f32 %v1301_v48, %v1300_v26  ;;  %v1642_v9 = vmul.f32 %v1641_v14, %v2740_v11  ;;  %v1650_v13 = vmul.f32 %v1641_v14, %v2780_v36 }
 0x2b5   :  { %v1467_v34 = vrot.slane %v1466_v49, 1  ;;  %v1474_v62 = vadd.f32 %v1473_v6, %v1472_v60  ;;  %v1493_v29 = vrot.slane %v1492_v5, 2  ;;  %v1670_v10 = vmul.f32 %v1669_v47, %v1641_v14 }
 0x2b6   :  { %v1299_v28 = vsub.f32 0.0, %v1298_v7  ;;  %v1303_v52 = vsub.f32 0.0, %v1302_v43  ;;  %v1643_v58 = vsel %vm374_vm2, %v1642_v9, 0.0  ;;  %v1651_v19 = vsel %vm374_vm2, %v1650_v13, 0.0 }
 0x2b7   :  { %v1468_v53 = vadd.f32 %v1467_v34, %v1466_v49  ;;  %v1475_v20 = vrot.slane %v1474_v62, 1  ;;  %v1494_v1 = vadd.f32 %v1493_v29, %v1492_v5  ;;  %v1644_v0 = vrot.slane %v1643_v58, 4 }
 0x2b8   :  { %v1327_v41 = vrot.slane %v1299_v28, 5  ;;  %v1331_v17 = vrot.slane %v1303_v52, 5  ;;  %v1652_v21 = vrot.slane %v1651_v19, 4  ;;  %v1671_v35 = vsel %vm374_vm2, %v1670_v10, 0.0 }
 0x2b9   :  { %v1476_v59 = vadd.f32 %v1475_v20, %v1474_v62  ;;  %v1477_v31 = vmul.f32 %v1468_v53, %v3213_v30  ;;  %v1481_v45 = vmul.f32 %v1468_v53, %v3214_v25  ;;  %v1495_v47 = vrot.slane %v1494_v1, 1 }
 0x2ba   :  { %1329 = vst [vmem:[%s3182_s10 + $0x2e] sm:$0x1] %v1327_v41  ;;  %1333 = vst [vmem:[%s3182_s10 + $0x2f] sm:$0x1] %v1331_v17  ;;  %v1645_v50 = vadd.f32 %v1644_v0, %v1643_v58  ;;  %v1653_v44 = vadd.f32 %v1652_v21, %v1651_v19  ;;  %v1672_v63 = vrot.slane %v1671_v35, 4  ;;  %v1685_v2 = vrot.slane %v1641_v14, 6 }
 0x2bb   :  { %v1478_v57 = vmul.f32 %v1476_v59, %v3214_v25  ;;  %v1482_v24 = vmul.f32 %v1476_v59, %v3213_v30  ;;  %v1496_v15 = vadd.f32 %v1495_v47, %v1494_v1  ;;  %v1822_v18 = vmax.f32 %v1817_v27, 0.0 }
 0x2bc   :  { %v1646_v39 = vrot.slane %v1645_v50, 2  ;;  %v1654_v37 = vrot.slane %v1653_v44, 2  ;;  %v1673_v38 = vadd.f32 %v1672_v63, %v1671_v35  ;;  %1687 = vst [vmem:[%s3182_s10 + $0x38] sm:$0x3c] %v1685_v2 }
 0x2bd   :  { %v1479_v33 = vsub.f32 %v1477_v31, %v1478_v57  ;;  %v1483_v40 = vadd.f32 %v1482_v24, %v1481_v45  ;;  %1515 = vst [vmem:[%s3182_s10 + $0x78] sm:$0x1] %v1496_v15  ;;  %v1823_v22 = vmul.f32 %v1822_v18, %v2740_v11  ;;  %v1831_v4 = vmul.f32 %v1822_v18, %v2780_v36 }
 0x2be   :  { %v1647_v26 = vadd.f32 %v1646_v39, %v1645_v50  ;;  %v1655_v23 = vadd.f32 %v1654_v37, %v1653_v44  ;;  %v1674_v51 = vrot.slane %v1673_v38, 2  ;;  %v1851_v42 = vmul.f32 %v1850_v16, %v1822_v18 }
 0x2bf   :  { %v1480_v60 = vsub.f32 0.0, %v1479_v33  ;;  %v1484_v61 = vsub.f32 0.0, %v1483_v40  ;;  %v1824_v56 = vsel %vm374_vm2, %v1823_v22, 0.0  ;;  %v1832_v46 = vsel %vm374_vm2, %v1831_v4, 0.0 }
 0x2c0   :  { %v1648_v54 = vrot.slane %v1647_v26, 1  ;;  %v1656_v48 = vrot.slane %v1655_v23, 1  ;;  %v1675_v14 = vadd.f32 %v1674_v51, %v1673_v38  ;;  %v1825_v32 = vrot.slane %v1824_v56, 4 }
 0x2c1   :  { %v1508_v11 = vrot.slane %v1480_v60, 6  ;;  %v1512_v49 = vrot.slane %v1484_v61, 6  ;;  %v1833_v36 = vrot.slane %v1832_v46, 4  ;;  %v1852_v6 = vsel %vm374_vm2, %v1851_v42, 0.0 }
 0x2c2   :  { %v1649_v5 = vadd.f32 %v1648_v54, %v1647_v26  ;;  %v1657_v27 = vadd.f32 %v1656_v48, %v1655_v23  ;;  %v1676_v7 = vrot.slane %v1675_v14, 1  ;;  %v1826_v12 = vadd.f32 %v1825_v32, %v1824_v56 }
 0x2c3   :  { %1510 = vst [vmem:[%s3182_s10 + $0x36] sm:$0x1] %v1508_v11  ;;  %1514 = vst [vmem:[%s3182_s10 + $0x37] sm:$0x1] %v1512_v49  ;;  %v1834_v8 = vadd.f32 %v1833_v36, %v1832_v46  ;;  %v1853_v16 = vrot.slane %v1852_v6, 4  ;;  %v1862_v43 = vrot.slane %v1822_v18, 6 }
 0x2c4   :  { %v1658_v9 = vmul.f32 %v1649_v5, %v3213_v30  ;;  %v1659_v13 = vmul.f32 %v1657_v27, %v3214_v25  ;;  %v1662_v34 = vmul.f32 %v1649_v5, %v3214_v25  ;;  %v1663_v62 = vmul.f32 %v1657_v27, %v3213_v30 }
 0x2c5   :  { %v1677_v29 = vadd.f32 %v1676_v7, %v1675_v14  ;;  %v1827_v10 = vrot.slane %v1826_v12, 2  ;;  %v1835_v28 = vrot.slane %v1834_v8, 2  ;;  %v1854_v52 = vadd.f32 %v1853_v16, %v1852_v6  ;;  %1864 = vst [vmem:[%s3182_s10 + $0x40] sm:$0x3c] %v1862_v43 }
 0x2c6   :  { %v1660_v58 = vsub.f32 %v1658_v9, %v1659_v13  ;;  %v1664_v19 = vadd.f32 %v1663_v62, %v1662_v34 }
 0x2c7   :  { %1696 = vst [vmem:[%s3182_s10 + $0x80] sm:$0x1] %v1677_v29  ;;  %v1828_v53 = vadd.f32 %v1827_v10, %v1826_v12  ;;  %v1836_v20 = vadd.f32 %v1835_v28, %v1834_v8  ;;  %v1855_v1 = vrot.slane %v1854_v52, 2 }
 0x2c8   :  { %v1661_v25 = vsub.f32 0.0, %v1660_v58  ;;  %v1665_v0 = vsub.f32 0.0, %v1664_v19 }
 0x2c9   :  { %v1829_v30 = vrot.slane %v1828_v53, 1  ;;  %v1837_v41 = vrot.slane %v1836_v20, 1  ;;  %v1856_v17 = vadd.f32 %v1855_v1, %v1854_v52 }
 0x2ca   :  { %v1689_v21 = vrot.slane %v1661_v25, 7  ;;  %v1693_v35 = vrot.slane %v1665_v0, 7 }
 0x2cb   :  { %v1830_v59 = vadd.f32 %v1829_v30, %v1828_v53  ;;  %v1838_v31 = vadd.f32 %v1837_v41, %v1836_v20  ;;  %v1857_v45 = vrot.slane %v1856_v17, 1 }
 0x2cc   :  { %1691 = vst [vmem:[%s3182_s10 + $0x3e] sm:$0x1] %v1689_v21  ;;  %1695 = vst [vmem:[%s3182_s10 + $0x3f] sm:$0x1] %v1693_v35 }
 0x2cd   :  { %v1839_v47 = vmul.f32 %v1830_v59, %v2628_v55  ;;  %v1840_v50 = vmul.f32 %v1838_v31, %v2606_v3  ;;  %v1843_v44 = vmul.f32 %v1830_v59, %v2606_v3  ;;  %v1844_v63 = vmul.f32 %v1838_v31, %v2628_v55 }
 0x2ce   :  { %v1858_v2 = vadd.f32 %v1857_v45, %v1856_v17 }
 0x2cf   :  { %v1841_v57 = vsub.f32 %v1839_v47, %v1840_v50  ;;  %v1845_v24 = vadd.f32 %v1844_v63, %v1843_v44 }
 0x2d0   :  { %1867 = vst [vmem:[%s3182_s10 + $0x88] sm:$0x1] %v1858_v2 }
 0x2d1   :  { %v1842_v15 = vsub.f32 0.0, %v1841_v57  ;;  %v1846_v18 = vsub.f32 0.0, %v1845_v24 }
 0x2d3   :  { %1865 = vst [vmem:[%s3182_s10 + $0x46] sm:$0x1] %v1842_v15  ;;  %1866 = vst [vmem:[%s3182_s10 + $0x47] sm:$0x1] %v1846_v18 }

</bundles_post_ra>
